<compile_context>
chip_gen: v7x
topology: tpu7x:2x2x1
jax: 0.10.0
libtpu: 0.0.40
codegen_flags: <defaults>
</compile_context>

<pallas_src>
import functools
import math

import jax
import jax.numpy as jnp
from jax import lax
from jax.experimental import pallas as pl
from jax.experimental.pallas import tpu as pltpu


# ------------------------------- fused kernel -------------------------------

def _decoder_block_kernel(
        # batch-tiled inputs
        x_ref, y_ref, mem_ref, mask_ref,
        # hyper-network first stage (all 8 branches concatenated, lane-dense)
        w1cat_ref, b1cat_ref,
        # per-ConditionalLinear params: Wmain ((K+1)*din, dout), bW2^T (K, dout), bb2 (1, dout)
        wm0_ref, bw0_ref, bb0_ref,
        wm1_ref, bw1_ref, bb1_ref,
        wm2_ref, bw2_ref, bb2_ref,
        wm3_ref, bw3_ref, bb3_ref,
        # attention weights (head-contiguous columns, 1/sqrt(Dh) folded into wq)
        wq_ref, wk_ref, wv_ref, w0_ref, psum_ref, psumt_ref,
        # LayerNorm affine params
        g1_ref, be1_ref, g2_ref, be2_ref, g3_ref, be3_ref,
        # outputs
        out_ref, att_ref,
        *, K, eps, cdt):
    f32 = jnp.float32
    x = x_ref[...]                                   # (TB, dim)   f32
    cond = y_ref[...]                                # (TB, dcond) f32
    TB = x.shape[0]

    def mm(a, w_ref):
        # MXU matmul: operands in the compute dtype (bf16 fast path), f32 accumulation.
        return jnp.dot(a.astype(cdt), w_ref[...], preferred_element_type=f32)

    # ---- all 8 hyper-net first stages (Linear + ReLU) as ONE lane-dense matmul ----
    h_all = jnp.maximum(mm(cond, w1cat_ref) + b1cat_ref[...], 0.0)     # (TB, 8K)

    lays = ((wm0_ref, bw0_ref, bb0_ref), (wm1_ref, bw1_ref, bb1_ref),
            (wm2_ref, bw2_ref, bb2_ref), (wm3_ref, bw3_ref, bb3_ref))

    def cond_linear(j, xv):
        """ConditionalLinear without materializing L:
             out[b,o] = sum_{k,i} hl[b,k] * xv[b,i] * lW2[o*din+i, k]   (z @ Wmain)
                      + sum_i    lb2[o*din+i] * xv[b,i]                 (last slab of Wmain)
                      + (hb @ bW2^T + bb2)[b,o]                         (hyper bias branch)
        """
        wm_ref, bw_ref, bb_ref = lays[j]
        hl = h_all[:, j * K:(j + 1) * K]                    # (TB, K)  L-branch hidden
        hb = h_all[:, (4 + j) * K:(5 + j) * K]              # (TB, K)  bias-branch hidden
        # Flattened outer product z[b, k*din + i] = hl[b, k] * xv[b, i]; the last
        # din-wide slab is xv itself (it multiplies the folded-in lb2 rows of Wmain).
        # Built with lane-broadcast multiplies + one lane concatenation: no in-kernel
        # reshapes / gathers, all heavy work lands on the MXU.
        z = jnp.concatenate([hl[:, kk:kk + 1] * xv for kk in range(K)] + [xv], axis=1)
        return mm(z, wm_ref) + mm(hb, bw_ref) + bb_ref[...]

    def layernorm(v, g_ref, b_ref):
        mu = jnp.mean(v, axis=-1, keepdims=True)
        c = v - mu
        var = jnp.mean(c * c, axis=-1, keepdims=True)       # biased, like torch LayerNorm
        return c * lax.rsqrt(var + eps) * g_ref[...] + b_ref[...]

    # ---- conditional MLP 1 + residual LayerNorm (dropout = identity in eval) ----
    h = jnp.maximum(cond_linear(0, x), 0.0)
    h = cond_linear(1, h)
    x1 = layernorm(h + x, g1_ref, be1_ref)                  # (TB, dim)

    # ---- multi-head cross attention (query length 1), channel axis kept lane-dense ----
    mem = mem_ref[...]                                      # (TB, S, Dm)
    S, Dm = mem.shape[1], mem.shape[2]
    mem2 = mem.reshape(TB * S, Dm)                          # leading-dim collapse (layout-free)
    q = mm(x1, wq_ref)                                      # (TB, C)   (scale folded into wq)
    k = mm(mem2, wk_ref)                                    # (TB*S, C)
    v = mm(mem2, wv_ref)                                    # (TB*S, C)
    C = q.shape[-1]
    Hh = psum_ref.shape[-1]
    # exact per-channel q.k products (VPU, minimal work), then per-head sum over Dh via an
    # exact 0/1 pooling matmul -- no H-times redundant contraction, no per-head loop.
    qk = q[:, None, :] * k.reshape(TB, S, C)                # (TB, S, C)
    scores = jnp.dot(qk.reshape(TB * S, C), psum_ref[...],
                     preferred_element_type=f32).reshape(TB, S, Hh)    # (TB, S, H)
    scores = scores + mask_ref[...][None, :, :]             # additive -inf mask (zeros if none)
    m = jnp.max(scores, axis=1, keepdims=True)              # softmax over S
    e = jnp.exp(scores - m)
    den = jnp.sum(e, axis=1, keepdims=True)
    att = e / den                                           # exact division (att is emitted)
    att_ref[...] = att                                      # (TB, S, H)
    # broadcast per-head probs back onto the channel axis (exact 0/1 matmul), weight v,
    # and reduce over S.
    att_exp = jnp.dot(att.reshape(TB * S, Hh), psumt_ref[...],
                      preferred_element_type=f32)           # (TB*S, C)
    ctx = jnp.sum((att_exp * v).reshape(TB, S, C), axis=1)  # (TB, C)
    attn_out = mm(ctx, w0_ref)                              # (TB, dim)
    x2 = layernorm(attn_out + x1, g2_ref, be2_ref)

    # ---- conditional MLP 2 + residual LayerNorm ----
    h = jnp.maximum(cond_linear(2, x2), 0.0)
    h = cond_linear(3, h)
    out_ref[...] = layernorm(h + x2, g3_ref, be3_ref)


# --------------------- parameter preprocessing (hoisted) -------------------

def prepare_params(params, compute_dtype=jnp.bfloat16):
    """One-time parameter preprocessing (hoisted out of the forward pass)."""
    cdt = compute_dtype
    H, Dh = params["heads"], params["dim_head"]
    C = H * Dh

    layers = params["cond_mlp1"] + params["cond_mlp2"]
    K = layers[0]["lW1"].shape[0]                         # dim_cond // 2

    # All eight hyper-net first stages share the same input y; fuse them into one
    # lane-dense weight: columns [L-hidden x4 | bias-hidden x4], each K wide.
    w1cat = jnp.concatenate([p["lW1"].T for p in layers] +
                            [p["bW1"].T for p in layers], axis=1).astype(cdt)
    b1cat = jnp.concatenate([p["lb1"] for p in layers] +
                            [p["bb1"] for p in layers], axis=1)          # f32 (post-matmul add)

    def prep_layer(p):
        din, dout = p["din"], p["dout"]
        # Wmain[(k, i), o] = lW2[o*din + i, k]; the extra slab (rows K*din + i) carries the
        # hyper-net second-stage bias lb2, which the kernel multiplies by x.
        w3 = p["lW2"].reshape(dout, din, K)               # [o, i, k]
        wm = jnp.transpose(w3, (2, 1, 0)).reshape(K * din, dout)
        bm = p["lb2"].reshape(dout, din).T                # [i, o]
        wmain = jnp.concatenate([wm, bm], axis=0).astype(cdt)   # ((K+1)*din, dout)
        return dict(wm=wmain, bw=p["bW2"].T.astype(cdt), bb=p["bb2"],
                    din=din, dout=dout)

    lay = [prep_layer(p) for p in layers]

    # Attention weights with head-contiguous columns (c = h*Dh + d); einops head
    # permutations of Wq / Wkv hoisted here, and 1/sqrt(Dh) folded into Wq.
    j = jnp.arange(C)
    h_idx, d_idx = j // Dh, j % Dh
    wq_t = (params["Wq"][d_idx * H + h_idx, :].T * (float(Dh) ** -0.5)).astype(cdt)
    wk_t = params["Wkv"][d_idx * 2 * H + h_idx, :].T.astype(cdt)
    wv_t = params["Wkv"][d_idx * 2 * H + H + h_idx, :].T.astype(cdt)
    w0_t = params["W0"].T.astype(cdt)
    # exact 0/1 per-head pooling matrices (kept f32 so segmented sums/broadcasts are exact)
    psum = (j[:, None] // Dh == jnp.arange(H)[None, :]).astype(jnp.float32)   # (C, H)
    psumt = psum.T                                                            # (H, C)

    return dict(layers=lay, w1cat=w1cat, b1cat=b1cat,
                wq_t=wq_t, wk_t=wk_t, wv_t=wv_t, w0_t=w0_t, psum=psum, psumt=psumt,
                heads=H, dim_head=Dh, K=K, compute_dtype=cdt,
                g1=params["g1"], b1=params["b1"], g2=params["g2"], b2=params["b2"],
                g3=params["g3"], b3=params["b3"])


# --------------------------- module forward (1 kernel) ----------------------

def transformer_decoder_block(kp, x, y, memory, time=None, mem_mask=None, *,
                              batch_tile=None):
    """Forward pass. `time` is accepted but unused by the reference forward;
    dropout is identity (eval / inference mode)."""
    del time
    B, dim = x.shape
    _, S, Dm = memory.shape
    H, Dh, K = kp["heads"], kp["dim_head"], kp["K"]
    C = H * Dh
    cdt = kp["compute_dtype"]

    # torch: scaled_dot_prod.masked_fill(mask, -inf); mask shape (1, S) -> additive mask.
    if mem_mask is None:
        mask_add = jnp.zeros((S, 1), jnp.float32)
    else:
        mask_add = jnp.where(mem_mask.reshape(S), -jnp.inf, 0.0).astype(jnp.float32)[:, None]

    # Batch tile (second-minor dim must be a multiple of 8 or the full batch).
    if batch_tile is None:
        batch_tile = B if (B <= 8 or B % 8 != 0) else min(B, 128)
    TB = int(batch_tile)
    # TODO(synk): pad the batch instead of requiring B % TB == 0.
    assert B % TB == 0 and (TB == B or TB % 8 == 0), (B, TB)
    grid = (B // TB,)

    weights = [kp["w1cat"], kp["b1cat"]]
    for p in kp["layers"]:
        weights += [p["wm"], p["bw"], p["bb"]]
    weights += [kp["wq_t"], kp["wk_t"], kp["wv_t"], kp["w0_t"], kp["psum"], kp["psumt"],
                kp["g1"], kp["b1"], kp["g2"], kp["b2"], kp["g3"], kp["b3"]]

    def full(a):
        nd = a.ndim
        return pl.BlockSpec(a.shape, lambda i, _nd=nd: (0,) * _nd)   # resident, fetched once

    in_specs = [pl.BlockSpec((TB, dim), lambda i: (i, 0)),
                pl.BlockSpec((TB, y.shape[1]), lambda i: (i, 0)),
                pl.BlockSpec((TB, S, Dm), lambda i: (i, 0, 0)),
                full(mask_add)]
    in_specs += [full(w) for w in weights]

    out_shape = (jax.ShapeDtypeStruct((B, dim), jnp.float32),
                 jax.ShapeDtypeStruct((B, S, H), jnp.float32))
    out_specs = (pl.BlockSpec((TB, dim), lambda i: (i, 0)),
                 pl.BlockSpec((TB, S, H), lambda i: (i, 0, 0)))

    # Advisory cost estimate for XLA's scheduler.
    macs = (y.shape[1] * 8 * K
            + sum((K + 1) * p["din"] * p["dout"] + K * p["dout"] for p in kp["layers"])
            + dim * C + 2 * S * Dm * C + 2 * S * C * H + C * dim)
    bytes_io = 4 * (x.size + y.size + memory.size + B * dim + B * S * H)
    bytes_w = sum(int(w.size) * w.dtype.itemsize for w in weights)
    cost = pl.CostEstimate(flops=int(2 * B * macs),
                           transcendentals=int(B * (S * H + 8)),
                           bytes_accessed=int(bytes_io + bytes_w))

    out, att_bsh = pl.pallas_call(
        functools.partial(_decoder_block_kernel, K=K, eps=1e-5, cdt=cdt),
        grid=grid,
        in_specs=in_specs,
        out_specs=out_specs,
        out_shape=out_shape,
        compiler_params=pltpu.CompilerParams(
            dimension_semantics=("parallel",),       # megacore sharding over the batch
            vmem_limit_bytes=32 * 1024 * 1024),
        cost_estimate=cost,
    )(x, y, memory, mask_add, *weights)

    # kernel emits attention as (B, S, H); the reference layout is (B, H, 1, S).
    # TODO(synk): for long memories, emit (B, H, S) lane-dense directly and block the
    # softmax over S (online softmax) instead of keeping the full S tile resident.
    att = jnp.transpose(att_bsh, (0, 2, 1))[:, :, None, :]
    return out, att


# --------------------------- parameter init -------------------------------

def init_linear(key, fan_in, fan_out):
    kw, kb = jax.random.split(key)
    bound = 1.0 / math.sqrt(fan_in)
    W = jax.random.uniform(kw, (fan_out, fan_in), jnp.float32, -bound, bound)
    b = jax.random.uniform(kb, (1, fan_out), jnp.float32, -bound, bound)
    return W, b


def init_cond_linear(key, din, dout, dcond):
    ks = jax.random.split(key, 4)
    lW1, lb1 = init_linear(ks[0], dcond, dcond // 2)
    lW2, lb2 = init_linear(ks[1], dcond // 2, din * dout)
    bW1, bb1 = init_linear(ks[2], dcond, dcond // 2)
    bW2, bb2 = init_linear(ks[3], dcond // 2, dout)
    return dict(lW1=lW1, lb1=lb1, lW2=lW2, lb2=lb2,
                bW1=bW1, bb1=bb1, bW2=bW2, bb2=bb2, din=din, dout=dout)


def init_params(key, dim, dim_mem, sem_dim, heads, dim_head, dim_linear_block):
    _dim = heads * dim_head
    ks = jax.random.split(key, 8)
    cond_mlp1 = [init_cond_linear(ks[0], dim, dim_linear_block, sem_dim),
                 init_cond_linear(ks[1], dim_linear_block, dim, sem_dim)]
    cond_mlp2 = [init_cond_linear(ks[2], dim, dim_linear_block, sem_dim),
                 init_cond_linear(ks[3], dim_linear_block, dim, sem_dim)]
    Wq, _ = init_linear(ks[4], dim, _dim)           # bias=False
    Wkv, _ = init_linear(ks[5], dim_mem, 2 * _dim)  # bias=False
    W0, _ = init_linear(ks[6], _dim, dim)           # bias=False
    ones = jnp.ones((1, dim), jnp.float32)
    zeros = jnp.zeros((1, dim), jnp.float32)
    return dict(cond_mlp1=cond_mlp1, cond_mlp2=cond_mlp2,
                Wq=Wq, Wkv=Wkv, W0=W0, heads=heads, dim_head=dim_head,
                g1=ones, b1=zeros, g2=ones, b2=zeros, g3=ones, b3=zeros)


# -------------------------- pure-JAX reference -----------------------------

def _ref_mlp2(x, W1, b1, W2, b2):
    return jnp.maximum(x @ W1.T + b1, 0.0) @ W2.T + b2


def _ref_cond_linear(p, x, cond):
    Lf = _ref_mlp2(cond, p["lW1"], p["lb1"], p["lW2"], p["lb2"])
    L = Lf.reshape(x.shape[0], p["dout"], p["din"])
    bias = _ref_mlp2(cond, p["bW1"], p["bb1"], p["bW2"], p["bb2"])
    return jnp.einsum("boi,bi->bo", L, x) + bias


def _ref_cond_mlp(layers, x, cond):
    for p in layers[:-1]:
        x = jax.nn.relu(_ref_cond_linear(p, x, cond))
    return _ref_cond_linear(layers[-1], x, cond)


def _ref_ln(x, g, b, eps=1e-5):
    mu = x.mean(-1, keepdims=True)
    var = ((x - mu) ** 2).mean(-1, keepdims=True)
    return (x - mu) / jnp.sqrt(var + eps) * g + b


def _ref_mha(xq, memory, Wq, Wkv, W0, H, Dh):
    B = xq.shape[0]
    S = memory.shape[1]
    q = xq[:, None, :] @ Wq.T
    kv = memory @ Wkv.T
    q = q.reshape(B, 1, Dh, H).transpose(0, 3, 1, 2)          # b t (d h) -> b h t d
    kvr = kv.reshape(B, S, Dh, 2, H)                           # b t (d k h)
    k = kvr[:, :, :, 0, :].transpose(0, 3, 1, 2)
    v = kvr[:, :, :, 1, :].transpose(0, 3, 1, 2)
    scores = jnp.einsum("bhtd,bhsd->bhts", q, k) * (Dh ** -0.5)
    att = jax.nn.softmax(scores, axis=-1)
    out = jnp.einsum("bhij,bhjd->bhid", att, v)
    out = out.transpose(0, 2, 1, 3).reshape(B, 1, H * Dh)      # b h t d -> b t (h d)
    return (out @ W0.T)[:, 0, :], att


def _ref_block(params, x, y, memory):
    x_ = _ref_cond_mlp(params["cond_mlp1"], x, y)
    x1 = _ref_ln(x_ + x, params["g1"], params["b1"])
    ao, att = _ref_mha(x1, memory, params["Wq"], params["Wkv"], params["W0"],
                       params["heads"], params["dim_head"])
    x2 = _ref_ln(ao + x1, params["g2"], params["b2"])
    x3 = _ref_cond_mlp(params["cond_mlp2"], x2, y)
    return _ref_ln(x3 + x2, params["g3"], params["b3"]), att


# --------------------------------- main ------------------------------------

if __name__ == "__main__":
    dim, dim_mem, sem_dim = 32, 32, 32
    heads, dim_linear_block = 4, 64
    dim_head = dim // heads
    B, S = 16, 8

    key = jax.random.PRNGKey(0)
    k0, kx, ky, km = jax.random.split(key, 4)
    params = init_params(k0, dim, dim_mem, sem_dim, heads, dim_head, dim_linear_block)

    x = jax.random.normal(kx, (B, dim), jnp.float32)
    y = jax.random.normal(ky, (B, sem_dim), jnp.float32)
    memory = jax.random.normal(km, (B, S, dim_mem), jnp.float32)
    time = jnp.zeros((B,), jnp.float32)      # accepted but unused by the forward pass

    ref_out, ref_att = _ref_block(params, x, y, memory)

    # ---- f32 path: authoritative correctness check (tight tolerance) ----
    kp32 = prepare_params(params, compute_dtype=jnp.float32)
    fwd32 = jax.jit(functools.partial(transformer_decoder_block, kp32, batch_tile=8))
    out, att = fwd32(x, y, memory, time)
    out = jax.block_until_ready(out)
    att = jax.block_until_ready(att)
    assert out.shape == (B, dim)
    assert att.shape == (B, heads, 1, S)
    # exact softmax normalization (no approximate reciprocal on the emitted attention)
    assert jnp.allclose(att.sum(-1), 1.0, atol=1e-5), float(jnp.max(jnp.abs(att.sum(-1) - 1.0)))
    assert jnp.allclose(out, ref_out, atol=2e-3, rtol=2e-3), \
        float(jnp.max(jnp.abs(out - ref_out)))
    assert jnp.allclose(att, ref_att, atol=2e-3, rtol=2e-3), \
        float(jnp.max(jnp.abs(att - ref_att)))

    # ---- bf16-matmul fast path (MXU full rate on v5e/v6e/v7x): sanity check ----
    # Looser tolerance reflects bf16 operand rounding (f32 accumulation, f32 softmax/LN)
    # against the f32 reference; the f32 run above is the rigorous correctness check.
    kpbf = prepare_params(params, compute_dtype=jnp.bfloat16)
    fwdbf = jax.jit(functools.partial(transformer_decoder_block, kpbf, batch_tile=8))
    outb, attb = fwdbf(x, y, memory, time)
    outb = jax.block_until_ready(outb)
    attb = jax.block_until_ready(attb)
    assert jnp.allclose(outb, ref_out, atol=1e-1, rtol=1e-1), \
        float(jnp.max(jnp.abs(outb - ref_out)))
    assert jnp.allclose(attb, ref_att, atol=5e-2, rtol=5e-2), \
        float(jnp.max(jnp.abs(attb - ref_att)))

    print("KERNEL_OK")
</pallas_src>

<mosaic_0001>
module attributes {stable_mosaic.version = 11 : i64} {
  func.func @_decoder_block_kernel(%arg0: i32, %arg1: memref<8x32xf32, #tpu.memory_space<vmem>>, %arg2: memref<8x32xf32, #tpu.memory_space<vmem>>, %arg3: memref<8x8x32xf32, #tpu.memory_space<vmem>>, %arg4: memref<8x1xf32, #tpu.memory_space<vmem>>, %arg5: memref<32x128xf32, #tpu.memory_space<vmem>>, %arg6: memref<1x128xf32, #tpu.memory_space<vmem>>, %arg7: memref<544x64xf32, #tpu.memory_space<vmem>>, %arg8: memref<16x64xf32, #tpu.memory_space<vmem>>, %arg9: memref<1x64xf32, #tpu.memory_space<vmem>>, %arg10: memref<1088x32xf32, #tpu.memory_space<vmem>>, %arg11: memref<16x32xf32, #tpu.memory_space<vmem>>, %arg12: memref<1x32xf32, #tpu.memory_space<vmem>>, %arg13: memref<544x64xf32, #tpu.memory_space<vmem>>, %arg14: memref<16x64xf32, #tpu.memory_space<vmem>>, %arg15: memref<1x64xf32, #tpu.memory_space<vmem>>, %arg16: memref<1088x32xf32, #tpu.memory_space<vmem>>, %arg17: memref<16x32xf32, #tpu.memory_space<vmem>>, %arg18: memref<1x32xf32, #tpu.memory_space<vmem>>, %arg19: memref<32x32xf32, #tpu.memory_space<vmem>>, %arg20: memref<32x32xf32, #tpu.memory_space<vmem>>, %arg21: memref<32x32xf32, #tpu.memory_space<vmem>>, %arg22: memref<32x32xf32, #tpu.memory_space<vmem>>, %arg23: memref<32x4xf32, #tpu.memory_space<vmem>>, %arg24: memref<4x32xf32, #tpu.memory_space<vmem>>, %arg25: memref<1x32xf32, #tpu.memory_space<vmem>>, %arg26: memref<1x32xf32, #tpu.memory_space<vmem>>, %arg27: memref<1x32xf32, #tpu.memory_space<vmem>>, %arg28: memref<1x32xf32, #tpu.memory_space<vmem>>, %arg29: memref<1x32xf32, #tpu.memory_space<vmem>>, %arg30: memref<1x32xf32, #tpu.memory_space<vmem>>, %arg31: memref<8x32xf32, #tpu.memory_space<vmem>>, %arg32: memref<8x8x4xf32, #tpu.memory_space<vmem>>) attributes {dimension_semantics = [#tpu.dimension_semantics<parallel>], iteration_bounds = array<i64: 2>, scalar_prefetch = 0 : i64, scratch_operands = 0 : i64, tpu.core_type = #tpu.core_type<tc>, window_params = [{transform_indices = @transform_0, window_bounds = array<i64: 8, 32>}, {transform_indices = @transform_1, window_bounds = array<i64: 8, 32>}, {transform_indices = @transform_2, window_bounds = array<i64: 8, 8, 32>}, {pipeline_mode = #tpu.pipeline_mode<synchronous>, transform_indices = @transform_3, window_bounds = array<i64: 8, 1>}, {pipeline_mode = #tpu.pipeline_mode<synchronous>, transform_indices = @transform_4, window_bounds = array<i64: 32, 128>}, {pipeline_mode = #tpu.pipeline_mode<synchronous>, transform_indices = @transform_5, window_bounds = array<i64: 1, 128>}, {pipeline_mode = #tpu.pipeline_mode<synchronous>, transform_indices = @transform_6, window_bounds = array<i64: 544, 64>}, {pipeline_mode = #tpu.pipeline_mode<synchronous>, transform_indices = @transform_7, window_bounds = array<i64: 16, 64>}, {pipeline_mode = #tpu.pipeline_mode<synchronous>, transform_indices = @transform_8, window_bounds = array<i64: 1, 64>}, {pipeline_mode = #tpu.pipeline_mode<synchronous>, transform_indices = @transform_9, window_bounds = array<i64: 1088, 32>}, {pipeline_mode = #tpu.pipeline_mode<synchronous>, transform_indices = @transform_10, window_bounds = array<i64: 16, 32>}, {pipeline_mode = #tpu.pipeline_mode<synchronous>, transform_indices = @transform_11, window_bounds = array<i64: 1, 32>}, {pipeline_mode = #tpu.pipeline_mode<synchronous>, transform_indices = @transform_12, window_bounds = array<i64: 544, 64>}, {pipeline_mode = #tpu.pipeline_mode<synchronous>, transform_indices = @transform_13, window_bounds = array<i64: 16, 64>}, {pipeline_mode = #tpu.pipeline_mode<synchronous>, transform_indices = @transform_14, window_bounds = array<i64: 1, 64>}, {pipeline_mode = #tpu.pipeline_mode<synchronous>, transform_indices = @transform_15, window_bounds = array<i64: 1088, 32>}, {pipeline_mode = #tpu.pipeline_mode<synchronous>, transform_indices = @transform_16, window_bounds = array<i64: 16, 32>}, {pipeline_mode = #tpu.pipeline_mode<synchronous>, transform_indices = @transform_17, window_bounds = array<i64: 1, 32>}, {pipeline_mode = #tpu.pipeline_mode<synchronous>, transform_indices = @transform_18, window_bounds = array<i64: 32, 32>}, {pipeline_mode = #tpu.pipeline_mode<synchronous>, transform_indices = @transform_19, window_bounds = array<i64: 32, 32>}, {pipeline_mode = #tpu.pipeline_mode<synchronous>, transform_indices = @transform_20, window_bounds = array<i64: 32, 32>}, {pipeline_mode = #tpu.pipeline_mode<synchronous>, transform_indices = @transform_21, window_bounds = array<i64: 32, 32>}, {pipeline_mode = #tpu.pipeline_mode<synchronous>, transform_indices = @transform_22, window_bounds = array<i64: 32, 4>}, {pipeline_mode = #tpu.pipeline_mode<synchronous>, transform_indices = @transform_23, window_bounds = array<i64: 4, 32>}, {pipeline_mode = #tpu.pipeline_mode<synchronous>, transform_indices = @transform_24, window_bounds = array<i64: 1, 32>}, {pipeline_mode = #tpu.pipeline_mode<synchronous>, transform_indices = @transform_25, window_bounds = array<i64: 1, 32>}, {pipeline_mode = #tpu.pipeline_mode<synchronous>, transform_indices = @transform_26, window_bounds = array<i64: 1, 32>}, {pipeline_mode = #tpu.pipeline_mode<synchronous>, transform_indices = @transform_27, window_bounds = array<i64: 1, 32>}, {pipeline_mode = #tpu.pipeline_mode<synchronous>, transform_indices = @transform_28, window_bounds = array<i64: 1, 32>}, {pipeline_mode = #tpu.pipeline_mode<synchronous>, transform_indices = @transform_29, window_bounds = array<i64: 1, 32>}, {transform_indices = @transform_30, window_bounds = array<i64: 8, 32>}, {transform_indices = @transform_31, window_bounds = array<i64: 8, 8, 4>}]} {
    %c0 = arith.constant 0 : index
    %c0_0 = arith.constant 0 : index
    %0 = vector.load %arg1[%c0, %c0_0] : memref<8x32xf32, #tpu.memory_space<vmem>>, vector<8x32xf32>
    %c0_1 = arith.constant 0 : index
    %c0_2 = arith.constant 0 : index
    %1 = vector.load %arg2[%c0_1, %c0_2] : memref<8x32xf32, #tpu.memory_space<vmem>>, vector<8x32xf32>
    %c0_3 = arith.constant 0 : index
    %c0_4 = arith.constant 0 : index
    %2 = vector.load %arg5[%c0_3, %c0_4] : memref<32x128xf32, #tpu.memory_space<vmem>>, vector<32x128xf32>
    %cst = arith.constant dense<0.000000e+00> : vector<8x128xf32>
    %3 = tpu.matmul %1, %2, %cst {dimension_numbers = #tpu.dot_dimension_numbers<[1], [0], [0], [1], [0, 0, 1, 1], [], []>} : vector<8x32xf32>, vector<32x128xf32>, vector<8x128xf32> -> vector<8x128xf32>
    %c0_5 = arith.constant 0 : index
    %c0_6 = arith.constant 0 : index
    %4 = vector.load %arg6[%c0_5, %c0_6] : memref<1x128xf32, #tpu.memory_space<vmem>>, vector<1x128xf32>
    %5 = vector.broadcast %4 : vector<1x128xf32> to vector<8x128xf32>
    %6 = arith.addf %3, %5 : vector<8x128xf32>
    %cst_7 = arith.constant 0.000000e+00 : f32
    %7 = vector.broadcast %cst_7 : f32 to vector<8x128xf32>
    %8 = arith.maximumf %6, %7 : vector<8x128xf32>
    %9 = vector.extract_strided_slice %8 {offsets = [0, 0], sizes = [8, 16], strides = [1, 1]} : vector<8x128xf32> to vector<8x16xf32>
    %10 = vector.extract_strided_slice %8 {offsets = [0, 64], sizes = [8, 16], strides = [1, 1]} : vector<8x128xf32> to vector<8x16xf32>
    %11 = vector.extract_strided_slice %9 {offsets = [0, 0], sizes = [8, 1], strides = [1, 1]} : vector<8x16xf32> to vector<8x1xf32>
    %12 = vector.broadcast %11 : vector<8x1xf32> to vector<8x32xf32>
    %13 = arith.mulf %12, %0 : vector<8x32xf32>
    %14 = vector.extract_strided_slice %9 {offsets = [0, 1], sizes = [8, 1], strides = [1, 1]} : vector<8x16xf32> to vector<8x1xf32>
    %15 = vector.broadcast %14 : vector<8x1xf32> to vector<8x32xf32>
    %16 = arith.mulf %15, %0 : vector<8x32xf32>
    %17 = vector.extract_strided_slice %9 {offsets = [0, 2], sizes = [8, 1], strides = [1, 1]} : vector<8x16xf32> to vector<8x1xf32>
    %18 = vector.broadcast %17 : vector<8x1xf32> to vector<8x32xf32>
    %19 = arith.mulf %18, %0 : vector<8x32xf32>
    %20 = vector.extract_strided_slice %9 {offsets = [0, 3], sizes = [8, 1], strides = [1, 1]} : vector<8x16xf32> to vector<8x1xf32>
    %21 = vector.broadcast %20 : vector<8x1xf32> to vector<8x32xf32>
    %22 = arith.mulf %21, %0 : vector<8x32xf32>
    %23 = vector.extract_strided_slice %9 {offsets = [0, 4], sizes = [8, 1], strides = [1, 1]} : vector<8x16xf32> to vector<8x1xf32>
    %24 = vector.broadcast %23 : vector<8x1xf32> to vector<8x32xf32>
    %25 = arith.mulf %24, %0 : vector<8x32xf32>
    %26 = vector.extract_strided_slice %9 {offsets = [0, 5], sizes = [8, 1], strides = [1, 1]} : vector<8x16xf32> to vector<8x1xf32>
    %27 = vector.broadcast %26 : vector<8x1xf32> to vector<8x32xf32>
    %28 = arith.mulf %27, %0 : vector<8x32xf32>
    %29 = vector.extract_strided_slice %9 {offsets = [0, 6], sizes = [8, 1], strides = [1, 1]} : vector<8x16xf32> to vector<8x1xf32>
    %30 = vector.broadcast %29 : vector<8x1xf32> to vector<8x32xf32>
    %31 = arith.mulf %30, %0 : vector<8x32xf32>
    %32 = vector.extract_strided_slice %9 {offsets = [0, 7], sizes = [8, 1], strides = [1, 1]} : vector<8x16xf32> to vector<8x1xf32>
    %33 = vector.broadcast %32 : vector<8x1xf32> to vector<8x32xf32>
    %34 = arith.mulf %33, %0 : vector<8x32xf32>
    %35 = vector.extract_strided_slice %9 {offsets = [0, 8], sizes = [8, 1], strides = [1, 1]} : vector<8x16xf32> to vector<8x1xf32>
    %36 = vector.broadcast %35 : vector<8x1xf32> to vector<8x32xf32>
    %37 = arith.mulf %36, %0 : vector<8x32xf32>
    %38 = vector.extract_strided_slice %9 {offsets = [0, 9], sizes = [8, 1], strides = [1, 1]} : vector<8x16xf32> to vector<8x1xf32>
    %39 = vector.broadcast %38 : vector<8x1xf32> to vector<8x32xf32>
    %40 = arith.mulf %39, %0 : vector<8x32xf32>
    %41 = vector.extract_strided_slice %9 {offsets = [0, 10], sizes = [8, 1], strides = [1, 1]} : vector<8x16xf32> to vector<8x1xf32>
    %42 = vector.broadcast %41 : vector<8x1xf32> to vector<8x32xf32>
    %43 = arith.mulf %42, %0 : vector<8x32xf32>
    %44 = vector.extract_strided_slice %9 {offsets = [0, 11], sizes = [8, 1], strides = [1, 1]} : vector<8x16xf32> to vector<8x1xf32>
    %45 = vector.broadcast %44 : vector<8x1xf32> to vector<8x32xf32>
    %46 = arith.mulf %45, %0 : vector<8x32xf32>
    %47 = vector.extract_strided_slice %9 {offsets = [0, 12], sizes = [8, 1], strides = [1, 1]} : vector<8x16xf32> to vector<8x1xf32>
    %48 = vector.broadcast %47 : vector<8x1xf32> to vector<8x32xf32>
    %49 = arith.mulf %48, %0 : vector<8x32xf32>
    %50 = vector.extract_strided_slice %9 {offsets = [0, 13], sizes = [8, 1], strides = [1, 1]} : vector<8x16xf32> to vector<8x1xf32>
    %51 = vector.broadcast %50 : vector<8x1xf32> to vector<8x32xf32>
    %52 = arith.mulf %51, %0 : vector<8x32xf32>
    %53 = vector.extract_strided_slice %9 {offsets = [0, 14], sizes = [8, 1], strides = [1, 1]} : vector<8x16xf32> to vector<8x1xf32>
    %54 = vector.broadcast %53 : vector<8x1xf32> to vector<8x32xf32>
    %55 = arith.mulf %54, %0 : vector<8x32xf32>
    %56 = vector.extract_strided_slice %9 {offsets = [0, 15], sizes = [8, 1], strides = [1, 1]} : vector<8x16xf32> to vector<8x1xf32>
    %57 = vector.broadcast %56 : vector<8x1xf32> to vector<8x32xf32>
    %58 = arith.mulf %57, %0 : vector<8x32xf32>
    %59 = tpu.concatenate %13, %16, %19, %22, %25, %28, %31, %34, %37, %40, %43, %46, %49, %52, %55, %58 in 1 : vector<8x32xf32>, vector<8x32xf32>, vector<8x32xf32>, vector<8x32xf32>, vector<8x32xf32>, vector<8x32xf32>, vector<8x32xf32>, vector<8x32xf32>, vector<8x32xf32>, vector<8x32xf32>, vector<8x32xf32>, vector<8x32xf32>, vector<8x32xf32>, vector<8x32xf32>, vector<8x32xf32>, vector<8x32xf32> -> vector<8x512xf32>
    %60 = tpu.concatenate %59, %0 in 1 : vector<8x512xf32>, vector<8x32xf32> -> vector<8x544xf32>
    %c0_8 = arith.constant 0 : index
    %c0_9 = arith.constant 0 : index
    %61 = vector.load %arg7[%c0_8, %c0_9] : memref<544x64xf32, #tpu.memory_space<vmem>>, vector<544x64xf32>
    %cst_10 = arith.constant dense<0.000000e+00> : vector<8x64xf32>
    %62 = tpu.matmul %60, %61, %cst_10 {dimension_numbers = #tpu.dot_dimension_numbers<[1], [0], [0], [1], [0, 0, 1, 1], [], []>} : vector<8x544xf32>, vector<544x64xf32>, vector<8x64xf32> -> vector<8x64xf32>
    %c0_11 = arith.constant 0 : index
    %c0_12 = arith.constant 0 : index
    %63 = vector.load %arg8[%c0_11, %c0_12] : memref<16x64xf32, #tpu.memory_space<vmem>>, vector<16x64xf32>
    %cst_13 = arith.constant dense<0.000000e+00> : vector<8x64xf32>
    %64 = tpu.matmul %10, %63, %cst_13 {dimension_numbers = #tpu.dot_dimension_numbers<[1], [0], [0], [1], [0, 0, 1, 1], [], []>} : vector<8x16xf32>, vector<16x64xf32>, vector<8x64xf32> -> vector<8x64xf32>
    %65 = arith.addf %62, %64 : vector<8x64xf32>
    %c0_14 = arith.constant 0 : index
    %c0_15 = arith.constant 0 : index
    %66 = vector.load %arg9[%c0_14, %c0_15] : memref<1x64xf32, #tpu.memory_space<vmem>>, vector<1x64xf32>
    %67 = vector.broadcast %66 : vector<1x64xf32> to vector<8x64xf32>
    %68 = arith.addf %65, %67 : vector<8x64xf32>
    %cst_16 = arith.constant 0.000000e+00 : f32
    %69 = vector.broadcast %cst_16 : f32 to vector<8x64xf32>
    %70 = arith.maximumf %68, %69 : vector<8x64xf32>
    %71 = vector.extract_strided_slice %8 {offsets = [0, 16], sizes = [8, 16], strides = [1, 1]} : vector<8x128xf32> to vector<8x16xf32>
    %72 = vector.extract_strided_slice %8 {offsets = [0, 80], sizes = [8, 16], strides = [1, 1]} : vector<8x128xf32> to vector<8x16xf32>
    %73 = vector.extract_strided_slice %71 {offsets = [0, 0], sizes = [8, 1], strides = [1, 1]} : vector<8x16xf32> to vector<8x1xf32>
    %74 = vector.broadcast %73 : vector<8x1xf32> to vector<8x64xf32>
    %75 = arith.mulf %74, %70 : vector<8x64xf32>
    %76 = vector.extract_strided_slice %71 {offsets = [0, 1], sizes = [8, 1], strides = [1, 1]} : vector<8x16xf32> to vector<8x1xf32>
    %77 = vector.broadcast %76 : vector<8x1xf32> to vector<8x64xf32>
    %78 = arith.mulf %77, %70 : vector<8x64xf32>
    %79 = vector.extract_strided_slice %71 {offsets = [0, 2], sizes = [8, 1], strides = [1, 1]} : vector<8x16xf32> to vector<8x1xf32>
    %80 = vector.broadcast %79 : vector<8x1xf32> to vector<8x64xf32>
    %81 = arith.mulf %80, %70 : vector<8x64xf32>
    %82 = vector.extract_strided_slice %71 {offsets = [0, 3], sizes = [8, 1], strides = [1, 1]} : vector<8x16xf32> to vector<8x1xf32>
    %83 = vector.broadcast %82 : vector<8x1xf32> to vector<8x64xf32>
    %84 = arith.mulf %83, %70 : vector<8x64xf32>
    %85 = vector.extract_strided_slice %71 {offsets = [0, 4], sizes = [8, 1], strides = [1, 1]} : vector<8x16xf32> to vector<8x1xf32>
    %86 = vector.broadcast %85 : vector<8x1xf32> to vector<8x64xf32>
    %87 = arith.mulf %86, %70 : vector<8x64xf32>
    %88 = vector.extract_strided_slice %71 {offsets = [0, 5], sizes = [8, 1], strides = [1, 1]} : vector<8x16xf32> to vector<8x1xf32>
    %89 = vector.broadcast %88 : vector<8x1xf32> to vector<8x64xf32>
    %90 = arith.mulf %89, %70 : vector<8x64xf32>
    %91 = vector.extract_strided_slice %71 {offsets = [0, 6], sizes = [8, 1], strides = [1, 1]} : vector<8x16xf32> to vector<8x1xf32>
    %92 = vector.broadcast %91 : vector<8x1xf32> to vector<8x64xf32>
    %93 = arith.mulf %92, %70 : vector<8x64xf32>
    %94 = vector.extract_strided_slice %71 {offsets = [0, 7], sizes = [8, 1], strides = [1, 1]} : vector<8x16xf32> to vector<8x1xf32>
    %95 = vector.broadcast %94 : vector<8x1xf32> to vector<8x64xf32>
    %96 = arith.mulf %95, %70 : vector<8x64xf32>
    %97 = vector.extract_strided_slice %71 {offsets = [0, 8], sizes = [8, 1], strides = [1, 1]} : vector<8x16xf32> to vector<8x1xf32>
    %98 = vector.broadcast %97 : vector<8x1xf32> to vector<8x64xf32>
    %99 = arith.mulf %98, %70 : vector<8x64xf32>
    %100 = vector.extract_strided_slice %71 {offsets = [0, 9], sizes = [8, 1], strides = [1, 1]} : vector<8x16xf32> to vector<8x1xf32>
    %101 = vector.broadcast %100 : vector<8x1xf32> to vector<8x64xf32>
    %102 = arith.mulf %101, %70 : vector<8x64xf32>
    %103 = vector.extract_strided_slice %71 {offsets = [0, 10], sizes = [8, 1], strides = [1, 1]} : vector<8x16xf32> to vector<8x1xf32>
    %104 = vector.broadcast %103 : vector<8x1xf32> to vector<8x64xf32>
    %105 = arith.mulf %104, %70 : vector<8x64xf32>
    %106 = vector.extract_strided_slice %71 {offsets = [0, 11], sizes = [8, 1], strides = [1, 1]} : vector<8x16xf32> to vector<8x1xf32>
    %107 = vector.broadcast %106 : vector<8x1xf32> to vector<8x64xf32>
    %108 = arith.mulf %107, %70 : vector<8x64xf32>
    %109 = vector.extract_strided_slice %71 {offsets = [0, 12], sizes = [8, 1], strides = [1, 1]} : vector<8x16xf32> to vector<8x1xf32>
    %110 = vector.broadcast %109 : vector<8x1xf32> to vector<8x64xf32>
    %111 = arith.mulf %110, %70 : vector<8x64xf32>
    %112 = vector.extract_strided_slice %71 {offsets = [0, 13], sizes = [8, 1], strides = [1, 1]} : vector<8x16xf32> to vector<8x1xf32>
    %113 = vector.broadcast %112 : vector<8x1xf32> to vector<8x64xf32>
    %114 = arith.mulf %113, %70 : vector<8x64xf32>
    %115 = vector.extract_strided_slice %71 {offsets = [0, 14], sizes = [8, 1], strides = [1, 1]} : vector<8x16xf32> to vector<8x1xf32>
    %116 = vector.broadcast %115 : vector<8x1xf32> to vector<8x64xf32>
    %117 = arith.mulf %116, %70 : vector<8x64xf32>
    %118 = vector.extract_strided_slice %71 {offsets = [0, 15], sizes = [8, 1], strides = [1, 1]} : vector<8x16xf32> to vector<8x1xf32>
    %119 = vector.broadcast %118 : vector<8x1xf32> to vector<8x64xf32>
    %120 = arith.mulf %119, %70 : vector<8x64xf32>
    %121 = tpu.concatenate %75, %78, %81, %84, %87, %90, %93, %96, %99, %102, %105, %108, %111, %114, %117, %120 in 1 : vector<8x64xf32>, vector<8x64xf32>, vector<8x64xf32>, vector<8x64xf32>, vector<8x64xf32>, vector<8x64xf32>, vector<8x64xf32>, vector<8x64xf32>, vector<8x64xf32>, vector<8x64xf32>, vector<8x64xf32>, vector<8x64xf32>, vector<8x64xf32>, vector<8x64xf32>, vector<8x64xf32>, vector<8x64xf32> -> vector<8x1024xf32>
    %122 = tpu.concatenate %121, %70 in 1 : vector<8x1024xf32>, vector<8x64xf32> -> vector<8x1088xf32>
    %c0_17 = arith.constant 0 : index
    %c0_18 = arith.constant 0 : index
    %123 = vector.load %arg10[%c0_17, %c0_18] : memref<1088x32xf32, #tpu.memory_space<vmem>>, vector<1088x32xf32>
    %cst_19 = arith.constant dense<0.000000e+00> : vector<8x32xf32>
    %124 = tpu.matmul %122, %123, %cst_19 {dimension_numbers = #tpu.dot_dimension_numbers<[1], [0], [0], [1], [0, 0, 1, 1], [], []>} : vector<8x1088xf32>, vector<1088x32xf32>, vector<8x32xf32> -> vector<8x32xf32>
    %c0_20 = arith.constant 0 : index
    %c0_21 = arith.constant 0 : index
    %125 = vector.load %arg11[%c0_20, %c0_21] : memref<16x32xf32, #tpu.memory_space<vmem>>, vector<16x32xf32>
    %cst_22 = arith.constant dense<0.000000e+00> : vector<8x32xf32>
    %126 = tpu.matmul %72, %125, %cst_22 {dimension_numbers = #tpu.dot_dimension_numbers<[1], [0], [0], [1], [0, 0, 1, 1], [], []>} : vector<8x16xf32>, vector<16x32xf32>, vector<8x32xf32> -> vector<8x32xf32>
    %127 = arith.addf %124, %126 : vector<8x32xf32>
    %c0_23 = arith.constant 0 : index
    %c0_24 = arith.constant 0 : index
    %128 = vector.load %arg12[%c0_23, %c0_24] : memref<1x32xf32, #tpu.memory_space<vmem>>, vector<1x32xf32>
    %129 = vector.broadcast %128 : vector<1x32xf32> to vector<8x32xf32>
    %130 = arith.addf %127, %129 : vector<8x32xf32>
    %131 = arith.addf %130, %0 : vector<8x32xf32>
    %cst_25 = arith.constant dense<0.000000e+00> : vector<8xf32>
    %132 = vector.multi_reduction <add>, %131, %cst_25 [1] : vector<8x32xf32> to vector<8xf32>
    %133 = vector.shape_cast %132 : vector<8xf32> to vector<8x1xf32>
    %cst_26 = arith.constant 3.200000e+01 : f32
    %134 = vector.broadcast %cst_26 : f32 to vector<8x1xf32>
    %135 = arith.divf %133, %134 : vector<8x1xf32>
    %136 = vector.broadcast %135 : vector<8x1xf32> to vector<8x32xf32>
    %137 = arith.subf %131, %136 : vector<8x32xf32>
    %138 = arith.mulf %137, %137 : vector<8x32xf32>
    %cst_27 = arith.constant dense<0.000000e+00> : vector<8xf32>
    %139 = vector.multi_reduction <add>, %138, %cst_27 [1] : vector<8x32xf32> to vector<8xf32>
    %140 = vector.shape_cast %139 : vector<8xf32> to vector<8x1xf32>
    %cst_28 = arith.constant 3.200000e+01 : f32
    %141 = vector.broadcast %cst_28 : f32 to vector<8x1xf32>
    %142 = arith.divf %140, %141 : vector<8x1xf32>
    %cst_29 = arith.constant 9.99999974E-6 : f32
    %143 = vector.broadcast %cst_29 : f32 to vector<8x1xf32>
    %144 = arith.addf %142, %143 : vector<8x1xf32>
    %145 = math.rsqrt %144 : vector<8x1xf32>
    %146 = vector.broadcast %145 : vector<8x1xf32> to vector<8x32xf32>
    %147 = arith.mulf %137, %146 : vector<8x32xf32>
    %c0_30 = arith.constant 0 : index
    %c0_31 = arith.constant 0 : index
    %148 = vector.load %arg25[%c0_30, %c0_31] : memref<1x32xf32, #tpu.memory_space<vmem>>, vector<1x32xf32>
    %149 = vector.broadcast %148 : vector<1x32xf32> to vector<8x32xf32>
    %150 = arith.mulf %147, %149 : vector<8x32xf32>
    %c0_32 = arith.constant 0 : index
    %c0_33 = arith.constant 0 : index
    %151 = vector.load %arg26[%c0_32, %c0_33] : memref<1x32xf32, #tpu.memory_space<vmem>>, vector<1x32xf32>
    %152 = vector.broadcast %151 : vector<1x32xf32> to vector<8x32xf32>
    %153 = arith.addf %150, %152 : vector<8x32xf32>
    %c0_34 = arith.constant 0 : index
    %c0_35 = arith.constant 0 : index
    %c0_36 = arith.constant 0 : index
    %154 = vector.load %arg3[%c0_34, %c0_35, %c0_36] : memref<8x8x32xf32, #tpu.memory_space<vmem>>, vector<8x8x32xf32>
    %155 = vector.shape_cast %154 : vector<8x8x32xf32> to vector<64x32xf32>
    %c0_37 = arith.constant 0 : index
    %c0_38 = arith.constant 0 : index
    %156 = vector.load %arg19[%c0_37, %c0_38] : memref<32x32xf32, #tpu.memory_space<vmem>>, vector<32x32xf32>
    %cst_39 = arith.constant dense<0.000000e+00> : vector<8x32xf32>
    %157 = tpu.matmul %153, %156, %cst_39 {dimension_numbers = #tpu.dot_dimension_numbers<[1], [0], [0], [1], [0, 0, 1, 1], [], []>} : vector<8x32xf32>, vector<32x32xf32>, vector<8x32xf32> -> vector<8x32xf32>
    %c0_40 = arith.constant 0 : index
    %c0_41 = arith.constant 0 : index
    %158 = vector.load %arg20[%c0_40, %c0_41] : memref<32x32xf32, #tpu.memory_space<vmem>>, vector<32x32xf32>
    %cst_42 = arith.constant dense<0.000000e+00> : vector<64x32xf32>
    %159 = tpu.matmul %155, %158, %cst_42 {dimension_numbers = #tpu.dot_dimension_numbers<[1], [0], [0], [1], [0, 0, 1, 1], [], []>} : vector<64x32xf32>, vector<32x32xf32>, vector<64x32xf32> -> vector<64x32xf32>
    %c0_43 = arith.constant 0 : index
    %c0_44 = arith.constant 0 : index
    %160 = vector.load %arg21[%c0_43, %c0_44] : memref<32x32xf32, #tpu.memory_space<vmem>>, vector<32x32xf32>
    %cst_45 = arith.constant dense<0.000000e+00> : vector<64x32xf32>
    %161 = tpu.matmul %155, %160, %cst_45 {dimension_numbers = #tpu.dot_dimension_numbers<[1], [0], [0], [1], [0, 0, 1, 1], [], []>} : vector<64x32xf32>, vector<32x32xf32>, vector<64x32xf32> -> vector<64x32xf32>
    %162 = vector.shape_cast %157 : vector<8x32xf32> to vector<8x1x32xf32>
    %163 = vector.shape_cast %159 : vector<64x32xf32> to vector<8x8x32xf32>
    %164 = vector.broadcast %162 : vector<8x1x32xf32> to vector<8x8x32xf32>
    %165 = arith.mulf %164, %163 : vector<8x8x32xf32>
    %166 = vector.shape_cast %165 : vector<8x8x32xf32> to vector<64x32xf32>
    %c0_46 = arith.constant 0 : index
    %c0_47 = arith.constant 0 : index
    %167 = vector.load %arg23[%c0_46, %c0_47] : memref<32x4xf32, #tpu.memory_space<vmem>>, vector<32x4xf32>
    %cst_48 = arith.constant dense<0.000000e+00> : vector<64x4xf32>
    %168 = tpu.matmul %166, %167, %cst_48 {dimension_numbers = #tpu.dot_dimension_numbers<[1], [0], [0], [1], [0, 0, 1, 1], [], []>} : vector<64x32xf32>, vector<32x4xf32>, vector<64x4xf32> -> vector<64x4xf32>
    %169 = vector.shape_cast %168 : vector<64x4xf32> to vector<8x8x4xf32>
    %c0_49 = arith.constant 0 : index
    %c0_50 = arith.constant 0 : index
    %170 = vector.load %arg4[%c0_49, %c0_50] : memref<8x1xf32, #tpu.memory_space<vmem>>, vector<8x1xf32>
    %171 = vector.shape_cast %170 : vector<8x1xf32> to vector<1x8x1xf32>
    %172 = vector.broadcast %171 : vector<1x8x1xf32> to vector<8x8x4xf32>
    %173 = arith.addf %169, %172 : vector<8x8x4xf32>
    %cst_51 = arith.constant dense<0xFF800000> : vector<8x4xf32>
    %174 = vector.multi_reduction <maximumf>, %173, %cst_51 [1] : vector<8x8x4xf32> to vector<8x4xf32>
    %175 = vector.shape_cast %174 : vector<8x4xf32> to vector<8x1x4xf32>
    %176 = vector.broadcast %175 : vector<8x1x4xf32> to vector<8x8x4xf32>
    %177 = arith.subf %173, %176 : vector<8x8x4xf32>
    %178 = math.exp %177 : vector<8x8x4xf32>
    %cst_52 = arith.constant dense<0.000000e+00> : vector<8x4xf32>
    %179 = vector.multi_reduction <add>, %178, %cst_52 [1] : vector<8x8x4xf32> to vector<8x4xf32>
    %180 = vector.shape_cast %179 : vector<8x4xf32> to vector<8x1x4xf32>
    %181 = vector.broadcast %180 : vector<8x1x4xf32> to vector<8x8x4xf32>
    %182 = arith.divf %178, %181 : vector<8x8x4xf32>
    %c0_53 = arith.constant 0 : index
    %c0_54 = arith.constant 0 : index
    %c0_55 = arith.constant 0 : index
    %183 = vector.load %arg32[%c0_53, %c0_54, %c0_55] : memref<8x8x4xf32, #tpu.memory_space<vmem>>, vector<8x8x4xf32>
    tpu.vector_store %arg32[%c0_53, %c0_54, %c0_55], %182 {strides = array<i32>} : memref<8x8x4xf32, #tpu.memory_space<vmem>>, vector<8x8x4xf32>,
    %184 = vector.shape_cast %182 : vector<8x8x4xf32> to vector<64x4xf32>
    %c0_56 = arith.constant 0 : index
    %c0_57 = arith.constant 0 : index
    %185 = vector.load %arg24[%c0_56, %c0_57] : memref<4x32xf32, #tpu.memory_space<vmem>>, vector<4x32xf32>
    %cst_58 = arith.constant dense<0.000000e+00> : vector<64x32xf32>
    %186 = tpu.matmul %184, %185, %cst_58 {dimension_numbers = #tpu.dot_dimension_numbers<[1], [0], [0], [1], [0, 0, 1, 1], [], []>} : vector<64x4xf32>, vector<4x32xf32>, vector<64x32xf32> -> vector<64x32xf32>
    %187 = arith.mulf %186, %161 : vector<64x32xf32>
    %188 = vector.shape_cast %187 : vector<64x32xf32> to vector<8x8x32xf32>
    %cst_59 = arith.constant dense<0.000000e+00> : vector<8x32xf32>
    %189 = vector.multi_reduction <add>, %188, %cst_59 [1] : vector<8x8x32xf32> to vector<8x32xf32>
    %c0_60 = arith.constant 0 : index
    %c0_61 = arith.constant 0 : index
    %190 = vector.load %arg22[%c0_60, %c0_61] : memref<32x32xf32, #tpu.memory_space<vmem>>, vector<32x32xf32>
    %cst_62 = arith.constant dense<0.000000e+00> : vector<8x32xf32>
    %191 = tpu.matmul %189, %190, %cst_62 {dimension_numbers = #tpu.dot_dimension_numbers<[1], [0], [0], [1], [0, 0, 1, 1], [], []>} : vector<8x32xf32>, vector<32x32xf32>, vector<8x32xf32> -> vector<8x32xf32>
    %192 = arith.addf %191, %153 : vector<8x32xf32>
    %cst_63 = arith.constant dense<0.000000e+00> : vector<8xf32>
    %193 = vector.multi_reduction <add>, %192, %cst_63 [1] : vector<8x32xf32> to vector<8xf32>
    %194 = vector.shape_cast %193 : vector<8xf32> to vector<8x1xf32>
    %cst_64 = arith.constant 3.200000e+01 : f32
    %195 = vector.broadcast %cst_64 : f32 to vector<8x1xf32>
    %196 = arith.divf %194, %195 : vector<8x1xf32>
    %197 = vector.broadcast %196 : vector<8x1xf32> to vector<8x32xf32>
    %198 = arith.subf %192, %197 : vector<8x32xf32>
    %199 = arith.mulf %198, %198 : vector<8x32xf32>
    %cst_65 = arith.constant dense<0.000000e+00> : vector<8xf32>
    %200 = vector.multi_reduction <add>, %199, %cst_65 [1] : vector<8x32xf32> to vector<8xf32>
    %201 = vector.shape_cast %200 : vector<8xf32> to vector<8x1xf32>
    %cst_66 = arith.constant 3.200000e+01 : f32
    %202 = vector.broadcast %cst_66 : f32 to vector<8x1xf32>
    %203 = arith.divf %201, %202 : vector<8x1xf32>
    %cst_67 = arith.constant 9.99999974E-6 : f32
    %204 = vector.broadcast %cst_67 : f32 to vector<8x1xf32>
    %205 = arith.addf %203, %204 : vector<8x1xf32>
    %206 = math.rsqrt %205 : vector<8x1xf32>
    %207 = vector.broadcast %206 : vector<8x1xf32> to vector<8x32xf32>
    %208 = arith.mulf %198, %207 : vector<8x32xf32>
    %c0_68 = arith.constant 0 : index
    %c0_69 = arith.constant 0 : index
    %209 = vector.load %arg27[%c0_68, %c0_69] : memref<1x32xf32, #tpu.memory_space<vmem>>, vector<1x32xf32>
    %210 = vector.broadcast %209 : vector<1x32xf32> to vector<8x32xf32>
    %211 = arith.mulf %208, %210 : vector<8x32xf32>
    %c0_70 = arith.constant 0 : index
    %c0_71 = arith.constant 0 : index
    %212 = vector.load %arg28[%c0_70, %c0_71] : memref<1x32xf32, #tpu.memory_space<vmem>>, vector<1x32xf32>
    %213 = vector.broadcast %212 : vector<1x32xf32> to vector<8x32xf32>
    %214 = arith.addf %211, %213 : vector<8x32xf32>
    %215 = vector.extract_strided_slice %8 {offsets = [0, 32], sizes = [8, 16], strides = [1, 1]} : vector<8x128xf32> to vector<8x16xf32>
    %216 = vector.extract_strided_slice %8 {offsets = [0, 96], sizes = [8, 16], strides = [1, 1]} : vector<8x128xf32> to vector<8x16xf32>
    %217 = vector.extract_strided_slice %215 {offsets = [0, 0], sizes = [8, 1], strides = [1, 1]} : vector<8x16xf32> to vector<8x1xf32>
    %218 = vector.broadcast %217 : vector<8x1xf32> to vector<8x32xf32>
    %219 = arith.mulf %218, %214 : vector<8x32xf32>
    %220 = vector.extract_strided_slice %215 {offsets = [0, 1], sizes = [8, 1], strides = [1, 1]} : vector<8x16xf32> to vector<8x1xf32>
    %221 = vector.broadcast %220 : vector<8x1xf32> to vector<8x32xf32>
    %222 = arith.mulf %221, %214 : vector<8x32xf32>
    %223 = vector.extract_strided_slice %215 {offsets = [0, 2], sizes = [8, 1], strides = [1, 1]} : vector<8x16xf32> to vector<8x1xf32>
    %224 = vector.broadcast %223 : vector<8x1xf32> to vector<8x32xf32>
    %225 = arith.mulf %224, %214 : vector<8x32xf32>
    %226 = vector.extract_strided_slice %215 {offsets = [0, 3], sizes = [8, 1], strides = [1, 1]} : vector<8x16xf32> to vector<8x1xf32>
    %227 = vector.broadcast %226 : vector<8x1xf32> to vector<8x32xf32>
    %228 = arith.mulf %227, %214 : vector<8x32xf32>
    %229 = vector.extract_strided_slice %215 {offsets = [0, 4], sizes = [8, 1], strides = [1, 1]} : vector<8x16xf32> to vector<8x1xf32>
    %230 = vector.broadcast %229 : vector<8x1xf32> to vector<8x32xf32>
    %231 = arith.mulf %230, %214 : vector<8x32xf32>
    %232 = vector.extract_strided_slice %215 {offsets = [0, 5], sizes = [8, 1], strides = [1, 1]} : vector<8x16xf32> to vector<8x1xf32>
    %233 = vector.broadcast %232 : vector<8x1xf32> to vector<8x32xf32>
    %234 = arith.mulf %233, %214 : vector<8x32xf32>
    %235 = vector.extract_strided_slice %215 {offsets = [0, 6], sizes = [8, 1], strides = [1, 1]} : vector<8x16xf32> to vector<8x1xf32>
    %236 = vector.broadcast %235 : vector<8x1xf32> to vector<8x32xf32>
    %237 = arith.mulf %236, %214 : vector<8x32xf32>
    %238 = vector.extract_strided_slice %215 {offsets = [0, 7], sizes = [8, 1], strides = [1, 1]} : vector<8x16xf32> to vector<8x1xf32>
    %239 = vector.broadcast %238 : vector<8x1xf32> to vector<8x32xf32>
    %240 = arith.mulf %239, %214 : vector<8x32xf32>
    %241 = vector.extract_strided_slice %215 {offsets = [0, 8], sizes = [8, 1], strides = [1, 1]} : vector<8x16xf32> to vector<8x1xf32>
    %242 = vector.broadcast %241 : vector<8x1xf32> to vector<8x32xf32>
    %243 = arith.mulf %242, %214 : vector<8x32xf32>
    %244 = vector.extract_strided_slice %215 {offsets = [0, 9], sizes = [8, 1], strides = [1, 1]} : vector<8x16xf32> to vector<8x1xf32>
    %245 = vector.broadcast %244 : vector<8x1xf32> to vector<8x32xf32>
    %246 = arith.mulf %245, %214 : vector<8x32xf32>
    %247 = vector.extract_strided_slice %215 {offsets = [0, 10], sizes = [8, 1], strides = [1, 1]} : vector<8x16xf32> to vector<8x1xf32>
    %248 = vector.broadcast %247 : vector<8x1xf32> to vector<8x32xf32>
    %249 = arith.mulf %248, %214 : vector<8x32xf32>
    %250 = vector.extract_strided_slice %215 {offsets = [0, 11], sizes = [8, 1], strides = [1, 1]} : vector<8x16xf32> to vector<8x1xf32>
    %251 = vector.broadcast %250 : vector<8x1xf32> to vector<8x32xf32>
    %252 = arith.mulf %251, %214 : vector<8x32xf32>
    %253 = vector.extract_strided_slice %215 {offsets = [0, 12], sizes = [8, 1], strides = [1, 1]} : vector<8x16xf32> to vector<8x1xf32>
    %254 = vector.broadcast %253 : vector<8x1xf32> to vector<8x32xf32>
    %255 = arith.mulf %254, %214 : vector<8x32xf32>
    %256 = vector.extract_strided_slice %215 {offsets = [0, 13], sizes = [8, 1], strides = [1, 1]} : vector<8x16xf32> to vector<8x1xf32>
    %257 = vector.broadcast %256 : vector<8x1xf32> to vector<8x32xf32>
    %258 = arith.mulf %257, %214 : vector<8x32xf32>
    %259 = vector.extract_strided_slice %215 {offsets = [0, 14], sizes = [8, 1], strides = [1, 1]} : vector<8x16xf32> to vector<8x1xf32>
    %260 = vector.broadcast %259 : vector<8x1xf32> to vector<8x32xf32>
    %261 = arith.mulf %260, %214 : vector<8x32xf32>
    %262 = vector.extract_strided_slice %215 {offsets = [0, 15], sizes = [8, 1], strides = [1, 1]} : vector<8x16xf32> to vector<8x1xf32>
    %263 = vector.broadcast %262 : vector<8x1xf32> to vector<8x32xf32>
    %264 = arith.mulf %263, %214 : vector<8x32xf32>
    %265 = tpu.concatenate %219, %222, %225, %228, %231, %234, %237, %240, %243, %246, %249, %252, %255, %258, %261, %264 in 1 : vector<8x32xf32>, vector<8x32xf32>, vector<8x32xf32>, vector<8x32xf32>, vector<8x32xf32>, vector<8x32xf32>, vector<8x32xf32>, vector<8x32xf32>, vector<8x32xf32>, vector<8x32xf32>, vector<8x32xf32>, vector<8x32xf32>, vector<8x32xf32>, vector<8x32xf32>, vector<8x32xf32>, vector<8x32xf32> -> vector<8x512xf32>
    %266 = tpu.concatenate %265, %214 in 1 : vector<8x512xf32>, vector<8x32xf32> -> vector<8x544xf32>
    %c0_72 = arith.constant 0 : index
    %c0_73 = arith.constant 0 : index
    %267 = vector.load %arg13[%c0_72, %c0_73] : memref<544x64xf32, #tpu.memory_space<vmem>>, vector<544x64xf32>
    %cst_74 = arith.constant dense<0.000000e+00> : vector<8x64xf32>
    %268 = tpu.matmul %266, %267, %cst_74 {dimension_numbers = #tpu.dot_dimension_numbers<[1], [0], [0], [1], [0, 0, 1, 1], [], []>} : vector<8x544xf32>, vector<544x64xf32>, vector<8x64xf32> -> vector<8x64xf32>
    %c0_75 = arith.constant 0 : index
    %c0_76 = arith.constant 0 : index
    %269 = vector.load %arg14[%c0_75, %c0_76] : memref<16x64xf32, #tpu.memory_space<vmem>>, vector<16x64xf32>
    %cst_77 = arith.constant dense<0.000000e+00> : vector<8x64xf32>
    %270 = tpu.matmul %216, %269, %cst_77 {dimension_numbers = #tpu.dot_dimension_numbers<[1], [0], [0], [1], [0, 0, 1, 1], [], []>} : vector<8x16xf32>, vector<16x64xf32>, vector<8x64xf32> -> vector<8x64xf32>
    %271 = arith.addf %268, %270 : vector<8x64xf32>
    %c0_78 = arith.constant 0 : index
    %c0_79 = arith.constant 0 : index
    %272 = vector.load %arg15[%c0_78, %c0_79] : memref<1x64xf32, #tpu.memory_space<vmem>>, vector<1x64xf32>
    %273 = vector.broadcast %272 : vector<1x64xf32> to vector<8x64xf32>
    %274 = arith.addf %271, %273 : vector<8x64xf32>
    %cst_80 = arith.constant 0.000000e+00 : f32
    %275 = vector.broadcast %cst_80 : f32 to vector<8x64xf32>
    %276 = arith.maximumf %274, %275 : vector<8x64xf32>
    %277 = vector.extract_strided_slice %8 {offsets = [0, 48], sizes = [8, 16], strides = [1, 1]} : vector<8x128xf32> to vector<8x16xf32>
    %278 = vector.extract_strided_slice %8 {offsets = [0, 112], sizes = [8, 16], strides = [1, 1]} : vector<8x128xf32> to vector<8x16xf32>
    %279 = vector.extract_strided_slice %277 {offsets = [0, 0], sizes = [8, 1], strides = [1, 1]} : vector<8x16xf32> to vector<8x1xf32>
    %280 = vector.broadcast %279 : vector<8x1xf32> to vector<8x64xf32>
    %281 = arith.mulf %280, %276 : vector<8x64xf32>
    %282 = vector.extract_strided_slice %277 {offsets = [0, 1], sizes = [8, 1], strides = [1, 1]} : vector<8x16xf32> to vector<8x1xf32>
    %283 = vector.broadcast %282 : vector<8x1xf32> to vector<8x64xf32>
    %284 = arith.mulf %283, %276 : vector<8x64xf32>
    %285 = vector.extract_strided_slice %277 {offsets = [0, 2], sizes = [8, 1], strides = [1, 1]} : vector<8x16xf32> to vector<8x1xf32>
    %286 = vector.broadcast %285 : vector<8x1xf32> to vector<8x64xf32>
    %287 = arith.mulf %286, %276 : vector<8x64xf32>
    %288 = vector.extract_strided_slice %277 {offsets = [0, 3], sizes = [8, 1], strides = [1, 1]} : vector<8x16xf32> to vector<8x1xf32>
    %289 = vector.broadcast %288 : vector<8x1xf32> to vector<8x64xf32>
    %290 = arith.mulf %289, %276 : vector<8x64xf32>
    %291 = vector.extract_strided_slice %277 {offsets = [0, 4], sizes = [8, 1], strides = [1, 1]} : vector<8x16xf32> to vector<8x1xf32>
    %292 = vector.broadcast %291 : vector<8x1xf32> to vector<8x64xf32>
    %293 = arith.mulf %292, %276 : vector<8x64xf32>
    %294 = vector.extract_strided_slice %277 {offsets = [0, 5], sizes = [8, 1], strides = [1, 1]} : vector<8x16xf32> to vector<8x1xf32>
    %295 = vector.broadcast %294 : vector<8x1xf32> to vector<8x64xf32>
    %296 = arith.mulf %295, %276 : vector<8x64xf32>
    %297 = vector.extract_strided_slice %277 {offsets = [0, 6], sizes = [8, 1], strides = [1, 1]} : vector<8x16xf32> to vector<8x1xf32>
    %298 = vector.broadcast %297 : vector<8x1xf32> to vector<8x64xf32>
    %299 = arith.mulf %298, %276 : vector<8x64xf32>
    %300 = vector.extract_strided_slice %277 {offsets = [0, 7], sizes = [8, 1], strides = [1, 1]} : vector<8x16xf32> to vector<8x1xf32>
    %301 = vector.broadcast %300 : vector<8x1xf32> to vector<8x64xf32>
    %302 = arith.mulf %301, %276 : vector<8x64xf32>
    %303 = vector.extract_strided_slice %277 {offsets = [0, 8], sizes = [8, 1], strides = [1, 1]} : vector<8x16xf32> to vector<8x1xf32>
    %304 = vector.broadcast %303 : vector<8x1xf32> to vector<8x64xf32>
    %305 = arith.mulf %304, %276 : vector<8x64xf32>
    %306 = vector.extract_strided_slice %277 {offsets = [0, 9], sizes = [8, 1], strides = [1, 1]} : vector<8x16xf32> to vector<8x1xf32>
    %307 = vector.broadcast %306 : vector<8x1xf32> to vector<8x64xf32>
    %308 = arith.mulf %307, %276 : vector<8x64xf32>
    %309 = vector.extract_strided_slice %277 {offsets = [0, 10], sizes = [8, 1], strides = [1, 1]} : vector<8x16xf32> to vector<8x1xf32>
    %310 = vector.broadcast %309 : vector<8x1xf32> to vector<8x64xf32>
    %311 = arith.mulf %310, %276 : vector<8x64xf32>
    %312 = vector.extract_strided_slice %277 {offsets = [0, 11], sizes = [8, 1], strides = [1, 1]} : vector<8x16xf32> to vector<8x1xf32>
    %313 = vector.broadcast %312 : vector<8x1xf32> to vector<8x64xf32>
    %314 = arith.mulf %313, %276 : vector<8x64xf32>
    %315 = vector.extract_strided_slice %277 {offsets = [0, 12], sizes = [8, 1], strides = [1, 1]} : vector<8x16xf32> to vector<8x1xf32>
    %316 = vector.broadcast %315 : vector<8x1xf32> to vector<8x64xf32>
    %317 = arith.mulf %316, %276 : vector<8x64xf32>
    %318 = vector.extract_strided_slice %277 {offsets = [0, 13], sizes = [8, 1], strides = [1, 1]} : vector<8x16xf32> to vector<8x1xf32>
    %319 = vector.broadcast %318 : vector<8x1xf32> to vector<8x64xf32>
    %320 = arith.mulf %319, %276 : vector<8x64xf32>
    %321 = vector.extract_strided_slice %277 {offsets = [0, 14], sizes = [8, 1], strides = [1, 1]} : vector<8x16xf32> to vector<8x1xf32>
    %322 = vector.broadcast %321 : vector<8x1xf32> to vector<8x64xf32>
    %323 = arith.mulf %322, %276 : vector<8x64xf32>
    %324 = vector.extract_strided_slice %277 {offsets = [0, 15], sizes = [8, 1], strides = [1, 1]} : vector<8x16xf32> to vector<8x1xf32>
    %325 = vector.broadcast %324 : vector<8x1xf32> to vector<8x64xf32>
    %326 = arith.mulf %325, %276 : vector<8x64xf32>
    %327 = tpu.concatenate %281, %284, %287, %290, %293, %296, %299, %302, %305, %308, %311, %314, %317, %320, %323, %326 in 1 : vector<8x64xf32>, vector<8x64xf32>, vector<8x64xf32>, vector<8x64xf32>, vector<8x64xf32>, vector<8x64xf32>, vector<8x64xf32>, vector<8x64xf32>, vector<8x64xf32>, vector<8x64xf32>, vector<8x64xf32>, vector<8x64xf32>, vector<8x64xf32>, vector<8x64xf32>, vector<8x64xf32>, vector<8x64xf32> -> vector<8x1024xf32>
    %328 = tpu.concatenate %327, %276 in 1 : vector<8x1024xf32>, vector<8x64xf32> -> vector<8x1088xf32>
    %c0_81 = arith.constant 0 : index
    %c0_82 = arith.constant 0 : index
    %329 = vector.load %arg16[%c0_81, %c0_82] : memref<1088x32xf32, #tpu.memory_space<vmem>>, vector<1088x32xf32>
    %cst_83 = arith.constant dense<0.000000e+00> : vector<8x32xf32>
    %330 = tpu.matmul %328, %329, %cst_83 {dimension_numbers = #tpu.dot_dimension_numbers<[1], [0], [0], [1], [0, 0, 1, 1], [], []>} : vector<8x1088xf32>, vector<1088x32xf32>, vector<8x32xf32> -> vector<8x32xf32>
    %c0_84 = arith.constant 0 : index
    %c0_85 = arith.constant 0 : index
    %331 = vector.load %arg17[%c0_84, %c0_85] : memref<16x32xf32, #tpu.memory_space<vmem>>, vector<16x32xf32>
    %cst_86 = arith.constant dense<0.000000e+00> : vector<8x32xf32>
    %332 = tpu.matmul %278, %331, %cst_86 {dimension_numbers = #tpu.dot_dimension_numbers<[1], [0], [0], [1], [0, 0, 1, 1], [], []>} : vector<8x16xf32>, vector<16x32xf32>, vector<8x32xf32> -> vector<8x32xf32>
    %333 = arith.addf %330, %332 : vector<8x32xf32>
    %c0_87 = arith.constant 0 : index
    %c0_88 = arith.constant 0 : index
    %334 = vector.load %arg18[%c0_87, %c0_88] : memref<1x32xf32, #tpu.memory_space<vmem>>, vector<1x32xf32>
    %335 = vector.broadcast %334 : vector<1x32xf32> to vector<8x32xf32>
    %336 = arith.addf %333, %335 : vector<8x32xf32>
    %337 = arith.addf %336, %214 : vector<8x32xf32>
    %cst_89 = arith.constant dense<0.000000e+00> : vector<8xf32>
    %338 = vector.multi_reduction <add>, %337, %cst_89 [1] : vector<8x32xf32> to vector<8xf32>
    %339 = vector.shape_cast %338 : vector<8xf32> to vector<8x1xf32>
    %cst_90 = arith.constant 3.200000e+01 : f32
    %340 = vector.broadcast %cst_90 : f32 to vector<8x1xf32>
    %341 = arith.divf %339, %340 : vector<8x1xf32>
    %342 = vector.broadcast %341 : vector<8x1xf32> to vector<8x32xf32>
    %343 = arith.subf %337, %342 : vector<8x32xf32>
    %344 = arith.mulf %343, %343 : vector<8x32xf32>
    %cst_91 = arith.constant dense<0.000000e+00> : vector<8xf32>
    %345 = vector.multi_reduction <add>, %344, %cst_91 [1] : vector<8x32xf32> to vector<8xf32>
    %346 = vector.shape_cast %345 : vector<8xf32> to vector<8x1xf32>
    %cst_92 = arith.constant 3.200000e+01 : f32
    %347 = vector.broadcast %cst_92 : f32 to vector<8x1xf32>
    %348 = arith.divf %346, %347 : vector<8x1xf32>
    %cst_93 = arith.constant 9.99999974E-6 : f32
    %349 = vector.broadcast %cst_93 : f32 to vector<8x1xf32>
    %350 = arith.addf %348, %349 : vector<8x1xf32>
    %351 = math.rsqrt %350 : vector<8x1xf32>
    %352 = vector.broadcast %351 : vector<8x1xf32> to vector<8x32xf32>
    %353 = arith.mulf %343, %352 : vector<8x32xf32>
    %c0_94 = arith.constant 0 : index
    %c0_95 = arith.constant 0 : index
    %354 = vector.load %arg29[%c0_94, %c0_95] : memref<1x32xf32, #tpu.memory_space<vmem>>, vector<1x32xf32>
    %355 = vector.broadcast %354 : vector<1x32xf32> to vector<8x32xf32>
    %356 = arith.mulf %353, %355 : vector<8x32xf32>
    %c0_96 = arith.constant 0 : index
    %c0_97 = arith.constant 0 : index
    %357 = vector.load %arg30[%c0_96, %c0_97] : memref<1x32xf32, #tpu.memory_space<vmem>>, vector<1x32xf32>
    %358 = vector.broadcast %357 : vector<1x32xf32> to vector<8x32xf32>
    %359 = arith.addf %356, %358 : vector<8x32xf32>
    %c0_98 = arith.constant 0 : index
    %c0_99 = arith.constant 0 : index
    %360 = vector.load %arg31[%c0_98, %c0_99] : memref<8x32xf32, #tpu.memory_space<vmem>>, vector<8x32xf32>
    tpu.vector_store %arg31[%c0_98, %c0_99], %359 {strides = array<i32>} : memref<8x32xf32, #tpu.memory_space<vmem>>, vector<8x32xf32>,
    return
  }
  func.func @transform_0(%arg0: i32) -> (i32, i32) {
    %c0_i32 = arith.constant 0 : i32
    %c0_i32_0 = arith.constant 0 : i32
    return %arg0, %c0_i32 : i32, i32
  }
  func.func @transform_1(%arg0: i32) -> (i32, i32) {
    %c0_i32 = arith.constant 0 : i32
    %c0_i32_0 = arith.constant 0 : i32
    return %arg0, %c0_i32 : i32, i32
  }
  func.func @transform_2(%arg0: i32) -> (i32, i32, i32) {
    %c0_i32 = arith.constant 0 : i32
    %c0_i32_0 = arith.constant 0 : i32
    %c0_i32_1 = arith.constant 0 : i32
    return %arg0, %c0_i32, %c0_i32_0 : i32, i32, i32
  }
  func.func @transform_3(%arg0: i32) -> (i32, i32) {
    %c0_i32 = arith.constant 0 : i32
    %c0_i32_0 = arith.constant 0 : i32
    %c0_i32_1 = arith.constant 0 : i32
    return %c0_i32, %c0_i32_0 : i32, i32
  }
  func.func @transform_4(%arg0: i32) -> (i32, i32) {
    %c0_i32 = arith.constant 0 : i32
    %c0_i32_0 = arith.constant 0 : i32
    %c0_i32_1 = arith.constant 0 : i32
    return %c0_i32, %c0_i32_0 : i32, i32
  }
  func.func @transform_5(%arg0: i32) -> (i32, i32) {
    %c0_i32 = arith.constant 0 : i32
    %c0_i32_0 = arith.constant 0 : i32
    %c0_i32_1 = arith.constant 0 : i32
    return %c0_i32, %c0_i32_0 : i32, i32
  }
  func.func @transform_6(%arg0: i32) -> (i32, i32) {
    %c0_i32 = arith.constant 0 : i32
    %c0_i32_0 = arith.constant 0 : i32
    %c0_i32_1 = arith.constant 0 : i32
    return %c0_i32, %c0_i32_0 : i32, i32
  }
  func.func @transform_7(%arg0: i32) -> (i32, i32) {
    %c0_i32 = arith.constant 0 : i32
    %c0_i32_0 = arith.constant 0 : i32
    %c0_i32_1 = arith.constant 0 : i32
    return %c0_i32, %c0_i32_0 : i32, i32
  }
  func.func @transform_8(%arg0: i32) -> (i32, i32) {
    %c0_i32 = arith.constant 0 : i32
    %c0_i32_0 = arith.constant 0 : i32
    %c0_i32_1 = arith.constant 0 : i32
    return %c0_i32, %c0_i32_0 : i32, i32
  }
  func.func @transform_9(%arg0: i32) -> (i32, i32) {
    %c0_i32 = arith.constant 0 : i32
    %c0_i32_0 = arith.constant 0 : i32
    %c0_i32_1 = arith.constant 0 : i32
    return %c0_i32, %c0_i32_0 : i32, i32
  }
  func.func @transform_10(%arg0: i32) -> (i32, i32) {
    %c0_i32 = arith.constant 0 : i32
    %c0_i32_0 = arith.constant 0 : i32
    %c0_i32_1 = arith.constant 0 : i32
    return %c0_i32, %c0_i32_0 : i32, i32
  }
  func.func @transform_11(%arg0: i32) -> (i32, i32) {
    %c0_i32 = arith.constant 0 : i32
    %c0_i32_0 = arith.constant 0 : i32
    %c0_i32_1 = arith.constant 0 : i32
    return %c0_i32, %c0_i32_0 : i32, i32
  }
  func.func @transform_12(%arg0: i32) -> (i32, i32) {
    %c0_i32 = arith.constant 0 : i32
    %c0_i32_0 = arith.constant 0 : i32
    %c0_i32_1 = arith.constant 0 : i32
    return %c0_i32, %c0_i32_0 : i32, i32
  }
  func.func @transform_13(%arg0: i32) -> (i32, i32) {
    %c0_i32 = arith.constant 0 : i32
    %c0_i32_0 = arith.constant 0 : i32
    %c0_i32_1 = arith.constant 0 : i32
    return %c0_i32, %c0_i32_0 : i32, i32
  }
  func.func @transform_14(%arg0: i32) -> (i32, i32) {
    %c0_i32 = arith.constant 0 : i32
    %c0_i32_0 = arith.constant 0 : i32
    %c0_i32_1 = arith.constant 0 : i32
    return %c0_i32, %c0_i32_0 : i32, i32
  }
  func.func @transform_15(%arg0: i32) -> (i32, i32) {
    %c0_i32 = arith.constant 0 : i32
    %c0_i32_0 = arith.constant 0 : i32
    %c0_i32_1 = arith.constant 0 : i32
    return %c0_i32, %c0_i32_0 : i32, i32
  }
  func.func @transform_16(%arg0: i32) -> (i32, i32) {
    %c0_i32 = arith.constant 0 : i32
    %c0_i32_0 = arith.constant 0 : i32
    %c0_i32_1 = arith.constant 0 : i32
    return %c0_i32, %c0_i32_0 : i32, i32
  }
  func.func @transform_17(%arg0: i32) -> (i32, i32) {
    %c0_i32 = arith.constant 0 : i32
    %c0_i32_0 = arith.constant 0 : i32
    %c0_i32_1 = arith.constant 0 : i32
    return %c0_i32, %c0_i32_0 : i32, i32
  }
  func.func @transform_18(%arg0: i32) -> (i32, i32) {
    %c0_i32 = arith.constant 0 : i32
    %c0_i32_0 = arith.constant 0 : i32
    %c0_i32_1 = arith.constant 0 : i32
    return %c0_i32, %c0_i32_0 : i32, i32
  }
  func.func @transform_19(%arg0: i32) -> (i32, i32) {
    %c0_i32 = arith.constant 0 : i32
    %c0_i32_0 = arith.constant 0 : i32
    %c0_i32_1 = arith.constant 0 : i32
    return %c0_i32, %c0_i32_0 : i32, i32
  }
  func.func @transform_20(%arg0: i32) -> (i32, i32) {
    %c0_i32 = arith.constant 0 : i32
    %c0_i32_0 = arith.constant 0 : i32
    %c0_i32_1 = arith.constant 0 : i32
    return %c0_i32, %c0_i32_0 : i32, i32
  }
  func.func @transform_21(%arg0: i32) -> (i32, i32) {
    %c0_i32 = arith.constant 0 : i32
    %c0_i32_0 = arith.constant 0 : i32
    %c0_i32_1 = arith.constant 0 : i32
    return %c0_i32, %c0_i32_0 : i32, i32
  }
  func.func @transform_22(%arg0: i32) -> (i32, i32) {
    %c0_i32 = arith.constant 0 : i32
    %c0_i32_0 = arith.constant 0 : i32
    %c0_i32_1 = arith.constant 0 : i32
    return %c0_i32, %c0_i32_0 : i32, i32
  }
  func.func @transform_23(%arg0: i32) -> (i32, i32) {
    %c0_i32 = arith.constant 0 : i32
    %c0_i32_0 = arith.constant 0 : i32
    %c0_i32_1 = arith.constant 0 : i32
    return %c0_i32, %c0_i32_0 : i32, i32
  }
  func.func @transform_24(%arg0: i32) -> (i32, i32) {
    %c0_i32 = arith.constant 0 : i32
    %c0_i32_0 = arith.constant 0 : i32
    %c0_i32_1 = arith.constant 0 : i32
    return %c0_i32, %c0_i32_0 : i32, i32
  }
  func.func @transform_25(%arg0: i32) -> (i32, i32) {
    %c0_i32 = arith.constant 0 : i32
    %c0_i32_0 = arith.constant 0 : i32
    %c0_i32_1 = arith.constant 0 : i32
    return %c0_i32, %c0_i32_0 : i32, i32
  }
  func.func @transform_26(%arg0: i32) -> (i32, i32) {
    %c0_i32 = arith.constant 0 : i32
    %c0_i32_0 = arith.constant 0 : i32
    %c0_i32_1 = arith.constant 0 : i32
    return %c0_i32, %c0_i32_0 : i32, i32
  }
  func.func @transform_27(%arg0: i32) -> (i32, i32) {
    %c0_i32 = arith.constant 0 : i32
    %c0_i32_0 = arith.constant 0 : i32
    %c0_i32_1 = arith.constant 0 : i32
    return %c0_i32, %c0_i32_0 : i32, i32
  }
  func.func @transform_28(%arg0: i32) -> (i32, i32) {
    %c0_i32 = arith.constant 0 : i32
    %c0_i32_0 = arith.constant 0 : i32
    %c0_i32_1 = arith.constant 0 : i32
    return %c0_i32, %c0_i32_0 : i32, i32
  }
  func.func @transform_29(%arg0: i32) -> (i32, i32) {
    %c0_i32 = arith.constant 0 : i32
    %c0_i32_0 = arith.constant 0 : i32
    %c0_i32_1 = arith.constant 0 : i32
    return %c0_i32, %c0_i32_0 : i32, i32
  }
  func.func @transform_30(%arg0: i32) -> (i32, i32) {
    %c0_i32 = arith.constant 0 : i32
    %c0_i32_0 = arith.constant 0 : i32
    return %arg0, %c0_i32 : i32, i32
  }
  func.func @transform_31(%arg0: i32) -> (i32, i32, i32) {
    %c0_i32 = arith.constant 0 : i32
    %c0_i32_0 = arith.constant 0 : i32
    %c0_i32_1 = arith.constant 0 : i32
    return %arg0, %c0_i32, %c0_i32_0 : i32, i32, i32
  }
}

</mosaic_0001>

<bundles_post_ra>
// kernel: transformer_decoder_block.1
= control target key start
LH: loop header
LB: loop body
LE: loop exit
PB: predicated region body
PF: predicated region fallthrough
CT: control target
= control target key end

     0   :  { %s7707_s6 = smov 1   ;;  %s7708_s10 = smov 2   ;;  %s9013_s0 = inlined_call_operand.smem [shape: u32[32], index: -1, kind: input, shape index: {}] }
   0x1   :  { %s7841_s5 = sld [smem:[%s9013_s0]]   ;;  %s7709_s14 = smov 3  }
   0x2   :  { %s7846_s9 = sld [smem:[%s9013_s0 + %s7707_s6]]   ;;  %s7710_s18 = smov 4  }
   0x3   :  { %s7851_s13 = sld [smem:[%s9013_s0 + %s7708_s10]]   ;;  %s7711_s22 = smov 5  }
   0x4   :  { %s7856_s17 = sld [smem:[%s9013_s0 + %s7709_s14]]   ;;  %s7712_s26 = smov 6  }
   0x5   :  { %s7861_s21 = sld [smem:[%s9013_s0 + %s7710_s18]]   ;;  %s7713_s30 = smov 7  }
   0x6   :  { %s7866_s25 = sld [smem:[%s9013_s0 + %s7711_s22]]   ;;  %s7714_s4 = smov 8  }
   0x7   :  { %9057 = sst [smem:[#allocation44_spill]] %s7841_s5  ;;  %s7715_s10 = smov 9  }
   0x8   :  { %9058 = sst [smem:[#allocation45_spill]] %s7846_s9  ;;  %s7716_s15 = smov 10  }
   0x9   :  { %9059 = sst [smem:[#allocation46_spill]] %s7851_s13  ;;  %s7717_s20 = smov 11  }
   0xa   :  { %9060 = sst [smem:[#allocation47_spill]] %s7856_s17  ;;  %s7719_s1 = smov 13  }
   0xb   :  { %9061 = sst [smem:[#allocation48_spill]] %s7861_s21  ;;  %s7720_s7 = smov 14  }
   0xc   :  { %s7871_s29 = sld [smem:[%s9013_s0 + %s7712_s26]]   ;;  %s7718_s26 = smov 12  }
   0xd   :  { %s7876_s3 = sld [smem:[%s9013_s0 + %s7713_s30]]   ;;  %s7722_s22 = smov 16  }
   0xe   :  { %s7881_s8 = sld [smem:[%s9013_s0 + %s7714_s4]]   ;;  %s7723_s28 = smov 17  }
   0xf   :  { %s7886_s14 = sld [smem:[%s9013_s0 + %s7715_s10]]  }
  0x10   :  { %s7891_s19 = sld [smem:[%s9013_s0 + %s7716_s15]]   ;;  %s7721_s15 = smov 15  }
  0x11   :  { %s7896_s24 = sld [smem:[%s9013_s0 + %s7717_s20]]  }
  0x12   :  { %9062 = sst [smem:[#allocation49_spill]] %s7871_s29 }
  0x13   :  { %9063 = sst [smem:[#allocation50_spill]] %s7876_s3 }
  0x14   :  { %9064 = sst [smem:[#allocation51_spill]] %s7881_s8 }
  0x15   :  { %9065 = sst [smem:[#allocation52_spill]] %s7886_s14 }
  0x16   :  { %9066 = sst [smem:[#allocation53_spill]] %s7891_s19 }
  0x17   :  { %s7901_s30 = sld [smem:[%s9013_s0 + %s7718_s26]]  }
  0x18   :  { %s7906_s6 = sld [smem:[%s9013_s0 + %s7719_s1]]  }
  0x19   :  { %s7911_s12 = sld [smem:[%s9013_s0 + %s7720_s7]]   ;;  %s7724_s7 = smov 18  }
  0x1a   :  { %s7916_s20 = sld [smem:[%s9013_s0 + %s7721_s15]]   ;;  %s7725_s15 = smov 19  }
  0x1b   :  { %s7921_s27 = sld [smem:[%s9013_s0 + %s7722_s22]]   ;;  %s7726_s22 = smov 20  }
  0x1c   :  { %s7926_s4 = sld [smem:[%s9013_s0 + %s7723_s28]]   ;;  %s7727_s28 = smov 21  }
  0x1d   :  { %9067 = sst [smem:[#allocation54_spill]] %s7901_s30 }
  0x1e   :  { %9068 = sst [smem:[#allocation55_spill]] %s7906_s6 }
  0x1f   :  { %9069 = sst [smem:[#allocation56_spill]] %s7911_s12 }
  0x20   :  { %9070 = sst [smem:[#allocation57_spill]] %s7916_s20 }
  0x21   :  { %9071 = sst [smem:[#allocation58_spill]] %s7921_s27 }
  0x22   :  { %9072 = sst [smem:[#allocation59_spill]] %s7926_s4 }
  0x23   :  { %s7931_s17 = sld [smem:[%s9013_s0 + %s7724_s7]]   ;;  %s7728_s7 = smov 22  }
  0x24   :  { %s7936_s13 = sld [smem:[%s9013_s0 + %s7725_s15]]   ;;  %s7729_s15 = smov 23  }
  0x25   :  { %s7941_s5 = sld [smem:[%s9013_s0 + %s7726_s22]]   ;;  %s7730_s22 = smov 24  }
  0x26   :  { %s7946_s4 = sld [smem:[%s9013_s0 + %s7727_s28]]   ;;  %s7731_s28 = smov 25  }
  0x27   :  { %s7951_s20 = sld [smem:[%s9013_s0 + %s7728_s7]]   ;;  %s7732_s7 = smov 26  }
  0x29   :  { %9073 = sst [smem:[#allocation60_spill]] %s7931_s17 }
  0x2a   :  { %9074 = sst [smem:[#allocation61_spill]] %s7936_s13 }
  0x2b   :  { %9075 = sst [smem:[#allocation62_spill]] %s7941_s5 }
  0x2c   :  { %9076 = sst [smem:[#allocation63_spill]] %s7946_s4 }
  0x2d   :  { %9077 = sst [smem:[#allocation64_spill]] %s7951_s20 }
  0x2e   :  { %s7956_s13 = sld [smem:[%s9013_s0 + %s7729_s15]]   ;;  %s7733_s15 = smov 27  }
  0x2f   :  { %s7961_s5 = sld [smem:[%s9013_s0 + %s7730_s22]]   ;;  %s7734_s22 = smov 28  }
  0x30   :  { %s7966_s4 = sld [smem:[%s9013_s0 + %s7731_s28]]   ;;  %s7735_s28 = smov 29  }
  0x31   :  { %s7971_s20 = sld [smem:[%s9013_s0 + %s7732_s7]]   ;;  %s7736_s7 = smov 30  }
  0x34   :  { %9078 = sst [smem:[#allocation65_spill]] %s7956_s13 }
  0x35   :  { %9079 = sst [smem:[#allocation66_spill]] %s7961_s5 }
  0x36   :  { %9080 = sst [smem:[#allocation67_spill]] %s7966_s4 }
  0x37   :  { %9081 = sst [smem:[#allocation68_spill]] %s7971_s20 }
  0x38   :  { %s7976_s13 = sld [smem:[%s9013_s0 + %s7733_s15]]   ;;  %s7737_s15 = smov 31  }
  0x39   :  { %s7981_s5 = sld [smem:[%s9013_s0 + %s7734_s22]]  }
  0x3a   :  { %s7986_s4 = sld [smem:[%s9013_s0 + %s7735_s28]]  }
  0x3b   :  { %s7991_s20 = sld [smem:[%s9013_s0 + %s7736_s7]]  }
  0x3e   :  { %9082 = sst [smem:[#allocation69_spill]] %s7976_s13 }
  0x3f   :  { %s7996_s13 = sld [smem:[%s9013_s0 + %s7737_s15]]  }
  0x40   :  { %9083 = sst [smem:[#allocation70_spill]] %s7986_s4 }
  0x41   :  { %9084 = sst [smem:[#allocation71_spill]] %s7991_s20 }
  0x42   :  { %69 = vsyncpa [#allocation3], 0 }
  0x43   :  { %71 = vsyncpa [#allocation3 + $0x1], 0 }
  0x44   :  { %72 = vsyncpa [#allocation6], 0 }
  0x45   :  { %74 = vsyncpa [#allocation6 + $0x1], 0 }
  0x46   :  { %75 = vsyncpa [#allocation9], 0 }
  0x47   :  { %76 = vsyncpa [#allocation12], 0 }
  0x48   :  { %77 = vsyncpa [#allocation15], 0 }
  0x49   :  { %78 = vsyncpa [#allocation18], 0 }
  0x4a   :  { %79 = vsyncpa [#allocation21], 0 }
  0x4b   :  { %80 = vsyncpa [#allocation24], 0 }
  0x4c   :  { %81 = vsyncpa [#allocation27], 0 }
  0x4d   :  { %82 = vsyncpa [#allocation30], 0 }
  0x4e   :  { %83 = vsyncpa [#allocation4], 0 }
  0x4f   :  { %85 = vsyncpa [#allocation4 + $0x1], 0  ;;  %s7998_s22 = smov 0   ;;  %s8000_s23 = smov 0  }
  0x50   :  { %s8002_s0 = smov 0   ;;  %s8004_s26 = smov 0  }
  0x51 LB: > { %s9085_s14 = sld [smem:[#allocation52_spill]]  ;;  %s9086_s6 = sld [smem:[#allocation55_spill]]  ;;  %s7705_s26 = sphi %s8004_s26, %s9158_s26   ;;  %s7701_s0 = sphi %s8002_s0, %s9160_s0   ;;  %s7697_s23 = sphi %s8000_s23, %s9162_s23   ;;  %s7693_s22 = sphi %s7998_s22, %s9161_s22  }
  0x52   : > { %s9087_s3 = sld [smem:[#allocation50_spill]]  ;;  %s9088_s9 = sld [smem:[#allocation45_spill]] }
  0x53   : > { %s9089_s30 = sld [smem:[#allocation54_spill]]  ;;  %s9090_s29 = sld [smem:[#allocation49_spill]] }
  0x54   : > { %s9091_s27 = sld [smem:[#allocation58_spill]]  ;;  %s9092_s19 = sld [smem:[#allocation53_spill]] }
  0x55   : > { %s9093_s17 = sld [smem:[#allocation60_spill]]  ;;  %s9094_s12 = sld [smem:[#allocation56_spill]] }
  0x56   : > { %s9095_s8 = sld [smem:[#allocation51_spill]]  ;;  %s9096_s21 = sld [smem:[#allocation48_spill]] }
  0x57   : > { %9097 = sst [smem:[#allocation72_spill]] %s7701_s0  ;;  %s7738_s28 = smov [#allocation8]  }
  0x58   : > { %s808_s1 = sshll.u32 %s7738_s28, 4  ;;  %s8019_s2 = sadd.s32 4294967295, %s7705_s26   ;;  %s8024_s1 = int_to_ptr.vmem [resolvable:$true] %s808_s1 }
  0x59   : > { %p5240_p0 = scmp.ge.s32.totalorder %s7705_s26, 1  ;;  %p9023_p1 = scmp.eq.s32.totalorder %s8019_s2, 0 }
  0x5a   : > { %p793_p2 = scmp.lt.s32.totalorder %s7705_s26, 3  ;;  %s7739_s10 = smov [#allocation11]  }
  0x5b   : > { %s832_s11 = sshll.u32 %s7739_s10, 4  ;;  %s7740_s16 = smov [#allocation14]   ;;  %s8039_s11 = int_to_ptr.vmem [resolvable:$true] %s832_s11 }
  0x5c   : > { %p8026_p3 = pnand %p5240_p0, %p793_p2  ;;  %s859_s18 = sshll.u32 %s7740_s16, 4  ;;  %s8041_s18 = int_to_ptr.vmem [resolvable:$true] %s859_s18 }
  0x5d   : > { %s7065_s28 = scalar_lea.hbm %s9096_s21, 512 }
  0x5e   : > { %s9098_s7 = scalar_select %p8026_p3, 1, 0 }
  0x5f   : > { %p6609_p5 = pneg %p8026_p3  ;;  %p7066_p7 = scmp.ne.s32.totalorder %s9096_s21, %s7065_s28 }
  0x60   : > { %p7072_p11 = scmp.lt.u32.totalorder %s7065_s28, %s9096_s21 }
  0x61   : > { %p8035_p6 = pnand %p6609_p5, %p9023_p1 }
  0x63   : > { %s9099_s15 = scalar_select %p8035_p6, 1, 0 }
  0x64   : > { %p8047_p8 = pneg %p8035_p6 }
  0x66   : > { %s9100_s20 = scalar_select %p8047_p8, 1, 0 }
  0x67   : > { %p7068_p9 = pnand %p8047_p8, %p7066_p7 }
  0x69   : > { %p7069_p10 = pneg %p7068_p9 }
  0x6b   : > { %p7074_p12 = pnand %p7072_p11, %p7069_p10 }
  0x6d   : > { %7077 = shalt.err (!%p7074_p12)
}
  0x6e   : > { %s7078_s10 = scalar_lea.vmem %s8024_s1, 512  ;;  %p7086_p5 = scmp.lt.s32.totalorder %s8024_s1, %s8024_s1 }
  0x6f   : > { %p7079_p13 = scmp.ne.s32.totalorder %s8024_s1, %s7078_s10  ;;  %p7087_p4 = scmp.lt.s32.totalorder %s7078_s10, %s7078_s10 }
  0x71   : > { %p7081_p0 = pnand %p7079_p13, %p8047_p8  ;;  %p7088_p1 = por %p7087_p4, %p7086_p5 }
  0x73   : > { %p7082_p2 = pneg %p7081_p0 }
  0x75   : > { %p7089_p3 = pnand %p7088_p1, %p7082_p2 }
  0x77   : > { %7092 = shalt.err (!%p7089_p3)
}
  0x78   : > { %s9025_s16 = smov 128   ;;  %s9027_s28 = smov 8  }
  0x79   : > { %6612 = dma.hbm_to_vmem [thread:$0]  (!%p8035_p6), %s9096_s21, 512, %s8024_s1, [#allocation9], %s9025_s16, %s9025_s16, %s9027_s28  }
  0x7a   : > { %s7093_s4 = scalar_lea.hbm %s9090_s29, 8704 }
  0x7b   : > { %p7094_p7 = scmp.ne.s32.totalorder %s9090_s29, %s7093_s4  ;;  %p7100_p3 = scmp.lt.u32.totalorder %s7093_s4, %s9090_s29 }
  0x7d   : > { %p7096_p4 = pnand %p7094_p7, %p8047_p8 }
  0x7f   : > { %p7097_p1 = pneg %p7096_p4 }
  0x81   : > { %p7102_p9 = pnand %p7100_p3, %p7097_p1 }
  0x83   : > { %7105 = shalt.err (!%p7102_p9)
}
  0x84   : > { %s7106_s10 = scalar_lea.vmem %s8039_s11, 8704  ;;  %p7114_p13 = scmp.lt.s32.totalorder %s8039_s11, %s8039_s11 }
  0x85   : > { %p7107_p10 = scmp.ne.s32.totalorder %s8039_s11, %s7106_s10  ;;  %p7115_p0 = scmp.lt.s32.totalorder %s7106_s10, %s7106_s10 }
  0x87   : > { %p7109_p11 = pnand %p7107_p10, %p8047_p8  ;;  %p7116_p2 = por %p7115_p0, %p7114_p13 }
  0x89   : > { %p7110_p12 = pneg %p7109_p11 }
  0x8b   : > { %p7117_p5 = pnand %p7116_p2, %p7110_p12 }
  0x8d   : > { %7120 = shalt.err (!%p7117_p5)
}
  0x8e   : > { %6618 = dma.hbm_to_vmem [thread:$0]  (!%p8035_p6), %s9090_s29, 8704, %s8039_s11, [#allocation12], %s9025_s16, %s9025_s16, %s9027_s28  }
  0x8f   : > { %s7121_s4 = scalar_lea.hbm %s9095_s8, 16 }
  0x90   : > { %p7122_p7 = scmp.ne.s32.totalorder %s9095_s8, %s7121_s4  ;;  %p7128_p3 = scmp.lt.u32.totalorder %s7121_s4, %s9095_s8 }
  0x92   : > { %p7124_p4 = pnand %p7122_p7, %p8047_p8 }
  0x94   : > { %p7125_p1 = pneg %p7124_p4 }
  0x96   : > { %p7130_p9 = pnand %p7128_p3, %p7125_p1 }
  0x98   : > { %7133 = shalt.err (!%p7130_p9)
}
  0x99   : > { %s7134_s1 = scalar_lea.vmem %s8041_s18, 16  ;;  %s7141_s10 = scalar_lea.vmem %s8041_s18, 32 }
  0x9a   : > { %p7135_p10 = scmp.ne.s32.totalorder %s8041_s18, %s7134_s1  ;;  %p7142_p13 = scmp.lt.s32.totalorder %s8041_s18, %s8041_s18 }
  0x9b   : > { %p7143_p0 = scmp.lt.s32.totalorder %s7141_s10, %s7134_s1 }
  0x9c   : > { %p7137_p11 = pnand %p7135_p10, %p8047_p8 }
  0x9d   : > { %p7144_p2 = por %p7143_p0, %p7142_p13 }
  0x9e   : > { %p7138_p12 = pneg %p7137_p11 }
  0xa0   : > { %p7145_p5 = pnand %p7144_p2, %p7138_p12 }
  0xa2   : > { %7148 = shalt.err (!%p7145_p5)
}
  0xa3   : > { %6624 = dma.hbm_to_vmem [thread:$0]  (!%p8035_p6), %s9095_s8, 16, %s8041_s18, [#allocation15]  }
  0xa4   : > { %s7743_s11 = smov [#allocation17]   ;;  %s7744_s16 = smov [#allocation20]  }
  0xa5   : > { %s882_s4 = sshll.u32 %s7743_s11, 4  ;;  %s906_s28 = sshll.u32 %s7744_s16, 4  ;;  %s883_s4 = int_to_ptr.vmem [resolvable:$true] %s882_s4  ;;  %s907_s28 = int_to_ptr.vmem [resolvable:$true] %s906_s28 }
  0xa6   : > { %s7149_s21 = scalar_lea.hbm %s9092_s19, 256 }
  0xa7   : > { %p7150_p7 = scmp.ne.s32.totalorder %s9092_s19, %s7149_s21  ;;  %p7156_p3 = scmp.lt.u32.totalorder %s7149_s21, %s9092_s19 }
  0xa9   : > { %p7152_p4 = pnand %p7150_p7, %p8047_p8 }
  0xab   : > { %p7153_p1 = pneg %p7152_p4 }
  0xad   : > { %p7158_p9 = pnand %p7156_p3, %p7153_p1 }
  0xaf   : > { %7161 = shalt.err (!%p7158_p9)
}
  0xb0   : > { %s7162_s1 = scalar_lea.vmem %s883_s4, 256  ;;  %p7170_p13 = scmp.lt.s32.totalorder %s883_s4, %s883_s4 }
  0xb1   : > { %p7163_p10 = scmp.ne.s32.totalorder %s883_s4, %s7162_s1  ;;  %p7171_p0 = scmp.lt.s32.totalorder %s7162_s1, %s7162_s1 }
  0xb3   : > { %p7165_p11 = pnand %p7163_p10, %p8047_p8  ;;  %p7172_p2 = por %p7171_p0, %p7170_p13 }
  0xb5   : > { %p7166_p12 = pneg %p7165_p11 }
  0xb7   : > { %p7173_p5 = pnand %p7172_p2, %p7166_p12 }
  0xb9   : > { %7176 = shalt.err (!%p7173_p5)
}
  0xba   : > { %s9101_s18 = smov 8   ;;  %s9102_s16 = smov 128  }
  0xbb   : > { %6630 = dma.hbm_to_vmem [thread:$0]  (!%p8035_p6), %s9092_s19, 256, %s883_s4, [#allocation18], %s9102_s16, %s9102_s16, %s9101_s18  }
  0xbc   : > { %s7177_s21 = scalar_lea.hbm %s9089_s30, 8704 }
  0xbd   : > { %p7178_p7 = scmp.ne.s32.totalorder %s9089_s30, %s7177_s21  ;;  %p7184_p3 = scmp.lt.u32.totalorder %s7177_s21, %s9089_s30 }
  0xbf   : > { %p7180_p4 = pnand %p7178_p7, %p8047_p8 }
  0xc1   : > { %p7181_p1 = pneg %p7180_p4 }
  0xc3   : > { %p7186_p9 = pnand %p7184_p3, %p7181_p1 }
  0xc5   : > { %7189 = shalt.err (!%p7186_p9)
}
  0xc6   : > { %s7190_s10 = scalar_lea.vmem %s907_s28, 8704  ;;  %p7198_p13 = scmp.lt.s32.totalorder %s907_s28, %s907_s28 }
  0xc7   : > { %p7191_p10 = scmp.ne.s32.totalorder %s907_s28, %s7190_s10  ;;  %p7199_p0 = scmp.lt.s32.totalorder %s7190_s10, %s7190_s10 }
  0xc9   : > { %p7193_p11 = pnand %p7191_p10, %p8047_p8  ;;  %p7200_p2 = por %p7199_p0, %p7198_p13 }
  0xcb   : > { %p7194_p12 = pneg %p7193_p11 }
  0xcd   : > { %p7201_p5 = pnand %p7200_p2, %p7194_p12 }
  0xcf   : > { %7204 = shalt.err (!%p7201_p5)
}
  0xd0   : > { %6636 = dma.hbm_to_vmem [thread:$0]  (!%p8035_p6), %s9089_s30, 8704, %s907_s28, [#allocation21], %s9102_s16, %s9102_s16, %s9101_s18  }
  0xd1   : > { %s7745_s11 = smov [#allocation23]   ;;  %s7746_s1 = smov [#allocation26]  }
  0xd2   : > { %s933_s4 = sshll.u32 %s7745_s11, 4  ;;  %s956_s21 = sshll.u32 %s7746_s1, 4  ;;  %s934_s4 = int_to_ptr.vmem [resolvable:$true] %s933_s4  ;;  %s957_s21 = int_to_ptr.vmem [resolvable:$true] %s956_s21 }
  0xd3   : > { %s7205_s10 = scalar_lea.hbm %s9094_s12, 16 }
  0xd4   : > { %p7206_p7 = scmp.ne.s32.totalorder %s9094_s12, %s7205_s10  ;;  %p7212_p3 = scmp.lt.u32.totalorder %s7205_s10, %s9094_s12 }
  0xd6   : > { %p7208_p4 = pnand %p7206_p7, %p8047_p8 }
  0xd8   : > { %p7209_p1 = pneg %p7208_p4 }
  0xda   : > { %p7214_p9 = pnand %p7212_p3, %p7209_p1 }
  0xdc   : > { %7217 = shalt.err (!%p7214_p9)
}
  0xdd   : > { %s7218_s8 = scalar_lea.vmem %s934_s4, 16  ;;  %s7225_s28 = scalar_lea.vmem %s934_s4, 32 }
  0xde   : > { %p7219_p10 = scmp.ne.s32.totalorder %s934_s4, %s7218_s8  ;;  %p7226_p13 = scmp.lt.s32.totalorder %s934_s4, %s934_s4 }
  0xdf   : > { %p7227_p0 = scmp.lt.s32.totalorder %s7225_s28, %s7218_s8 }
  0xe0   : > { %p7221_p11 = pnand %p7219_p10, %p8047_p8 }
  0xe1   : > { %p7228_p2 = por %p7227_p0, %p7226_p13 }
  0xe2   : > { %p7222_p12 = pneg %p7221_p11 }
  0xe4   : > { %p7229_p5 = pnand %p7228_p2, %p7222_p12 }
  0xe6   : > { %7232 = shalt.err (!%p7229_p5)
}
  0xe7   : > { %6642 = dma.hbm_to_vmem [thread:$0]  (!%p8035_p6), %s9094_s12, 16, %s934_s4, [#allocation24]  }
  0xe8   : > { %s7233_s11 = scalar_lea.hbm %s9091_s27, 256 }
  0xe9   : > { %p7234_p7 = scmp.ne.s32.totalorder %s9091_s27, %s7233_s11  ;;  %p7240_p3 = scmp.lt.u32.totalorder %s7233_s11, %s9091_s27 }
  0xeb   : > { %p7236_p4 = pnand %p7234_p7, %p8047_p8 }
  0xed   : > { %p7237_p1 = pneg %p7236_p4 }
  0xef   : > { %p7242_p9 = pnand %p7240_p3, %p7237_p1 }
  0xf1   : > { %7245 = shalt.err (!%p7242_p9)
}
  0xf2   : > { %s7246_s8 = scalar_lea.vmem %s957_s21, 256  ;;  %p7254_p13 = scmp.lt.s32.totalorder %s957_s21, %s957_s21 }
  0xf3   : > { %p7247_p10 = scmp.ne.s32.totalorder %s957_s21, %s7246_s8  ;;  %p7255_p0 = scmp.lt.s32.totalorder %s7246_s8, %s7246_s8 }
  0xf5   : > { %p7249_p11 = pnand %p7247_p10, %p8047_p8  ;;  %p7256_p2 = por %p7255_p0, %p7254_p13 }
  0xf7   : > { %p7250_p12 = pneg %p7249_p11 }
  0xf9   : > { %p7257_p5 = pnand %p7256_p2, %p7250_p12 }
  0xfb   : > { %7260 = shalt.err (!%p7257_p5)
}
  0xfc   : > { %6648 = dma.hbm_to_vmem [thread:$0]  (!%p8035_p6), %s9091_s27, 256, %s957_s21, [#allocation27], %s9102_s16, %s9102_s16, %s9101_s18  }
  0xfd   : > { %s7747_s4 = smov [#allocation29]   ;;  %s7261_s10 = scalar_lea.hbm %s9093_s17, 512 }
  0xfe   : > { %s980_s1 = sshll.u32 %s7747_s4, 4  ;;  %p7262_p7 = scmp.ne.s32.totalorder %s9093_s17, %s7261_s10  ;;  %s981_s1 = int_to_ptr.vmem [resolvable:$true] %s980_s1 }
  0xff   : > { %p7268_p3 = scmp.lt.u32.totalorder %s7261_s10, %s9093_s17 }
 0x100   : > { %p7264_p4 = pnand %p7262_p7, %p8047_p8 }
 0x102   : > { %p7265_p1 = pneg %p7264_p4 }
 0x104   : > { %p7270_p9 = pnand %p7268_p3, %p7265_p1 }
 0x106   : > { %7273 = shalt.err (!%p7270_p9)
}
 0x107   : > { %s7274_s28 = scalar_lea.vmem %s981_s1, 512  ;;  %p7282_p13 = scmp.lt.s32.totalorder %s981_s1, %s981_s1 }
 0x108   : > { %p7275_p10 = scmp.ne.s32.totalorder %s981_s1, %s7274_s28  ;;  %p7283_p0 = scmp.lt.s32.totalorder %s7274_s28, %s7274_s28 }
 0x10a   : > { %p7277_p11 = pnand %p7275_p10, %p8047_p8  ;;  %p7284_p2 = por %p7283_p0, %p7282_p13 }
 0x10c   : > { %p7278_p12 = pneg %p7277_p11 }
 0x10e   : > { %p7285_p5 = pnand %p7284_p2, %p7278_p12 }
 0x110   : > { %7288 = shalt.err (!%p7285_p5)
}
 0x111   : > { %6654 = dma.hbm_to_vmem [thread:$0]  (!%p8035_p6), %s9093_s17, 512, %s981_s1, [#allocation30], %s9102_s16, %s9102_s16, %s9101_s18  }
 0x112   : > { %s5239_s21 = sadd.s32 4294967294, %s7705_s26   ;;  %s8165_s11 = sadd.s32 1, %s7705_s26  }
 0x113   : > { %9103 = sst [smem:[#allocation73_spill]] %s8165_s11  ;;  %s95_s8 = ssub.s32 %s7705_s26, %s8165_s11 }
 0x114   : > { %s98_s4 = sadd.s32 1, %s7701_s0  ;;  %p96_p7 = scmp.eq.s32.totalorder %s95_s8, 0 }
 0x115   : > { %p105_p4 = scmp.ne.s32.totalorder %s7701_s0, %s7697_s23  ;;  %p106_p1 = scmp.eq.s32.totalorder %s7705_s26, 0 }
 0x116   : > { %p111_p3 = scmp.ne.s32.totalorder %s7697_s23, %s7693_s22  ;;  %p9105_p10 = scmp.eq.s32.totalorder %s8019_s2, 0 }
 0x117   : > { %s8176_s10 = scalar_select %p96_p7, %s7701_s0, %s98_s4  }
 0x118   : > { %p107_p9 = por %p106_p1, %p105_p4  ;;  %p8180_p11 = por %p9105_p10, %p111_p3 }
 0x119   : > { %9104 = sst [smem:[#allocation74_spill]] %s8176_s10  ;;  %p754_p12 = scmp.eq.s32.totalorder %s8019_s2, 1 }
 0x11a   : > { %s9106_s1 = scalar_select %p8180_p11, 1, 0 }
 0x11b   : > { %p760_p13 = scmp.eq.s32.totalorder %s5239_s21, 1  ;;  %p6688_p0 = scmp.lt.s32.totalorder %s7705_s26, 2 }
 0x11c   : > { %s8187_s28 = sand.u32 1, %s7701_s0   ;;  %p8189_p2 = por %p754_p12, %p105_p4 }
 0x11d   : > { %p8193_p5 = por %p760_p13, %p111_p3  ;;  %s9048_s12 = sshll.u32 %s8187_s28, 3 }
 0x11e   : > { %s9107_s8 = scalar_select %p8189_p2, 1, 0 }
 0x11f   : > { %s9108_s4 = scalar_select %p8193_p5, 1, 0 }
 0x120   : > { %s9041_s17 = sshll.u32 %s7705_s26, 7  ;;  %p8199_p7 = pnand %p6688_p0, %p107_p9 }
 0x121   : > { %9109 = sst [smem:[#allocation75_spill]] %s9108_s4  ;;  %s1055_s19 = sand.u32 1, %s7705_s26  }
 0x122   : > { %s9110_s21 = scalar_select %p8199_p7, 1, 0 }
 0x123   : > { %s8207_s27 = scalar_lea.hbm %s9088_s9, %s9041_s17  ;;  %s1059_s29 = scalar_lea.vmem [#allocation5], %s9048_s12 }
 0x124   : > { %s1066_s30 = sshll.u32 %s1059_s29, 4  ;;  %s8214_s0 = scalar_lea.sflag [#allocation6], %s1055_s19  ;;  %s8212_s30 = int_to_ptr.vmem [resolvable:$true] %s1066_s30 }
 0x125   : > { %s7289_s11 = scalar_lea.hbm %s8207_s27, 128  ;;  %p8220_p1 = pneg %p8199_p7 }
 0x126   : > { %p7290_p4 = scmp.ne.s32.totalorder %s8207_s27, %s7289_s11  ;;  %s7294_s17 = scalar_lea.hbm %s9088_s9, 256 }
 0x127   : > { %s9111_s4 = scalar_select %p8220_p1, 1, 0 }
 0x128   : > { %p7292_p3 = pnand %p8220_p1, %p7290_p4  ;;  %p7295_p10 = scmp.lt.u32.totalorder %s8207_s27, %s9088_s9 }
 0x129   : > { %p7296_p12 = scmp.lt.u32.totalorder %s7294_s17, %s7289_s11  ;;  %p7298_p0 = scmp.lt.u32.totalorder %s7289_s11, %s8207_s27 }
 0x12a   : > { %p7293_p9 = pneg %p7292_p3 }
 0x12b   : > { %p7297_p13 = por %p7296_p12, %p7295_p10 }
 0x12d   : > { %p7299_p5 = por %p7298_p0, %p7297_p13 }
 0x12f   : > { %p7300_p2 = pnand %p7299_p5, %p7293_p9 }
 0x131   : > { %7303 = shalt.err (!%p7300_p2)
}
 0x132   : > { %s7304_s29 = scalar_lea.vmem %s8212_s30, 128  ;;  %s7748_s19 = smov [#allocation5]  }
 0x133   : > { %p7305_p11 = scmp.ne.s32.totalorder %s8212_s30, %s7304_s29  ;;  %s7309_s12 = sshll.u32 %s7748_s19, 4  ;;  %s7310_s12 = int_to_ptr.vmem [resolvable:$false] %s7309_s12 }
 0x134   : > { %s7311_s10 = scalar_lea.vmem %s7310_s12, 256  ;;  %p7312_p4 = scmp.lt.s32.totalorder %s8212_s30, %s7310_s12 }
 0x135   : > { %p7307_p6 = pnand %p7305_p11, %p8220_p1  ;;  %p7313_p3 = scmp.lt.s32.totalorder %s7311_s10, %s7304_s29 }
 0x137   : > { %p7308_p8 = pneg %p7307_p6  ;;  %p7314_p10 = por %p7313_p3, %p7312_p4 }
 0x139   : > { %p7315_p12 = pnand %p7314_p10, %p7308_p8 }
 0x13b   : > { %7318 = shalt.err (!%p7315_p12)
}
 0x13c   : > { %6664 = dma.hbm_to_vmem [thread:$0]  (!%p8199_p7), %s8207_s27, 128, %s8212_s30, %s8214_s0  }
 0x13d   : > { %s9112_s17 = sshll.u32 %s8187_s28, 6  ;;  %s7749_s12 = smov [#allocation10]  }
 0x13e   : > { %s1077_s11 = scalar_lea.vmem [#allocation7], %s9112_s17  ;;  %s822_s10 = sshll.u32 %s7749_s12, 4  ;;  %s823_s10 = int_to_ptr.vmem [resolvable:$true] %s822_s10 }
 0x13f   : > { %s1084_s19 = sshll.u32 %s1077_s11, 4  ;;  %s7319_s29 = scalar_lea.hbm %s7866_s25, 16  ;;  %s8242_s19 = int_to_ptr.vmem [resolvable:$true] %s1084_s19 }
 0x140   : > { %p7320_p6 = scmp.ne.s32.totalorder %s7866_s25, %s7319_s29  ;;  %p9113_p8 = scmp.ne.s32.totalorder %s9100_s20, 0 }
 0x141   : > { %p7326_p5 = scmp.lt.u32.totalorder %s7319_s29, %s7866_s25 }
 0x142   : > { %p7322_p11 = pnand %p7320_p6, %p9113_p8 }
 0x144   : > { %p7323_p2 = pneg %p7322_p11 }
 0x146   : > { %p7328_p9 = pnand %p7326_p5, %p7323_p2 }
 0x148   : > { %7331 = shalt.err (!%p7328_p9)
}
 0x149   : > { %s7332_s9 = scalar_lea.vmem %s823_s10, 16  ;;  %s7339_s30 = scalar_lea.vmem %s823_s10, 32 }
 0x14a   : > { %p7333_p13 = scmp.ne.s32.totalorder %s823_s10, %s7332_s9  ;;  %p7340_p3 = scmp.lt.s32.totalorder %s823_s10, %s823_s10 }
 0x14b   : > { %p7341_p10 = scmp.lt.s32.totalorder %s7339_s30, %s7332_s9 }
 0x14c   : > { %p7335_p0 = pnand %p7333_p13, %p9113_p8 }
 0x14d   : > { %p7342_p12 = por %p7341_p10, %p7340_p3 }
 0x14e   : > { %p7336_p4 = pneg %p7335_p0 }
 0x150   : > { %p7343_p7 = pnand %p7342_p12, %p7336_p4 }
 0x152   : > { %7346 = shalt.err (!%p7343_p7)
}
 0x153   : > { %p9114_p1 = scmp.ne.s32.totalorder %s9099_s15, 0  ;;  %s7750_s27 = smov [#allocation13]  }
 0x154   : > { %s845_s17 = sshll.u32 %s7750_s27, 4  ;;  %s7751_s11 = smov [#allocation16]   ;;  %s846_s17 = int_to_ptr.vmem [resolvable:$true] %s845_s17 }
 0x155   : > { %6615 = dma.hbm_to_vmem [thread:$0]  (!%p9114_p1), %s7866_s25, 16, %s823_s10, [#allocation9]  }
 0x156   : > { %s869_s12 = sshll.u32 %s7751_s11, 4  ;;  %s7347_s29 = scalar_lea.hbm %s9087_s3, 256  ;;  %s870_s12 = int_to_ptr.vmem [resolvable:$true] %s869_s12 }
 0x157   : > { %p7348_p6 = scmp.ne.s32.totalorder %s9087_s3, %s7347_s29  ;;  %p7354_p5 = scmp.lt.u32.totalorder %s7347_s29, %s9087_s3 }
 0x159   : > { %p7350_p11 = pnand %p7348_p6, %p9113_p8 }
 0x15b   : > { %p7351_p2 = pneg %p7350_p11 }
 0x15d   : > { %p7356_p7 = pnand %p7354_p5, %p7351_p2 }
 0x15f   : > { %7359 = shalt.err (!%p7356_p7)
}
 0x160   : > { %s7360_s9 = scalar_lea.vmem %s846_s17, 256  ;;  %p7368_p4 = scmp.lt.s32.totalorder %s846_s17, %s846_s17 }
 0x161   : > { %p7361_p9 = scmp.ne.s32.totalorder %s846_s17, %s7360_s9  ;;  %p7369_p3 = scmp.lt.s32.totalorder %s7360_s9, %s7360_s9 }
 0x163   : > { %p7363_p13 = pnand %p7361_p9, %p9113_p8  ;;  %p7370_p10 = por %p7369_p3, %p7368_p4 }
 0x165   : > { %p7364_p0 = pneg %p7363_p13 }
 0x167   : > { %p7371_p12 = pnand %p7370_p10, %p7364_p0 }
 0x169   : > { %7374 = shalt.err (!%p7371_p12)
}
 0x16a   : > { %6621 = dma.hbm_to_vmem [thread:$0]  (!%p9114_p1), %s9087_s3, 256, %s846_s17, [#allocation12], %s9102_s16, %s9102_s16, %s9101_s18  }
 0x16b   : > { %s7375_s10 = scalar_lea.hbm %s9085_s14, 17408 }
 0x16c   : > { %p7376_p6 = scmp.ne.s32.totalorder %s9085_s14, %s7375_s10  ;;  %p7382_p5 = scmp.lt.u32.totalorder %s7375_s10, %s9085_s14 }
 0x16e   : > { %p7378_p11 = pnand %p7376_p6, %p9113_p8 }
 0x170   : > { %p7379_p2 = pneg %p7378_p11 }
 0x172   : > { %p7384_p7 = pnand %p7382_p5, %p7379_p2 }
 0x174   : > { %7387 = shalt.err (!%p7384_p7)
}
 0x175   : > { %s7388_s30 = scalar_lea.vmem %s870_s12, 17408  ;;  %p7396_p4 = scmp.lt.s32.totalorder %s870_s12, %s870_s12 }
 0x176   : > { %p7389_p9 = scmp.ne.s32.totalorder %s870_s12, %s7388_s30  ;;  %p7397_p3 = scmp.lt.s32.totalorder %s7388_s30, %s7388_s30 }
 0x178   : > { %p7391_p13 = pnand %p7389_p9, %p9113_p8  ;;  %p7398_p10 = por %p7397_p3, %p7396_p4 }
 0x17a   : > { %p7392_p0 = pneg %p7391_p13 }
 0x17c   : > { %p7399_p12 = pnand %p7398_p10, %p7392_p0 }
 0x17e   : > { %7402 = shalt.err (!%p7399_p12)
}
 0x17f   : > { %6627 = dma.hbm_to_vmem [thread:$0]  (!%p9114_p1), %s9085_s14, 17408, %s870_s12, [#allocation15], %s9102_s16, %s9102_s16, %s9101_s18  }
 0x180   : > { %s7752_s27 = smov [#allocation19]   ;;  %s7753_s11 = smov [#allocation22]  }
 0x181   : > { %s896_s17 = sshll.u32 %s7752_s27, 4  ;;  %s919_s29 = sshll.u32 %s7753_s11, 4  ;;  %s897_s17 = int_to_ptr.vmem [resolvable:$true] %s896_s17  ;;  %s920_s29 = int_to_ptr.vmem [resolvable:$true] %s919_s29 }
 0x182   : > { %s7403_s9 = scalar_lea.hbm %s7896_s24, 16 }
 0x183   : > { %p7404_p6 = scmp.ne.s32.totalorder %s7896_s24, %s7403_s9  ;;  %p7410_p5 = scmp.lt.u32.totalorder %s7403_s9, %s7896_s24 }
 0x185   : > { %p7406_p11 = pnand %p7404_p6, %p9113_p8 }
 0x187   : > { %p7407_p2 = pneg %p7406_p11 }
 0x189   : > { %p7412_p7 = pnand %p7410_p5, %p7407_p2 }
 0x18b   : > { %7415 = shalt.err (!%p7412_p7)
}
 0x18c   : > { %s7416_s10 = scalar_lea.vmem %s897_s17, 16  ;;  %s7423_s12 = scalar_lea.vmem %s897_s17, 32 }
 0x18d   : > { %p7417_p9 = scmp.ne.s32.totalorder %s897_s17, %s7416_s10  ;;  %p7424_p4 = scmp.lt.s32.totalorder %s897_s17, %s897_s17 }
 0x18e   : > { %p7425_p3 = scmp.lt.s32.totalorder %s7423_s12, %s7416_s10 }
 0x18f   : > { %p7419_p13 = pnand %p7417_p9, %p9113_p8 }
 0x190   : > { %p7426_p10 = por %p7425_p3, %p7424_p4 }
 0x191   : > { %p7420_p0 = pneg %p7419_p13 }
 0x193   : > { %p7427_p12 = pnand %p7426_p10, %p7420_p0 }
 0x195   : > { %7430 = shalt.err (!%p7427_p12)
}
 0x196   : > { %6633 = dma.hbm_to_vmem [thread:$0]  (!%p9114_p1), %s7896_s24, 16, %s897_s17, [#allocation18]  }
 0x197   : > { %s7431_s30 = scalar_lea.hbm %s9086_s6, 256 }
 0x198   : > { %p7432_p6 = scmp.ne.s32.totalorder %s9086_s6, %s7431_s30  ;;  %p7438_p5 = scmp.lt.u32.totalorder %s7431_s30, %s9086_s6 }
 0x19a   : > { %p7434_p11 = pnand %p7432_p6, %p9113_p8 }
 0x19c   : > { %p7435_p2 = pneg %p7434_p11 }
 0x19e   : > { %p7440_p7 = pnand %p7438_p5, %p7435_p2 }
 0x1a0   : > { %7443 = shalt.err (!%p7440_p7)
}
 0x1a1   : > { %s7444_s27 = scalar_lea.vmem %s920_s29, 256  ;;  %p7452_p4 = scmp.lt.s32.totalorder %s920_s29, %s920_s29 }
 0x1a2   : > { %p7445_p9 = scmp.ne.s32.totalorder %s920_s29, %s7444_s27  ;;  %p7453_p3 = scmp.lt.s32.totalorder %s7444_s27, %s7444_s27 }
 0x1a4   : > { %p7447_p13 = pnand %p7445_p9, %p9113_p8  ;;  %p7454_p10 = por %p7453_p3, %p7452_p4 }
 0x1a6   : > { %p7448_p0 = pneg %p7447_p13 }
 0x1a8   : > { %p7455_p12 = pnand %p7454_p10, %p7448_p0 }
 0x1aa   : > { %7458 = shalt.err (!%p7455_p12)
}
 0x1ab   : > { %s9115_s17 = sld [smem:[#allocation57_spill]]  ;;  %s7754_s11 = smov [#allocation25]  }
 0x1ac   : > { %6639 = dma.hbm_to_vmem [thread:$0]  (!%p9114_p1), %s9086_s6, 256, %s920_s29, [#allocation21], %s9102_s16, %s9102_s16, %s9101_s18  }
 0x1ad   : > { %s943_s9 = sshll.u32 %s7754_s11, 4  ;;  %s7755_s10 = smov [#allocation28]   ;;  %s944_s9 = int_to_ptr.vmem [resolvable:$true] %s943_s9 }
 0x1ae   : > { %s970_s12 = sshll.u32 %s7755_s10, 4  ;;  %s971_s12 = int_to_ptr.vmem [resolvable:$true] %s970_s12 }
 0x1b1   : > { %s7459_s30 = scalar_lea.hbm %s9115_s17, 17408 }
 0x1b2   : > { %p7460_p6 = scmp.ne.s32.totalorder %s9115_s17, %s7459_s30  ;;  %p7466_p5 = scmp.lt.u32.totalorder %s7459_s30, %s9115_s17 }
 0x1b4   : > { %p7462_p11 = pnand %p7460_p6, %p9113_p8 }
 0x1b6   : > { %p7463_p2 = pneg %p7462_p11 }
 0x1b8   : > { %p7468_p7 = pnand %p7466_p5, %p7463_p2 }
 0x1ba   : > { %7471 = shalt.err (!%p7468_p7)
}
 0x1bb   : > { %s7472_s27 = scalar_lea.vmem %s944_s9, 17408  ;;  %p7480_p4 = scmp.lt.s32.totalorder %s944_s9, %s944_s9 }
 0x1bc   : > { %p7473_p9 = scmp.ne.s32.totalorder %s944_s9, %s7472_s27  ;;  %p7481_p3 = scmp.lt.s32.totalorder %s7472_s27, %s7472_s27 }
 0x1be   : > { %p7475_p13 = pnand %p7473_p9, %p9113_p8  ;;  %p7482_p10 = por %p7481_p3, %p7480_p4 }
 0x1c0   : > { %p7476_p0 = pneg %p7475_p13 }
 0x1c2   : > { %p7483_p12 = pnand %p7482_p10, %p7476_p0 }
 0x1c4   : > { %7486 = shalt.err (!%p7483_p12)
}
 0x1c5   : > { %s9116_s29 = sld [smem:[#allocation59_spill]] }
 0x1c6   : > { %6645 = dma.hbm_to_vmem [thread:$0]  (!%p9114_p1), %s9115_s17, 17408, %s944_s9, [#allocation24], %s9102_s16, %s9102_s16, %s9101_s18  }
 0x1cb   : > { %s7487_s11 = scalar_lea.hbm %s9116_s29, 16 }
 0x1cc   : > { %p7488_p6 = scmp.ne.s32.totalorder %s9116_s29, %s7487_s11  ;;  %p7494_p5 = scmp.lt.u32.totalorder %s7487_s11, %s9116_s29 }
 0x1ce   : > { %p7490_p11 = pnand %p7488_p6, %p9113_p8 }
 0x1d0   : > { %p7491_p2 = pneg %p7490_p11 }
 0x1d2   : > { %p7496_p7 = pnand %p7494_p5, %p7491_p2 }
 0x1d4   : > { %7499 = shalt.err (!%p7496_p7)
}
 0x1d5   : > { %s7500_s10 = scalar_lea.vmem %s971_s12, 16  ;;  %s7507_s30 = scalar_lea.vmem %s971_s12, 32 }
 0x1d6   : > { %p7501_p9 = scmp.ne.s32.totalorder %s971_s12, %s7500_s10  ;;  %p7508_p4 = scmp.lt.s32.totalorder %s971_s12, %s971_s12 }
 0x1d7   : > { %p7509_p3 = scmp.lt.s32.totalorder %s7507_s30, %s7500_s10 }
 0x1d8   : > { %p7503_p13 = pnand %p7501_p9, %p9113_p8 }
 0x1d9   : > { %p7510_p10 = por %p7509_p3, %p7508_p4 }
 0x1da   : > { %p7504_p0 = pneg %p7503_p13 }
 0x1dc   : > { %p7511_p12 = pnand %p7510_p10, %p7504_p0 }
 0x1de   : > { %7514 = shalt.err (!%p7511_p12)
}
 0x1df   : > { %s9117_s9 = sld [smem:[#allocation61_spill]]  ;;  %s7756_s27 = smov [#allocation31]  }
 0x1e0   : > { %6651 = dma.hbm_to_vmem [thread:$0]  (!%p9114_p1), %s9116_s29, 16, %s971_s12, [#allocation27]  }
 0x1e1   : > { %s993_s11 = sshll.u32 %s7756_s27, 4  ;;  %s994_s11 = int_to_ptr.vmem [resolvable:$true] %s993_s11 }
 0x1e5   : > { %s7515_s3 = scalar_lea.hbm %s9117_s9, 512 }
 0x1e6   : > { %p7516_p6 = scmp.ne.s32.totalorder %s9117_s9, %s7515_s3  ;;  %p7522_p5 = scmp.lt.u32.totalorder %s7515_s3, %s9117_s9 }
 0x1e8   : > { %p7518_p11 = pnand %p7516_p6, %p9113_p8 }
 0x1ea   : > { %p7519_p2 = pneg %p7518_p11 }
 0x1ec   : > { %p7524_p7 = pnand %p7522_p5, %p7519_p2 }
 0x1ee   : > { %7527 = shalt.err (!%p7524_p7)
}
 0x1ef   : > { %s7528_s10 = scalar_lea.vmem %s994_s11, 512  ;;  %p7536_p4 = scmp.lt.s32.totalorder %s994_s11, %s994_s11 }
 0x1f0   : > { %p7529_p9 = scmp.ne.s32.totalorder %s994_s11, %s7528_s10  ;;  %p7537_p3 = scmp.lt.s32.totalorder %s7528_s10, %s7528_s10 }
 0x1f2   : > { %p7531_p13 = pnand %p7529_p9, %p9113_p8  ;;  %p7538_p10 = por %p7537_p3, %p7536_p4 }
 0x1f4   : > { %p7532_p0 = pneg %p7531_p13 }
 0x1f6   : > { %p7539_p12 = pnand %p7538_p10, %p7532_p0 }
 0x1f8   : > { %7542 = shalt.err (!%p7539_p12)
}
 0x1f9   : > { %s9118_s3 = sld [smem:[#allocation44_spill]]  ;;  %s9119_s20 = sshll.u32 %s7705_s26, 7 }
 0x1fa   : > { %6657 = dma.hbm_to_vmem [thread:$0]  (!%p9114_p1), %s9117_s9, 512, %s994_s11, [#allocation30], %s9102_s16, %s9102_s16, %s9101_s18  }
 0x1fb   : > { %s9120_s30 = sshll.u32 %s8187_s28, 3  ;;  %s5347_s10 = sshll.u32 %s7705_s26, 10 }
 0x1fc   : > { %s1041_s15 = scalar_lea.vmem [#allocation2], %s9120_s30  ;;  %s1038_s6 = scalar_lea.sflag [#allocation3], %s8187_s28 }
 0x1fd   : > { %s1048_s27 = sshll.u32 %s1041_s15, 4  ;;  %p9121_p6 = scmp.ne.s32.totalorder %s9111_s4, 0  ;;  %s8346_s27 = int_to_ptr.vmem [resolvable:$true] %s1048_s27 }
 0x1ff   : > { %s8342_s12 = scalar_lea.hbm %s9118_s3, %s9119_s20  ;;  %s7548_s11 = scalar_lea.hbm %s9118_s3, 256 }
 0x200   : > { %s7543_s14 = scalar_lea.hbm %s8342_s12, 128  ;;  %p7549_p1 = scmp.lt.u32.totalorder %s8342_s12, %s9118_s3 }
 0x201   : > { %p7544_p8 = scmp.ne.s32.totalorder %s8342_s12, %s7543_s14  ;;  %p7550_p5 = scmp.lt.u32.totalorder %s7548_s11, %s7543_s14 }
 0x202   : > { %p7552_p9 = scmp.lt.u32.totalorder %s7543_s14, %s8342_s12 }
 0x203   : > { %p7546_p11 = pnand %p7544_p8, %p9121_p6  ;;  %p7551_p7 = por %p7550_p5, %p7549_p1 }
 0x205   : > { %p7547_p2 = pneg %p7546_p11  ;;  %p7553_p13 = por %p7552_p9, %p7551_p7 }
 0x207   : > { %p7554_p0 = pnand %p7553_p13, %p7547_p2 }
 0x209   : > { %7557 = shalt.err (!%p7554_p0)
}
 0x20a   : > { %s7558_s20 = scalar_lea.vmem %s8346_s27, 128  ;;  %s7757_s28 = smov [#allocation2]  }
 0x20b   : > { %p7559_p4 = scmp.ne.s32.totalorder %s8346_s27, %s7558_s20  ;;  %s7563_s30 = sshll.u32 %s7757_s28, 4  ;;  %s7564_s30 = int_to_ptr.vmem [resolvable:$false] %s7563_s30 }
 0x20c   : > { %s7565_s15 = scalar_lea.vmem %s7564_s30, 256  ;;  %p7566_p12 = scmp.lt.s32.totalorder %s8346_s27, %s7564_s30 }
 0x20d   : > { %p7561_p3 = pnand %p7559_p4, %p9121_p6  ;;  %p7567_p8 = scmp.lt.s32.totalorder %s7565_s15, %s7558_s20 }
 0x20f   : > { %p7562_p10 = pneg %p7561_p3  ;;  %p7568_p11 = por %p7567_p8, %p7566_p12 }
 0x211   : > { %p7569_p1 = pnand %p7568_p11, %p7562_p10 }
 0x213   : > { %7572 = shalt.err (!%p7569_p1)
}
 0x214   : > { %p9122_p2 = scmp.ne.s32.totalorder %s9110_s21, 0  ;;  %s9123_s14 = sld [smem:[#allocation46_spill]] }
 0x216   : > { %6661 = dma.hbm_to_vmem [thread:$0]  (!%p9122_p2), %s8342_s12, 128, %s8346_s27, %s1038_s6  }
 0x21a   : > { %s8370_s11 = scalar_lea.hbm %s9123_s14, %s5347_s10  ;;  %s7578_s28 = scalar_lea.hbm %s9123_s14, 2048 }
 0x21b   : > { %s7573_s20 = scalar_lea.hbm %s8370_s11, 1024  ;;  %p7579_p13 = scmp.lt.u32.totalorder %s8370_s11, %s9123_s14 }
 0x21c   : > { %p7574_p5 = scmp.ne.s32.totalorder %s8370_s11, %s7573_s20  ;;  %p7580_p0 = scmp.lt.u32.totalorder %s7578_s28, %s7573_s20 }
 0x21d   : > { %p7582_p3 = scmp.lt.u32.totalorder %s7573_s20, %s8370_s11 }
 0x21e   : > { %p7576_p7 = pnand %p7574_p5, %p9121_p6  ;;  %p7581_p4 = por %p7580_p0, %p7579_p13 }
 0x220   : > { %p7577_p9 = pneg %p7576_p7  ;;  %p7583_p10 = por %p7582_p3, %p7581_p4 }
 0x222   : > { %p7584_p12 = pnand %p7583_p10, %p7577_p9 }
 0x224   : > { %7587 = shalt.err (!%p7584_p12)
}
 0x225   : > { %s7588_s6 = scalar_lea.vmem %s8242_s19, 1024  ;;  %s7758_s12 = smov [#allocation7]  }
 0x226   : > { %p7589_p8 = scmp.ne.s32.totalorder %s8242_s19, %s7588_s6  ;;  %s7593_s27 = sshll.u32 %s7758_s12, 4  ;;  %s7594_s27 = int_to_ptr.vmem [resolvable:$false] %s7593_s27 }
 0x227   : > { %s7595_s10 = scalar_lea.vmem %s7594_s27, 2048  ;;  %p7596_p5 = scmp.lt.s32.totalorder %s8242_s19, %s7594_s27 }
 0x228   : > { %p7591_p11 = pnand %p7589_p8, %p9121_p6  ;;  %p7597_p7 = scmp.lt.s32.totalorder %s7595_s10, %s7588_s6 }
 0x22a   : > { %p7592_p1 = pneg %p7591_p11  ;;  %p7598_p13 = por %p7597_p7, %p7596_p5 }
 0x22c   : > { %p7599_p0 = pnand %p7598_p13, %p7592_p1 }
 0x22e   : > { %7602 = shalt.err (!%p7599_p0)
}
 0x22f   : > { %6667 = dma.hbm_to_vmem [thread:$0]  (!%p9122_p2), %s8370_s11, 1024, %s8242_s19, %s8214_s0, %s9102_s16, %s9102_s16, %s9101_s18  }
 0x230   : > { %p9124_p6 = scmp.ne.s32.totalorder %s9098_s7, 0 }
 0x231   : > { %s8396_s4 = sand.u32 (!%p9124_p6), 1, %s7697_s23   ;;  %p9125_p9 = scmp.ne.s32.totalorder (!%p9124_p6), %s9106_s1, 0 }
 0x232   : > { %1096 = sbr.rel (%p9124_p6) target bundleno = 4377 (0x1119), region = 140  ;;  %s8399_s30 = sshll.u32 (!%p9124_p6), %s8396_s4, 3 }
 0x233   : > { %s1099_s21 = scalar_lea.sflag (!%p9124_p6), [#allocation3], %s8396_s4  ;;  %s1102_s15 = scalar_lea.vmem (!%p9124_p6), [#allocation2], %s8399_s30 }
 0x239   : > { %7648 = dma.done.wait (%p9125_p9), %s1099_s21, 128  }
 0x23a   : > { %7650 = vsyncadd (%p9125_p9), %s1099_s21, 4294967168  ;;  %s1107_s0 = sand.u32 1, %s8019_s2   ;;  %s1111_s18 = scalar_lea.vmem [#allocation5], %s8399_s30 }
 0x23b   : > { %s1108_s7 = scalar_lea.sflag [#allocation6], %s1107_s0 }
 0x23c   : > { %7652 = dma.done.wait (%p9125_p9), %s1108_s7, 1152  }
 0x23d   : > { %7654 = vsyncadd (%p9125_p9), %s1108_s7, 4294966144  ;;  %s5268_s16 = sshll.u32 %s8396_s4, 6  ;;  %p9126_p2 = scmp.eq.s32.totalorder %s8019_s2, 0 }
 0x23e   : > { %s8414_s19 = scalar_lea.vmem [#allocation7], %s5268_s16 }
 0x23f   : > { %7656 = dma.done.wait (%p9126_p2), [#allocation9], 528   ;;  %p9127_p4 = pmov %p9126_p2 }
 0x240   : > { %p9128_p3 = pmov %p9126_p2 }
 0x241   : > { %7658 = vsyncadd (%p9127_p4), [#allocation9], 4294966768 }
 0x242   : > { %7660 = dma.done.wait (%p9128_p3), [#allocation12], 8960   ;;  %p9129_p10 = pmov %p9126_p2 }
 0x243   : > { %p9130_p12 = pmov %p9126_p2 }
 0x244   : > { %7662 = vsyncadd (%p9129_p10), [#allocation12], 4294958336 }
 0x245   : > { %7664 = dma.done.wait (%p9130_p12), [#allocation15], 17424   ;;  %p9131_p8 = pmov %p9126_p2 }
 0x246   : > { %p9132_p11 = pmov %p9126_p2 }
 0x247   : > { %7666 = vsyncadd (%p9131_p8), [#allocation15], 4294949872 }
 0x248   : > { %7668 = dma.done.wait (%p9132_p11), [#allocation18], 272   ;;  %p9133_p1 = pmov %p9126_p2 }
 0x24a   : > { %7670 = vsyncadd (%p9133_p1), [#allocation18], 4294967024  ;;  %p9134_p5 = pmov %p9133_p1 }
 0x24b   : > { %p9135_p7 = pmov %p9133_p1 }
 0x24c   : > { %7672 = dma.done.wait (%p9134_p5), [#allocation21], 8960  }
 0x24d   : > { %7674 = vsyncadd (%p9135_p7), [#allocation21], 4294958336  ;;  %p9136_p13 = pmov %p9133_p1 }
 0x24e   : > { %p9137_p0 = pmov %p9133_p1 }
 0x24f   : > { %7676 = dma.done.wait (%p9136_p13), [#allocation24], 17424  }
 0x250   : > { %7678 = vsyncadd (%p9137_p0), [#allocation24], 4294949872  ;;  %p9138_p6 = pmov %p9137_p0 }
 0x251   : > { %p9139_p9 = pmov %p9137_p0 }
 0x252   : > { %7680 = dma.done.wait (%p9138_p6), [#allocation27], 272  }
 0x253   : > { %7682 = vsyncadd (%p9139_p9), [#allocation27], 4294967024  ;;  %p9140_p2 = pmov %p9137_p0 }
 0x254   : > { %p9141_p4 = pmov %p9137_p0 }
 0x255   : > { %7684 = dma.done.wait (%p9140_p2), [#allocation30], 1024  }
 0x256   : > { %7686 = vsyncadd (%p9141_p4), [#allocation30], 4294966272  ;;  %v7759_v0 = vmov 0.0|0.0   ;;  %vm7760_vm0 = vmmov 0   ;;  %v7761_v1 = vmov 0.0   ;;  %v1287_v2 = vld [vmem:[#allocation8] sm:$0xff] }
 0x257   : > { %6063 = vmatprep.subr.bf16.mxu1 %v7759_v0  ;;  %5876 = vmatprep.mubr.msk.f32.mxu1 %vm7760_vm0, %v7761_v1  ;;  %v1288_v3 = vld [vmem:[#allocation8 + $0x8] sm:$0xff]  ;;  %v1289_v4 = vld [vmem:[#allocation8 + $0x10] sm:$0xff]  ;;  %v1290_v6 = vld [vmem:[#allocation8 + $0x18] sm:$0xff]  ;;  %vm1298_vm1 = vcmask 261120   ;;  %v7762_v9 = vmov 6   ;;  %v7763_v10 = vmov 5  }
 0x258   : > { %v6064_v5 = vpack.c.bf16 %v1288_v3, %v1287_v2  ;;  %v6067_v7 = vpack.c.bf16 %v1290_v6, %v1289_v4  ;;  %v1286_v8 = vld [vmem:[%s1111_s18] sm:$0xff]  ;;  %6862 = vset.pattern.permute.xlu1 %v7762_v9  ;;  %6860 = vset.pattern.permute.xlu0 %v7763_v10  ;;  %v5288_v11 = vld [vmem:[#allocation10] ss:$0 sm:$0xff]  ;;  %v7764_v16 = vmov 2   ;;  %v7765_v17 = vmov 1   ;;  %v1584_v26 = vld [vmem:[#allocation13] sm:$0xff] }
 0x259   : > { %v7766_v18 = vmov 7   ;;  %v7767_v19 = vmov 13   ;;  %v7768_v20 = vmov 3   ;;  %v7769_v21 = vmov 14   ;;  %v1585_v27 = vld [vmem:[#allocation13 + $0x8] sm:$0xff]  ;;  %s7776_s1 = smov 64  }
 0x25a   : > { %6065 = vmatpush3.bf16.msra.mxu1 %v6064_v5  ;;  %v7770_v22 = vmov 9   ;;  %v7771_v23 = vmov 11   ;;  %v7772_v24 = vmov 10   ;;  %v7773_v25 = vmov 0   ;;  %v1532_v35 = vld [vmem:[#allocation11 + $0x80] sm:$0xff]  ;;  %v1533_v36 = vld [vmem:[#allocation11 + $0x88] sm:$0xff] }
 0x25b   : > { %6066 = vmatprep.subr.bf16.mxu1 %v7759_v0  ;;  %v7774_v28 = vmov 15   ;;  %v6070_v29 = vpack.c.bf16 %v1585_v27, %v1584_v26  ;;  %v7775_v30 = vmov 19   ;;  %v7777_v31 = vmov 4   ;;  %v1564_v38 = vld [vmem:[#allocation11 + $0x180] sm:$0xff]  ;;  %v1565_v39 = vld [vmem:[#allocation11 + $0x188] sm:$0xff]  ;;  %v1566_v44 = vld [vmem:[#allocation11 + $0x190] sm:$0xff] }
 0x25c   : > { %v7778_v32 = vmov 12   ;;  %v7779_v33 = vmov 8   ;;  %v7780_v34 = vmov 17   ;;  %v6072_v37 = vpack.c.bf16 %v1533_v36, %v1532_v35  ;;  %v1548_v41 = vld [vmem:[#allocation11 + $0x100] sm:$0xff]  ;;  %v1549_v42 = vld [vmem:[#allocation11 + $0x108] sm:$0xff]  ;;  %v1567_v45 = vld [vmem:[#allocation11 + $0x198] sm:$0xff] }
 0x25d   : > { %v6104_v40 = vpack.c.bf16 %v1565_v39, %v1564_v38  ;;  %v6106_v43 = vpack.c.bf16 %v1549_v42, %v1548_v41  ;;  %v6108_v46 = vpack.c.bf16 %v1567_v45, %v1566_v44  ;;  %v1550_v47 = vld [vmem:[#allocation11 + $0x110] sm:$0xff]  ;;  %v1551_v48 = vld [vmem:[#allocation11 + $0x118] sm:$0xff]  ;;  %v1568_v50 = vld [vmem:[#allocation11 + $0x1a0] sm:$0xff]  ;;  %s7781_s11 = smov 32   ;;  %s7782_s20 = smov 96   ;;  %vm1588_vm2 = vcmask 130048  }
 0x25e   : > { %6068 = vmatpush3.bf16.msra.mxu1 %v6067_v7  ;;  %v6110_v49 = vpack.c.bf16 %v1551_v48, %v1550_v47  ;;  %v1569_v51 = vld [vmem:[#allocation11 + $0x1a8] sm:$0xff]  ;;  %v1552_v55 = vld [vmem:[#allocation11 + $0x120] sm:$0xff]  ;;  %v1570_v58 = vld [vmem:[#allocation11 + $0x1b0] sm:$0xff]  ;;  %s7785_s28 = smov 48   ;;  %vm1503_vm3 = vcmask 523264   ;;  %vm1505_vm4 = vcmask 785408  }
 0x25f   : > { %6069 = vmatprep.subr.bf16.mxu1 %v7759_v0  ;;  %6105 = vmatprep.subr.bf16.mxu0 %v6104_v40  ;;  %v6112_v54 = vpack.c.bf16 %v1569_v51, %v1568_v50  ;;  %v1553_v56 = vld [vmem:[#allocation11 + $0x128] sm:$0xff]  ;;  %v1571_v60 = vld [vmem:[#allocation11 + $0x1b8] sm:$0xff]  ;;  %v1554_v62 = vld [vmem:[#allocation11 + $0x130] sm:$0xff]  ;;  %s9142_s6 = sld [smem:[#allocation47_spill]]  ;;  %s9143_s12 = sld [smem:[#allocation66_spill]]  ;;  %vm3365_vm5 = vcmask 1043456  }
 0x260   : > { %6107 = vmatpush3.bf16.msra.mxu0 %v6106_v43  ;;  %v6114_v57 = vpack.c.bf16 %v1553_v56, %v1552_v55  ;;  %v8481_v59 = vld [vmem:[%s1102_s15] sm:$0xff]  ;;  %v6116_v61 = vpack.c.bf16 %v1571_v60, %v1570_v58  ;;  %v1562_v41 = vld [vmem:[#allocation11 + $0x170] sm:$0xff]  ;;  %s9144_s27 = sld [smem:[#allocation67_spill]]  ;;  %s9145_s10 = sld [smem:[#allocation64_spill]]  ;;  %vm3179_vm6 = vcmask 31744   ;;  %vm3550_vm7 = vcmask 1041409  }
 0x261   : > { %5877 = vmatmul.mubr.msk.f32.vlgmr.msra.gmra.mrb[0].mxu1 %vm1298_vm1, %v1286_v8  ;;  %6109 = vmatprep.subr.bf16.mxu0 %v6108_v46  ;;  %v1555_v4 = vld [vmem:[#allocation11 + $0x138] sm:$0xff]  ;;  %v1572_v9 = vld [vmem:[#allocation11 + $0x1c0] sm:$0xff]  ;;  %v1573_v10 = vld [vmem:[#allocation11 + $0x1c8] sm:$0xff]  ;;  %s9146_s21 = sld [smem:[#allocation62_spill]]  ;;  %s5286_s0 = sshll.u32 %s8019_s2, 3  ;;  %vm3552_vm8 = vcmask 1042434  }
 0x262   : > { %5883 = vmatprep.mubr.msk.f32.mxu1 %vm7760_vm0, %v7761_v1  ;;  %6071 = vmatpush3.bf16.msra.mxu1 %v6070_v29  ;;  %v6118_v8 = vpack.c.bf16 %v1555_v4, %v1554_v62  ;;  %v1576_v27 = vld [vmem:[#allocation11 + $0x1e0] sm:$0xff]  ;;  %v1579_v38 = vld [vmem:[#allocation11 + $0x1f8] sm:$0xff]  ;;  %v1534_v56 = vld [vmem:[#allocation11 + $0x90] sm:$0xff]  ;;  %p8737_p3 = scmp.lt.s32.totalorder %s5286_s0, 15  ;;  %vm3554_vm9 = vcmask 1043459   ;;  %vm3556_vm10 = vcmask 1044484  }
 0x263   : > { %6073 = vmatprep.subr.bf16.mxu1 %v6072_v37  ;;  %v1578_v37 = vld [vmem:[#allocation11 + $0x1f0] sm:$0xff]  ;;  %v1563_v42 = vld [vmem:[#allocation11 + $0x178] sm:$0xff]  ;;  %vm3558_vm11 = vcmask 1045509   ;;  %vm3560_vm12 = vcmask 1046534   ;;  %vm3562_vm13 = vcmask 1047559   ;;  %s4896_s7 = scalar_lea.sflag [#allocation4], %s8396_s4 }
 0x264   : > { %6111 = vmatpush3.bf16.msra.mxu0 %v6110_v49  ;;  %v6132_v40 = vpack.c.bf16 %v1579_v38, %v1578_v37  ;;  %v6134_v45 = vpack.c.bf16 %v1563_v42, %v1562_v41  ;;  %v7788_v37 = vmov 25   ;;  %v1529_v41 = vld [vmem:[#allocation11 + $0x68] sm:$0xff]  ;;  %v1546_v42 = vld [vmem:[#allocation11 + $0xf0] sm:$0xff]  ;;  %s9164_s0 = smov (!%p8737_p3, %s5286_s0), 15  ;;  %p9154_p12 = scmp.ne.s32.totalorder %s9107_s8, 0 }
 0x265   : > { %6113 = vmatprep.subr.bf16.mxu0 %v6112_v54  ;;  %v1517_v54 = vld [vmem:[#allocation11 + $0x8] sm:$0xff]  ;;  %s5287_s18 = sshll.u32 %s9164_s0, 3 }
 0x266   : > { %s8747_s16 = scalar_lea.vmem %s7996_s13, %s5287_s18 }
 0x268   : > { %6115 = vmatpush3.bf16.msra.mxu0 %v6114_v57  ;;  %v1535_v57 = vld [vmem:[#allocation11 + $0x98] sm:$0xff] }
 0x269   : > { %6117 = vmatprep.subr.bf16.mxu0 %v6116_v61 }
 0x26c   : > { %6119 = vmatpush3.bf16.msra.mxu0 %v6118_v8 }
 0x334   : > { %v1368_v12 = vpop.f32.mrb[0].mxu1 }
 0x335   : > { %v1369_v13 = vadd.f32 %v5288_v11, %v1368_v12  ;;  %v5878_v14 = vpop.f32.mrb[1].mxu1 }
 0x336   : > { %v1556_v14 = vld [vmem:[#allocation11 + $0x140] sm:$0xff] }
 0x337   : > { %v8458_v15 = vmax.f32 %v1369_v13, 0.0  ;;  %v6120_v13 = vpack.c.bf16 %v1573_v10, %v1572_v9  ;;  %v7783_v9 = vmov 21   ;;  %v1520_v10 = vld [vmem:[#allocation11 + $0x20] sm:$0xff] }
 0x339   : > { %1405 = vperm.xlu1 %6862, %v8458_v15   ;;  %1400 = vperm.xlu0 %6860, %v8458_v15  }
 0x33a   : > { %6121 = vmatprep.subr.bf16.mxu0 %v6120_v13  ;;  %v1539_v13 = vld [vmem:[#allocation11 + $0xb8] sm:$0xff] }
 0x33d   : > { %6863 = vset.pattern.permute.xlu1 %v7764_v16  ;;  %6861 = vset.pattern.permute.xlu0 %v7765_v17  ;;  %v1557_v16 = vld [vmem:[#allocation11 + $0x148] sm:$0xff] }
 0x33e   : > { %1385 = vperm.xlu1 %6863, %v8458_v15   ;;  %1380 = vperm.xlu0 %6861, %v8458_v15   ;;  %v6122_v17 = vpack.c.bf16 %v1557_v16, %v1556_v14 }
 0x340   : > { %6123 = vmatpush3.bf16.msra.mxu0 %v6122_v17  ;;  %v1522_v17 = vld [vmem:[#allocation11 + $0x30] sm:$0xff] }
 0x342   : > { %6864 = vset.pattern.permute.xlu1 %v7766_v18  ;;  %6865 = vset.pattern.permute.xlu0 %v7767_v19  ;;  %v1574_v19 = vld [vmem:[#allocation11 + $0x1d0] sm:$0xff] }
 0x343   : > { %1410 = vperm.xlu1 %6864, %v8458_v15   ;;  %1440 = vperm.xlu0 %6865, %v8458_v15  }
 0x347   : > { %6866 = vset.pattern.permute.xlu1 %v7768_v20  ;;  %6868 = vset.pattern.permute.xlu0 %v7769_v21  ;;  %v1575_v20 = vld [vmem:[#allocation11 + $0x1d8] sm:$0xff] }
 0x348   : > { %1390 = vperm.xlu1 %6866, %v8458_v15   ;;  %1445 = vperm.xlu0 %6868, %v8458_v15   ;;  %v6124_v21 = vpack.c.bf16 %v1575_v20, %v1574_v19  ;;  %v7784_v19 = vmov 23   ;;  %v1540_v20 = vld [vmem:[#allocation11 + $0xc0] sm:$0xff] }
 0x34a   : > { %6125 = vmatprep.subr.bf16.mxu0 %v6124_v21  ;;  %v1541_v21 = vld [vmem:[#allocation11 + $0xc8] sm:$0xff] }
 0x34c   : > { %6867 = vset.pattern.permute.xlu1 %v7770_v22  ;;  %6871 = vset.pattern.permute.xlu0 %v7771_v23  ;;  %v1558_v22 = vld [vmem:[#allocation11 + $0x150] sm:$0xff]  ;;  %v1559_v23 = vld [vmem:[#allocation11 + $0x158] sm:$0xff] }
 0x34d   : > { %1420 = vperm.xlu1 %6867, %v8458_v15   ;;  %1430 = vperm.xlu0 %6871, %v8458_v15  }
 0x351   : > { %6869 = vset.pattern.permute.xlu1 %v7772_v24  ;;  %6873 = vset.pattern.permute.xlu0 %v7773_v25  ;;  %v6126_v24 = vpack.c.bf16 %v1559_v23, %v1558_v22  ;;  %v7786_v22 = vmov 29  }
 0x352   : > { %1425 = vperm.xlu1 %6869, %v8458_v15   ;;  %1375 = vperm.xlu0 %6873, %v8458_v15  }
 0x353   : > { %6127 = vmatpush3.bf16.msra.mxu0 %v6126_v24  ;;  %v6088_v24 = vpack.c.bf16 %v1541_v21, %v1540_v20 }
 0x356   : > { %6870 = vset.pattern.permute.xlu1 %v7774_v28  ;;  %6906 = vset.pattern.permute.xlu0 %v7775_v30  ;;  %v1577_v28 = vld [vmem:[#allocation11 + $0x1e8] sm:$0xff] }
 0x357   : > { %1450 = vperm.xlu1 %6870, %v8458_v15  }
 0x35b   : > { %1586 = vrot.lane.b32.xlu1 %v8458_v15, %s7776_s1 }
 0x35c   : > { %6872 = vset.pattern.permute.xlu1 %v7777_v31 }
 0x35f   : > { %1395 = vperm.xlu1 %6872, %v8458_v15  }
 0x363   : > { %6874 = vset.pattern.permute.xlu1 %v7778_v32  ;;  %v6128_v32 = vpack.c.bf16 %v1577_v28, %v1576_v27  ;;  %v1525_v27 = vld [vmem:[#allocation11 + $0x48] sm:$0xff]  ;;  %v1542_v28 = vld [vmem:[#allocation11 + $0xd0] sm:$0xff] }
 0x364   : > { %1435 = vperm.xlu1 %6874, %v8458_v15  }
 0x365   : > { %6129 = vmatprep.subr.bf16.mxu0 %v6128_v32 }
 0x368   : > { %6875 = vset.pattern.permute.xlu1 %v7779_v33  ;;  %v1560_v33 = vld [vmem:[#allocation11 + $0x160] sm:$0xff] }
 0x369   : > { %1415 = vperm.xlu1 %6875, %v8458_v15  }
 0x36d   : > { %6907 = vset.pattern.permute.xlu1 %v7780_v34  ;;  %v1561_v34 = vld [vmem:[#allocation11 + $0x168] sm:$0xff] }
 0x36e   : > { %v6130_v35 = vpack.c.bf16 %v1561_v34, %v1560_v33  ;;  %v1526_v33 = vld [vmem:[#allocation11 + $0x50] sm:$0xff]  ;;  %v1527_v34 = vld [vmem:[#allocation11 + $0x58] sm:$0xff] }
 0x36f   : > { %v6094_v38 = vpack.c.bf16 %v1527_v34, %v1526_v33 }
 0x370   : > { %6131 = vmatpush3.bf16.msra.mxu0 %v6130_v35  ;;  %v1544_v35 = vld [vmem:[#allocation11 + $0xe0] sm:$0xff] }
 0x371   : > { %6133 = vmatprep.subr.bf16.mxu0 %v6132_v40  ;;  %v1528_v40 = vld [vmem:[#allocation11 + $0x60] sm:$0xff] }
 0x374   : > { %6135 = vmatpush3.bf16.msra.mxu0 %v6134_v45  ;;  %v7789_v45 = vmov 31  }
 0x375   : > { %6142 = vmatprep.subr.bf16.mxu0 %v7759_v0 }
 0x3b8   : > { %v1406_v52 = vpop.permute.xlu1 %1405  ;;  %v1401_v53 = vpop.permute.xlu0 %1400 }
 0x3b9   : > { %v1408_v63 = vmul.f32 %v1406_v52, %v8481_v59  ;;  %v1403_v5 = vmul.f32 %v1401_v53, %v8481_v59  ;;  %v1516_v53 = vld [vmem:[#allocation11] sm:$0xff] }
 0x3ba   : > { %v6074_v61 = vpack.c.bf16 %v1517_v54, %v1516_v53 }
 0x3bd   : > { %v1386_v2 = vpop.permute.xlu1 %1385  ;;  %v1381_v3 = vpop.permute.xlu0 %1380 }
 0x3be   : > { %v1388_v6 = vmul.f32 %v1386_v2, %v8481_v59  ;;  %v1383_v7 = vmul.f32 %v1381_v3, %v8481_v59  ;;  %v1518_v2 = vld [vmem:[#allocation11 + $0x10] sm:$0xff]  ;;  %v1519_v3 = vld [vmem:[#allocation11 + $0x18] sm:$0xff] }
 0x3c0   : > { %v6881_v11 = vpack.i.bf16 %v1388_v6, %v1408_v63  ;;  %v6876_v12 = vpack.i.bf16 %v1383_v7, %v1403_v5  ;;  %v6076_v63 = vpack.c.bf16 %v1535_v57, %v1534_v56  ;;  %v1536_v5 = vld [vmem:[#allocation11 + $0xa0] sm:$0xff]  ;;  %v1537_v6 = vld [vmem:[#allocation11 + $0xa8] sm:$0xff]  ;;  %v6078_v7 = vpack.c.bf16 %v1519_v3, %v1518_v2 }
 0x3c1   : > { %v6080_v8 = vpack.c.bf16 %v1537_v6, %v1536_v5  ;;  %v1580_v6 = vld [vmem:[#allocation11 + $0x200] sm:$0xff] }
 0x3c2   : > { %v1411_v18 = vpop.permute.xlu1 %1410  ;;  %6882 = vrot.lane.b32.xlu1 %v6881_v11, %s7776_s1  ;;  %6877 = vrot.lane.b32.xlu0 %v6876_v12, %s7781_s11  ;;  %v1441_v30 = vpop.permute.xlu0 %1440  ;;  %v1521_v11 = vld [vmem:[#allocation11 + $0x28] sm:$0xff]  ;;  %v1538_v12 = vld [vmem:[#allocation11 + $0xb0] sm:$0xff] }
 0x3c3   : > { %v1413_v29 = vmul.f32 %v1411_v18, %v8481_v59  ;;  %v1443_v43 = vmul.f32 %v1441_v30, %v8481_v59  ;;  %v6082_v14 = vpack.c.bf16 %v1521_v11, %v1520_v10  ;;  %v6084_v16 = vpack.c.bf16 %v1539_v13, %v1538_v12  ;;  %v1523_v18 = vld [vmem:[#allocation11 + $0x38] sm:$0xff] }
 0x3c4   : > { %v6086_v23 = vpack.c.bf16 %v1523_v18, %v1522_v17  ;;  %v7787_v30 = vmov 27   ;;  %v1582_v17 = vld [vmem:[#allocation11 + $0x210] sm:$0xff]  ;;  %v1583_v18 = vld [vmem:[#allocation11 + $0x218] sm:$0xff] }
 0x3c7   : > { %v1391_v26 = vpop.permute.xlu1 %1390  ;;  %v1446_v46 = vpop.permute.xlu0 %1445 }
 0x3c8   : > { %v1393_v31 = vmul.f32 %v1391_v26, %v8481_v59  ;;  %v1448_v49 = vmul.f32 %v1446_v46, %v8481_v59  ;;  %v1524_v26 = vld [vmem:[#allocation11 + $0x40] sm:$0xff] }
 0x3ca   : > { %v6886_v36 = vpack.i.bf16 %v1393_v31, %v1413_v29  ;;  %v1543_v29 = vld [vmem:[#allocation11 + $0xd8] sm:$0xff]  ;;  %v6090_v31 = vpack.c.bf16 %v1525_v27, %v1524_v26 }
 0x3cb   : > { %v6092_v32 = vpack.c.bf16 %v1543_v29, %v1542_v28  ;;  %v2139_v29 = vld [vmem:[#allocation17] sm:$0xff] }
 0x3cc   : > { %v1421_v39 = vpop.permute.xlu1 %1420  ;;  %6887 = vrot.lane.b32.xlu0 %v6886_v36, %s7782_s20  ;;  %v1431_v51 = vpop.permute.xlu0 %1430  ;;  %v1545_v36 = vld [vmem:[#allocation11 + $0xe8] sm:$0xff] }
 0x3cd   : > { %v1423_v44 = vmul.f32 %v1421_v39, %v8481_v59  ;;  %v1433_v58 = vmul.f32 %v1431_v51, %v8481_v59  ;;  %v6096_v39 = vpack.c.bf16 %v1545_v36, %v1544_v35  ;;  %v7791_v51 = vmov 16  }
 0x3cf   : > { %v6891_v47 = vpack.i.bf16 %v1423_v44, %v1443_v43  ;;  %v1547_v43 = vld [vmem:[#allocation11 + $0xf8] sm:$0xff]  ;;  %v6098_v44 = vpack.c.bf16 %v1529_v41, %v1528_v40 }
 0x3d0   : > { %v6100_v46 = vpack.c.bf16 %v1547_v43, %v1546_v42 }
 0x3d1   : > { %v1426_v48 = vpop.permute.xlu1 %1425  ;;  %6892 = vrot.lane.b32.xlu1 %v6891_v47, %s7781_s11  ;;  %v1530_v47 = vld [vmem:[#allocation11 + $0x70] sm:$0xff] }
 0x3d2   : > { %v1428_v50 = vmul.f32 %v1426_v48, %v8481_v59  ;;  %v1531_v48 = vld [vmem:[#allocation11 + $0x78] sm:$0xff] }
 0x3d4   : > { %v6896_v52 = vpack.i.bf16 %v1428_v50, %v1448_v49  ;;  %v6102_v49 = vpack.c.bf16 %v1531_v48, %v1530_v47  ;;  %v7790_v50 = vmov 18   ;;  %v2019_v47 = vld [vmem:[#allocation16 + $0x80] sm:$0xff]  ;;  %v2020_v48 = vld [vmem:[#allocation16 + $0x88] sm:$0xff] }
 0x3d6   : > { %v1451_v55 = vpop.permute.xlu1 %1450  ;;  %6897 = vrot.lane.b32.xlu0 %v6896_v52, %s7776_s1  ;;  %v7792_v52 = vmov 22  }
 0x3d7   : > { %v1453_v60 = vmul.f32 %v1451_v55, %v8481_v59  ;;  %v1376_v55 = vpop.permute.xlu0 %1375 }
 0x3d9   : > { %v6901_v62 = vpack.i.bf16 %v1433_v58, %v1453_v60 }
 0x3da   : > { %v1587_v4 = vpop.permute.xlu1 %1586  ;;  %1899 = vperm.xlu0 %6906, %v8458_v15  }
 0x3db   : > { %5884 = vmatmul.mubr.msk.f32.vlgmr.msra.gmra.mrb[2].mxu1 %vm1588_vm2, %v1587_v4  ;;  %6902 = vrot.lane.b32.xlu1 %v6901_v62, %s7782_s20  ;;  %v1378_v62 = vmul.f32 %v1376_v55, %v8481_v59 }
 0x3dc   : > { %6075 = vmatpush3.bf16.msra.mxu1 %v6074_v61 }
 0x3dd   : > { %6077 = vmatprep.subr.bf16.mxu1 %v6076_v63 }
 0x3de   : > { %6909 = vset.pattern.permute.xlu0 %v7783_v9  ;;  %v1396_v53 = vpop.permute.xlu1 %1395 }
 0x3df   : > { %1889 = vperm.xlu1 %6907, %v8458_v15   ;;  %1909 = vperm.xlu0 %6909, %v8458_v15   ;;  %v1398_v63 = vmul.f32 %v1396_v53, %v8481_v59  ;;  %v2022_v53 = vld [vmem:[#allocation16 + $0x98] sm:$0xff] }
 0x3e0   : > { %6079 = vmatpush3.bf16.msra.mxu1 %v6078_v7  ;;  %v1581_v7 = vld [vmem:[#allocation11 + $0x208] sm:$0xff] }
 0x3e1   : > { %6081 = vmatprep.subr.bf16.mxu1 %v6080_v8  ;;  %v6137_v13 = vpack.c.bf16 %v1581_v7, %v1580_v6  ;;  %v2052_v6 = vld [vmem:[#allocation16 + $0x188] sm:$0xff] }
 0x3e3   : > { %6908 = vset.pattern.permute.xlu1 %v7784_v19  ;;  %2141 = vrot.lane.b32.xlu0 %v8458_v15, %s7785_s28  ;;  %v1436_v54 = vpop.permute.xlu1 %1435  ;;  %v6140_v19 = vpack.c.bf16 %v1583_v18, %v1582_v17  ;;  %v2027_v17 = vld [vmem:[#allocation16 + $0xc0] sm:$0xff]  ;;  %v2054_v18 = vld [vmem:[#allocation16 + $0x198] sm:$0xff]  ;;  %s9150_s28 = sld [smem:[#allocation68_spill]] }
 0x3e4   : > { %1919 = vperm.xlu1 %6908, %v8458_v15   ;;  %6913 = vset.pattern.permute.xlu0 %v7786_v22  ;;  %v1438_v27 = vmul.f32 %v1436_v54, %v8481_v59 }
 0x3e5   : > { %6083 = vmatpush3.bf16.msra.mxu1 %v6082_v14 }
 0x3e6   : > { %6085 = vmatprep.subr.bf16.mxu1 %v6084_v16 }
 0x3e7   : > { %1949 = vperm.xlu0 %6913, %v8458_v15  }
 0x3e8   : > { %6910 = vset.pattern.permute.xlu1 %v7787_v30  ;;  %v1416_v56 = vpop.permute.xlu1 %1415  ;;  %v2140_v30 = vld [vmem:[#allocation17 + $0x8] sm:$0xff] }
 0x3e9   : > { %1939 = vperm.xlu1 %6910, %v8458_v15   ;;  %6087 = vmatpush3.bf16.msra.mxu1 %v6086_v23  ;;  %v1418_v28 = vmul.f32 %v1416_v56, %v8481_v59  ;;  %v2005_v56 = vld [vmem:[#allocation16 + $0x10] sm:$0xff] }
 0x3ea   : > { %6089 = vmatprep.subr.bf16.mxu1 %v6088_v24 }
 0x3ed   : > { %6911 = vset.pattern.permute.xlu1 %v7788_v37  ;;  %6091 = vmatpush3.bf16.msra.mxu1 %v6090_v31 }
 0x3ee   : > { %1929 = vperm.xlu1 %6911, %v8458_v15   ;;  %6093 = vmatprep.subr.bf16.mxu1 %v6092_v32 }
 0x3f1   : > { %6095 = vmatpush3.bf16.msra.mxu1 %v6094_v38  ;;  %v6143_v38 = vpack.c.bf16 %v2140_v30, %v2139_v29  ;;  %v2039_v30 = vld [vmem:[#allocation16 + $0x120] sm:$0xff] }
 0x3f2   : > { %6912 = vset.pattern.permute.xlu1 %v7789_v45  ;;  %6097 = vmatprep.subr.bf16.mxu1 %v6096_v39  ;;  %v7793_v45 = vmov 26  }
 0x3f3   : > { %1959 = vperm.xlu1 %6912, %v8458_v15  }
 0x3f5   : > { %6099 = vmatpush3.bf16.msra.mxu1 %v6098_v44 }
 0x3f6   : > { %6101 = vmatprep.subr.bf16.mxu1 %v6100_v46  ;;  %v7794_v46 = vmov 20  }
 0x3f7   : > { %6914 = vset.pattern.permute.xlu1 %v7790_v50  ;;  %6922 = vset.pattern.permute.xlu0 %v7794_v46  ;;  %v6145_v50 = vpack.c.bf16 %v2020_v48, %v2019_v47  ;;  %v2031_v46 = vld [vmem:[#allocation16 + $0xe0] sm:$0xff]  ;;  %v2032_v47 = vld [vmem:[#allocation16 + $0xe8] sm:$0xff] }
 0x3f8   : > { %1894 = vperm.xlu1 %6914, %v8458_v15  }
 0x3f9   : > { %6103 = vmatpush3.bf16.msra.mxu1 %v6102_v49  ;;  %v2003_v49 = vld [vmem:[#allocation16] sm:$0xff] }
 0x3fa   : > { %6136 = vmatprep.subr.bf16.mxu1 %v7759_v0 }
 0x3fc   : > { %6915 = vset.pattern.permute.xlu1 %v7791_v51  ;;  %v2004_v51 = vld [vmem:[#allocation16 + $0x8] sm:$0xff] }
 0x3fd   : > { %1884 = vperm.xlu1 %6915, %v8458_v15   ;;  %v6147_v54 = vpack.c.bf16 %v2004_v51, %v2003_v49  ;;  %v6169_v49 = vpack.c.bf16 %v2032_v47, %v2031_v46  ;;  %v2016_v51 = vld [vmem:[#allocation16 + $0x68] sm:$0xff]  ;;  %v2065_v47 = vld [vmem:[#allocation16 + $0x1f0] sm:$0xff] }
 0x401   : > { %6916 = vset.pattern.permute.xlu1 %v7792_v52  ;;  %v2021_v52 = vld [vmem:[#allocation16 + $0x90] sm:$0xff] }
 0x402   : > { %1914 = vperm.xlu1 %6916, %v8458_v15   ;;  %v6149_v55 = vpack.c.bf16 %v2022_v53, %v2021_v52  ;;  %v2033_v52 = vld [vmem:[#allocation16 + $0xf0] sm:$0xff]  ;;  %v2034_v53 = vld [vmem:[#allocation16 + $0xf8] sm:$0xff] }
 0x406   : > { %6928 = vset.pattern.permute.xlu1 %v7793_v45  ;;  %v2014_v45 = vld [vmem:[#allocation16 + $0x58] sm:$0xff] }
 0x434   : > { %v6878_v57 = vpop.permute.xlu0 %6877  ;;  %v6883_v58 = vpop.permute.xlu1 %6882 }
 0x435   : > { %v6880_v60 = vunpack.i.h.bf16 %v6878_v57  ;;  %v6879_v61 = vunpack.i.l.bf16 %v6878_v57  ;;  %v6885_v2 = vunpack.i.h.bf16 %v6883_v58  ;;  %v6884_v3 = vunpack.i.l.bf16 %v6883_v58  ;;  %v2006_v57 = vld [vmem:[#allocation16 + $0x18] sm:$0xff]  ;;  %v2023_v58 = vld [vmem:[#allocation16 + $0xa0] sm:$0xff] }
 0x437   : > { %v1502_v4 = vsel %vm1298_vm1, %v1378_v62, %v6880_v60  ;;  %v1507_v5 = vsel %vm1298_vm1, %v1398_v63, %v6879_v61  ;;  %v2024_v60 = vld [vmem:[#allocation16 + $0xa8] sm:$0xff]  ;;  %v6151_v61 = vpack.c.bf16 %v2006_v57, %v2005_v56  ;;  %v2007_v63 = vld [vmem:[#allocation16 + $0x20] sm:$0xff] }
 0x438   : > { %v1508_v11 = vsel %vm1503_vm3, %v1507_v5, %v6884_v3  ;;  %v1504_v12 = vsel %vm1503_vm3, %v1502_v4, %v6885_v2  ;;  %v6153_v62 = vpack.c.bf16 %v2024_v60, %v2023_v58  ;;  %v2008_v2 = vld [vmem:[#allocation16 + $0x28] sm:$0xff]  ;;  %v2025_v3 = vld [vmem:[#allocation16 + $0xb0] sm:$0xff]  ;;  %v2026_v4 = vld [vmem:[#allocation16 + $0xb8] sm:$0xff] }
 0x439   : > { %v2051_v5 = vld [vmem:[#allocation16 + $0x180] sm:$0xff] }
 0x43a   : > { %v6177_v7 = vpack.c.bf16 %v2052_v6, %v2051_v5  ;;  %v2018_v5 = vld [vmem:[#allocation16 + $0x78] sm:$0xff]  ;;  %v2041_v6 = vld [vmem:[#allocation16 + $0x130] sm:$0xff] }
 0x43e   : > { %v6888_v8 = vpop.permute.xlu0 %6887 }
 0x43f   : > { %v6890_v9 = vunpack.i.h.bf16 %v6888_v8  ;;  %v6889_v10 = vunpack.i.l.bf16 %v6888_v8  ;;  %v2035_v8 = vld [vmem:[#allocation16 + $0x100] sm:$0xff] }
 0x441   : > { %v1509_v14 = vsel %vm1505_vm4, %v1508_v11, %v6889_v10  ;;  %v1506_v16 = vsel %vm1505_vm4, %v1504_v12, %v6890_v9  ;;  %v2036_v9 = vld [vmem:[#allocation16 + $0x108] sm:$0xff]  ;;  %v6155_v10 = vpack.c.bf16 %v2008_v2, %v2007_v63  ;;  %v2009_v11 = vld [vmem:[#allocation16 + $0x30] sm:$0xff] }
 0x442   : > { %1728 = vmatprep.mubr.f32.mxu1 %v1509_v14  ;;  %v6179_v12 = vpack.c.bf16 %v2036_v9, %v2035_v8  ;;  %v6157_v14 = vpack.c.bf16 %v2026_v4, %v2025_v3  ;;  %v2017_v4 = vld [vmem:[#allocation16 + $0x70] sm:$0xff]  ;;  %v2042_v9 = vld [vmem:[#allocation16 + $0x138] sm:$0xff] }
 0x443   : > { %1729 = vmatmul.mubr.f32.vlgmr.msra.gmra.mrb[4].mxu1 %v1506_v16  ;;  %v6893_v20 = vpop.permute.xlu1 %6892  ;;  %v2010_v16 = vld [vmem:[#allocation16 + $0x38] sm:$0xff]  ;;  %v6175_v8 = vpack.c.bf16 %v2018_v5, %v2017_v4 }
 0x444   : > { %6138 = vmatpush3.bf16.msra.mxu1 %v6137_v13  ;;  %5894 = vmatprep.mubr.msk.f32.mxu1 %vm7760_vm0, %v7761_v1  ;;  %v6895_v22 = vunpack.i.h.bf16 %v6893_v20  ;;  %v6894_v23 = vunpack.i.l.bf16 %v6893_v20  ;;  %v2053_v13 = vld [vmem:[#allocation16 + $0x190] sm:$0xff] }
 0x445   : > { %6139 = vmatprep.subr.bf16.mxu1 %v7759_v0  ;;  %v6181_v20 = vpack.c.bf16 %v2054_v18, %v2053_v13 }
 0x446   : > { %v1513_v34 = vsel %vm1298_vm1, %v1438_v27, %v6894_v23  ;;  %v1510_v35 = vsel %vm1298_vm1, %v1418_v28, %v6895_v22  ;;  %v2038_v22 = vld [vmem:[#allocation16 + $0x118] sm:$0xff]  ;;  %v6159_v27 = vpack.c.bf16 %v2010_v16, %v2009_v11  ;;  %v2011_v28 = vld [vmem:[#allocation16 + $0x40] sm:$0xff]  ;;  %v2060_v16 = vld [vmem:[#allocation16 + $0x1c8] sm:$0xff] }
 0x448   : > { %v6898_v21 = vpop.permute.xlu0 %6897  ;;  %6141 = vmatpush3.bf16.msra.mxu1 %v6140_v19  ;;  %v2028_v19 = vld [vmem:[#allocation16 + $0xc8] sm:$0xff] }
 0x449   : > { %v6900_v24 = vunpack.i.h.bf16 %v6898_v21  ;;  %v6899_v26 = vunpack.i.l.bf16 %v6898_v21  ;;  %6178 = vmatprep.subr.bf16.mxu1 %v6177_v7  ;;  %v2037_v21 = vld [vmem:[#allocation16 + $0x110] sm:$0xff] }
 0x44a   : > { %v6183_v23 = vpack.c.bf16 %v2038_v22, %v2037_v21  ;;  %v2043_v21 = vld [vmem:[#allocation16 + $0x140] sm:$0xff]  ;;  %v2044_v22 = vld [vmem:[#allocation16 + $0x148] sm:$0xff] }
 0x44b   : > { %5895 = vmatmul.mubr.msk.f32.vlgmr.msra.gmra.mrb[6].mxu1 %vm1298_vm1, %v8481_v59  ;;  %v1514_v36 = vsel %vm1503_vm3, %v1513_v34, %v6899_v26  ;;  %v1511_v37 = vsel %vm1503_vm3, %v1510_v35, %v6900_v24  ;;  %v2055_v24 = vld [vmem:[#allocation16 + $0x1a0] sm:$0xff]  ;;  %v2056_v26 = vld [vmem:[#allocation16 + $0x1a8] sm:$0xff]  ;;  %v2030_v35 = vld [vmem:[#allocation16 + $0xd8] sm:$0xff] }
 0x44c   : > { %6180 = vmatpush3.bf16.msra.mxu1 %v6179_v12  ;;  %v6185_v29 = vpack.c.bf16 %v2056_v26, %v2055_v24  ;;  %v2040_v34 = vld [vmem:[#allocation16 + $0x128] sm:$0xff]  ;;  %v5292_v12 = vld [vmem:[#allocation14] ss:$0 sm:$0xff]  ;;  %v6195_v24 = vpack.c.bf16 %v2044_v22, %v2043_v21  ;;  %v2061_v26 = vld [vmem:[#allocation16 + $0x1d0] sm:$0xff] }
 0x44d   : > { %v6903_v31 = vpop.permute.xlu1 %6902  ;;  %6182 = vmatprep.subr.bf16.mxu1 %v6181_v20 }
 0x44e   : > { %v6905_v32 = vunpack.i.h.bf16 %v6903_v31  ;;  %v6904_v33 = vunpack.i.l.bf16 %v6903_v31  ;;  %v6161_v31 = vpack.c.bf16 %v2028_v19, %v2027_v17  ;;  %v2084_v19 = vld [vmem:[#allocation16 + $0x288] sm:$0xff] }
 0x450   : > { %v1515_v39 = vsel %vm1505_vm4, %v1514_v36, %v6904_v33  ;;  %v1512_v40 = vsel %vm1505_vm4, %v1511_v37, %v6905_v32  ;;  %v2012_v32 = vld [vmem:[#allocation16 + $0x48] sm:$0xff]  ;;  %v2029_v33 = vld [vmem:[#allocation16 + $0xd0] sm:$0xff]  ;;  %6184 = vmatpush3.bf16.msra.mxu1 %v6183_v23  ;;  %v6187_v36 = vpack.c.bf16 %v2040_v34, %v2039_v30 }
 0x451   : > { %1798 = vmatprep.mubr.f32.mxu0 %v1515_v39  ;;  %v2057_v37 = vld [vmem:[#allocation16 + $0x1b0] sm:$0xff]  ;;  %6186 = vmatprep.subr.bf16.mxu1 %v6185_v29 }
 0x452   : > { %1799 = vmatmul.mubr.f32.vlgmr.msra.gmra.mrb[0].mxu0 %v1512_v40  ;;  %v6163_v40 = vpack.c.bf16 %v2012_v32, %v2011_v28  ;;  %v2045_v29 = vld [vmem:[#allocation16 + $0x150] sm:$0xff] }
 0x453   : > { %6144 = vmatpush3.bf16.msra.mxu0 %v6143_v38  ;;  %5901 = vmatprep.mubr.msk.f32.mxu0 %vm7760_vm0, %v7761_v1  ;;  %v2058_v38 = vld [vmem:[#allocation16 + $0x1b8] sm:$0xff] }
 0x454   : > { %6146 = vmatprep.subr.bf16.mxu0 %v6145_v50  ;;  %v6189_v39 = vpack.c.bf16 %v2058_v38, %v2057_v37  ;;  %6188 = vmatpush3.bf16.msra.mxu1 %v6187_v36  ;;  %v2015_v50 = vld [vmem:[#allocation16 + $0x60] sm:$0xff] }
 0x455   : > { %v2063_v38 = vld [vmem:[#allocation16 + $0x1e0] sm:$0xff] }
 0x456   : > { %6190 = vmatprep.subr.bf16.mxu1 %v6189_v39  ;;  %v2064_v39 = vld [vmem:[#allocation16 + $0x1e8] sm:$0xff] }
 0x457   : > { %v6201_v46 = vpack.c.bf16 %v2064_v39, %v2063_v38  ;;  %v2090_v38 = vld [vmem:[#allocation16 + $0x2b8] sm:$0xff] }
 0x459   : > { %v8539_v59 = vpop.permute.xlu0 %1899 }
 0x45e   : > { %v8541_v41 = vpop.permute.xlu0 %1909  ;;  %v1890_v63 = vpop.permute.xlu1 %1889 }
 0x462   : > { %v2142_v42 = vpop.permute.xlu0 %2141 }
 0x463   : > { %5902 = vmatmul.mubr.msk.f32.vlgmr.msra.gmra.mrb[2].mxu0 %vm1588_vm2, %v2142_v42  ;;  %v6165_v42 = vpack.c.bf16 %v2030_v35, %v2029_v33  ;;  %v1920_v13 = vpop.permute.xlu1 %1919 }
 0x464   : > { %6148 = vmatpush3.bf16.msra.mxu0 %v6147_v54  ;;  %v6171_v54 = vpack.c.bf16 %v2016_v51, %v2015_v50  ;;  %v2049_v51 = vld [vmem:[#allocation16 + $0x170] sm:$0xff] }
 0x465   : > { %6150 = vmatprep.subr.bf16.mxu0 %v6149_v55  ;;  %v6173_v55 = vpack.c.bf16 %v2034_v53, %v2033_v52  ;;  %v2050_v52 = vld [vmem:[#allocation16 + $0x178] sm:$0xff] }
 0x468   : > { %6152 = vmatpush3.bf16.msra.mxu0 %v6151_v61  ;;  %v1940_v32 = vpop.permute.xlu1 %1939 }
 0x469   : > { %6154 = vmatprep.subr.bf16.mxu0 %v6153_v62 }
 0x46c   : > { %6156 = vmatpush3.bf16.msra.mxu0 %v6155_v10  ;;  %v6191_v10 = vpack.c.bf16 %v2042_v9, %v2041_v6  ;;  %v7797_v6 = vmov 28  }
 0x46d   : > { %6158 = vmatprep.subr.bf16.mxu0 %v6157_v14  ;;  %v2059_v14 = vld [vmem:[#allocation16 + $0x1c0] sm:$0xff] }
 0x46e   : > { %6192 = vmatpush3.bf16.msra.mxu1 %v6191_v10  ;;  %v6193_v18 = vpack.c.bf16 %v2060_v16, %v2059_v14 }
 0x470   : > { %6160 = vmatpush3.bf16.msra.mxu0 %v6159_v27  ;;  %6194 = vmatprep.subr.bf16.mxu1 %v6193_v18  ;;  %v2062_v27 = vld [vmem:[#allocation16 + $0x1d8] sm:$0xff] }
 0x471   : > { %6162 = vmatprep.subr.bf16.mxu0 %v6161_v31  ;;  %v6197_v28 = vpack.c.bf16 %v2062_v27, %v2061_v26  ;;  %v2046_v31 = vld [vmem:[#allocation16 + $0x158] sm:$0xff] }
 0x472   : > { %6196 = vmatpush3.bf16.msra.mxu1 %v6195_v24  ;;  %v6199_v33 = vpack.c.bf16 %v2046_v31, %v2045_v29  ;;  %v2086_v18 = vld [vmem:[#allocation16 + $0x298] sm:$0xff]  ;;  %v2087_v31 = vld [vmem:[#allocation16 + $0x2a0] sm:$0xff] }
 0x473   : > { %6198 = vmatprep.subr.bf16.mxu1 %v6197_v28  ;;  %v2069_v28 = vld [vmem:[#allocation16 + $0x210] sm:$0xff]  ;;  %v2070_v29 = vld [vmem:[#allocation16 + $0x218] sm:$0xff] }
 0x474   : > { %6164 = vmatpush3.bf16.msra.mxu0 %v6163_v40  ;;  %v2047_v40 = vld [vmem:[#allocation16 + $0x160] sm:$0xff] }
 0x475   : > { %6166 = vmatprep.subr.bf16.mxu0 %v6165_v42  ;;  %v2048_v42 = vld [vmem:[#allocation16 + $0x168] sm:$0xff] }
 0x476   : > { %6200 = vmatpush3.bf16.msra.mxu1 %v6199_v33  ;;  %v6215_v33 = vpack.c.bf16 %v2070_v29, %v2069_v28 }
 0x477   : > { %6202 = vmatprep.subr.bf16.mxu1 %v6201_v46  ;;  %v2092_v46 = vld [vmem:[#allocation16 + $0x2c8] sm:$0xff] }
 0x4ae   : > { %v8544_v43 = vpop.f32.mrb[2].mxu1 }
 0x4af   : > { %v5885_v44 = vpop.f32.mrb[3].mxu1 }
 0x4b0   : > { %v2013_v44 = vld [vmem:[#allocation16 + $0x50] sm:$0xff] }
 0x4b1   : > { %v6167_v48 = vpack.c.bf16 %v2014_v45, %v2013_v44 }
 0x4b3   : > { %6168 = vmatpush3.bf16.msra.mxu0 %v6167_v48  ;;  %v2066_v48 = vld [vmem:[#allocation16 + $0x1f8] sm:$0xff] }
 0x4b4   : > { %6170 = vmatprep.subr.bf16.mxu0 %v6169_v49  ;;  %v1930_v49 = vpop.permute.xlu1 %1929 }
 0x4b7   : > { %6172 = vmatpush3.bf16.msra.mxu0 %v6171_v54 }
 0x4b8   : > { %6174 = vmatprep.subr.bf16.mxu0 %v6173_v55 }
 0x4bb   : > { %6176 = vmatpush3.bf16.msra.mxu0 %v6175_v8 }
 0x516   : > { %v5388_v56 = vpop.f32.mrb[4].mxu1 }
 0x517   : > { %v5389_v57 = vpop.f32.mrb[5].mxu1 }
 0x518   : > { %v5390_v58 = vadd.f32 %v5389_v57, %v5388_v56  ;;  %v6207_v56 = vpack.c.bf16 %v2050_v52, %v2049_v51  ;;  %v2115_v57 = vld [vmem:[#allocation16 + $0x380] sm:$0xff]  ;;  %v2100_v51 = vld [vmem:[#allocation16 + $0x308] sm:$0xff]  ;;  %v2093_v52 = vld [vmem:[#allocation16 + $0x2d0] sm:$0xff] }
 0x51a   : > { %v1731_v60 = vadd.f32 %v5390_v58, %v8544_v43  ;;  %v2083_v43 = vld [vmem:[#allocation16 + $0x280] sm:$0xff]  ;;  %v2116_v58 = vld [vmem:[#allocation16 + $0x388] sm:$0xff] }
 0x51b   : > { %v6209_v20 = vpack.c.bf16 %v2084_v19, %v2083_v43 }
 0x51d   : > { %6210 = vmatprep.subr.bf16.mxu0 %v6209_v20 }
 0x51e   : > { %v1870_v61 = vpop.f32.mrb[6].mxu1 }
 0x51f   : > { %v5896_v62 = vpop.f32.mrb[7].mxu1 }
 0x520   : > { %v7795_v62 = vmov 24  }
 0x525   : > { %v5423_v2 = vpop.f32.mrb[0].mxu0 }
 0x526   : > { %v5424_v3 = vpop.f32.mrb[1].mxu0 }
 0x527   : > { %v5425_v7 = vadd.f32 %v5424_v3, %v5423_v2  ;;  %v1960_v2 = vpop.permute.xlu1 %1959  ;;  %v7796_v3 = vmov 30  }
 0x529   : > { %v1801_v11 = vadd.f32 %v5425_v7, %v1731_v60 }
 0x52b   : > { %v1871_v17 = vadd.f32 %v1870_v61, %v1801_v11  ;;  %v6241_v61 = vpack.c.bf16 %v2116_v58, %v2115_v57  ;;  %v1895_v8 = vpop.permute.xlu1 %1894  ;;  %v2067_v11 = vld [vmem:[#allocation16 + $0x200] sm:$0xff] }
 0x52d   : > { %v1881_v23 = vadd.f32 %v5292_v12, %v1871_v17  ;;  %v2068_v12 = vld [vmem:[#allocation16 + $0x208] sm:$0xff]  ;;  %v2085_v17 = vld [vmem:[#allocation16 + $0x290] sm:$0xff] }
 0x52e   : > { %v6211_v22 = vpack.c.bf16 %v2068_v12, %v2067_v11  ;;  %v6213_v27 = vpack.c.bf16 %v2086_v18, %v2085_v17  ;;  %v2120_v11 = vld [vmem:[#allocation16 + $0x3a8] sm:$0xff]  ;;  %v2079_v17 = vld [vmem:[#allocation16 + $0x260] sm:$0xff] }
 0x52f   : > { %v8547_v30 = vmax.f32 %v1881_v23, 0.0  ;;  %v1885_v9 = vpop.permute.xlu1 %1884  ;;  %v2080_v18 = vld [vmem:[#allocation16 + $0x268] sm:$0xff] }
 0x530   : > { %v6235_v29 = vpack.c.bf16 %v2080_v18, %v2079_v17  ;;  %v2113_v17 = vld [vmem:[#allocation16 + $0x370] sm:$0xff] }
 0x531   : > { %v1912_v34 = vmul.f32 %v8541_v41, %v8547_v30  ;;  %v1922_v35 = vmul.f32 %v1920_v13, %v8547_v30  ;;  %v1892_v36 = vmul.f32 %v1890_v63, %v8547_v30  ;;  %v1902_v37 = vmul.f32 %v8539_v59, %v8547_v30  ;;  %v1950_v63 = vpop.permute.xlu0 %1949 }
 0x532   : > { %v6203_v41 = vpack.c.bf16 %v2048_v42, %v2047_v40  ;;  %v6205_v59 = vpack.c.bf16 %v2066_v48, %v2065_v47  ;;  %v1932_v54 = vmul.f32 %v1930_v49, %v8547_v30  ;;  %v1942_v55 = vmul.f32 %v1940_v32, %v8547_v30  ;;  %v2088_v32 = vld [vmem:[#allocation16 + $0x2a8] sm:$0xff]  ;;  %v2073_v42 = vld [vmem:[#allocation16 + $0x230] sm:$0xff]  ;;  %v2075_v47 = vld [vmem:[#allocation16 + $0x240] sm:$0xff] }
 0x533   : > { %v6923_v44 = vpack.i.bf16 %v1912_v34, %v1922_v35  ;;  %v6917_v45 = vpack.i.bf16 %v1892_v36, %v1902_v37  ;;  %v1952_v4 = vmul.f32 %v1950_v63, %v8547_v30  ;;  %v1962_v5 = vmul.f32 %v1960_v2, %v8547_v30  ;;  %v1915_v10 = vpop.permute.xlu1 %1914  ;;  %v2071_v35 = vld [vmem:[#allocation16 + $0x220] sm:$0xff]  ;;  %v2072_v36 = vld [vmem:[#allocation16 + $0x228] sm:$0xff]  ;;  %v2089_v37 = vld [vmem:[#allocation16 + $0x2b0] sm:$0xff] }
 0x534   : > { %6204 = vmatpush3.bf16.msra.mxu1 %v6203_v41  ;;  %v6930_v60 = vpack.i.bf16 %v1932_v54, %v1942_v55  ;;  %v1897_v16 = vmul.f32 %v1895_v8, %v8547_v30  ;;  %v1917_v43 = vmul.f32 %v1915_v10, %v8547_v30  ;;  %v6217_v34 = vpack.c.bf16 %v2088_v32, %v2087_v31  ;;  %v2076_v48 = vld [vmem:[#allocation16 + $0x248] sm:$0xff]  ;;  %v2117_v54 = vld [vmem:[#allocation16 + $0x390] sm:$0xff]  ;;  %v2118_v55 = vld [vmem:[#allocation16 + $0x398] sm:$0xff] }
 0x535   : > { %6924 = vrot.lane.b32.xlu1 %v6923_v44, %s7776_s1  ;;  %6918 = vrot.lane.b32.xlu0 %v6917_v45, %s7776_s1  ;;  %v6937_v7 = vpack.i.bf16 %v1952_v4, %v1962_v5  ;;  %v6219_v39 = vpack.c.bf16 %v2072_v36, %v2071_v35  ;;  %v6221_v40 = vpack.c.bf16 %v2090_v38, %v2089_v37  ;;  %v2074_v44 = vld [vmem:[#allocation16 + $0x238] sm:$0xff]  ;;  %v2091_v45 = vld [vmem:[#allocation16 + $0x2c0] sm:$0xff]  ;;  %v2077_v63 = vld [vmem:[#allocation16 + $0x250] sm:$0xff] }
 0x536   : > { %v8557_v50 = vpop.f32.mrb[2].mxu0  ;;  %6206 = vmatprep.subr.bf16.mxu1 %v6205_v59  ;;  %v6223_v41 = vpack.c.bf16 %v2074_v44, %v2073_v42  ;;  %v6225_v49 = vpack.c.bf16 %v2092_v46, %v2091_v45  ;;  %v2099_v59 = vld [vmem:[#allocation16 + $0x300] sm:$0xff]  ;;  %v2078_v2 = vld [vmem:[#allocation16 + $0x258] sm:$0xff]  ;;  %v6245_v4 = vpack.c.bf16 %v2118_v55, %v2117_v54  ;;  %v2101_v5 = vld [vmem:[#allocation16 + $0x310] sm:$0xff] }
 0x537   : > { %v5903_v53 = vpop.f32.mrb[3].mxu0  ;;  %v2119_v10 = vld [vmem:[#allocation16 + $0x3a0] sm:$0xff]  ;;  %v2081_v32 = vld [vmem:[#allocation16 + $0x270] sm:$0xff]  ;;  %v2082_v35 = vld [vmem:[#allocation16 + $0x278] sm:$0xff] }
 0x538   : > { %6208 = vmatpush3.bf16.msra.mxu1 %v6207_v56  ;;  %v2094_v53 = vld [vmem:[#allocation16 + $0x2d8] sm:$0xff]  ;;  %v2105_v36 = vld [vmem:[#allocation16 + $0x330] sm:$0xff]  ;;  %v2123_v38 = vld [vmem:[#allocation16 + $0x3c0] sm:$0xff]  ;;  %v6239_v46 = vpack.c.bf16 %v2082_v35, %v2081_v32 }
 0x539   : > { %1934 = vperm.xlu1 %6928, %v8458_v15   ;;  %1904 = vperm.xlu0 %6922, %v8458_v15   ;;  %v2106_v37 = vld [vmem:[#allocation16 + $0x338] sm:$0xff]  ;;  %v2125_v55 = vld [vmem:[#allocation16 + $0x3d0] sm:$0xff] }
 0x53a   : > { %6242 = vmatprep.subr.bf16.mxu1 %v6241_v61  ;;  %v6227_v61 = vpack.c.bf16 %v2076_v48, %v2075_v47  ;;  %v2107_v47 = vld [vmem:[#allocation16 + $0x340] sm:$0xff] }
 0x53d   : > { %6931 = vrot.lane.b32.xlu1 %v6930_v60, %s7776_s1  ;;  %6929 = vset.pattern.permute.xlu0 %v7795_v62  ;;  %v6243_v62 = vpack.c.bf16 %v2100_v51, %v2099_v59  ;;  %v2131_v59 = vld [vmem:[#allocation16 + $0x400] sm:$0xff]  ;;  %v2132_v51 = vld [vmem:[#allocation16 + $0x408] sm:$0xff] }
 0x53e   : > { %1924 = vperm.xlu0 %6929, %v8458_v15   ;;  %6935 = vset.pattern.permute.xlu1 %v7796_v3  ;;  %v6229_v3 = vpack.c.bf16 %v2094_v53, %v2093_v52 }
 0x541   : > { %1954 = vperm.xlu1 %6935, %v8458_v15  }
 0x542   : > { %6936 = vset.pattern.permute.xlu0 %v7797_v6  ;;  %v2102_v6 = vld [vmem:[#allocation16 + $0x318] sm:$0xff] }
 0x543   : > { %1944 = vperm.xlu0 %6936, %v8458_v15  }
 0x545   : > { %6938 = vrot.lane.b32.xlu1 %v6937_v7, %s7776_s1  ;;  %v2095_v7 = vld [vmem:[#allocation16 + $0x2e0] sm:$0xff] }
 0x547   : > { %6942 = vset.pattern.permute.xlu0 %v7773_v25  ;;  %v1887_v25 = vmul.f32 %v1885_v9, %v8547_v30  ;;  %v2096_v9 = vld [vmem:[#allocation16 + $0x2e8] sm:$0xff] }
 0x5a7   : > { %v8571_v13 = vpop.permute.xlu1 %6924  ;;  %v6919_v14 = vpop.permute.xlu0 %6918 }
 0x5a8   : > { %v6926_v19 = vunpack.i.l.bf16 %v8571_v13  ;;  %v6921_v20 = vunpack.i.h.bf16 %v6919_v14  ;;  %v6920_v21 = vunpack.i.l.bf16 %v6919_v14  ;;  %v6927_v58 = vunpack.i.h.bf16 %v8571_v13 }
 0x5aa   : > { %v1996_v23 = vsel %vm1503_vm3, %v1897_v16, %v6920_v21  ;;  %v1998_v24 = vsel %vm1503_vm3, %v1917_v43, %v6926_v19  ;;  %v1995_v26 = vsel %vm1503_vm3, %v1887_v25, %v6921_v20  ;;  %v6231_v16 = vpack.c.bf16 %v2078_v2, %v2077_v63  ;;  %v2103_v21 = vld [vmem:[#allocation16 + $0x320] sm:$0xff]  ;;  %v2104_v25 = vld [vmem:[#allocation16 + $0x328] sm:$0xff]  ;;  %v2133_v63 = vld [vmem:[#allocation16 + $0x410] sm:$0xff] }
 0x5ab   : > { %2282 = vmatprep.mubr.f32.mxu0 %v1996_v23  ;;  %2352 = vmatprep.mubr.f32.mxu1 %v1998_v24  ;;  %v6247_v43 = vpack.c.bf16 %v2102_v6, %v2101_v5  ;;  %v6233_v19 = vpack.c.bf16 %v2096_v9, %v2095_v7  ;;  %v6249_v20 = vpack.c.bf16 %v2120_v11, %v2119_v10  ;;  %v2098_v24 = vld [vmem:[#allocation16 + $0x2f8] sm:$0xff]  ;;  %v2128_v5 = vld [vmem:[#allocation16 + $0x3e8] sm:$0xff]  ;;  %v2135_v11 = vld [vmem:[#allocation16 + $0x420] sm:$0xff] }
 0x5ac   : > { %2283 = vmatmul.mubr.f32.vlgmr.msra.gmra.mrb[4].mxu0 %v1995_v26  ;;  %v2121_v26 = vld [vmem:[#allocation16 + $0x3b0] sm:$0xff]  ;;  %v6251_v31 = vpack.c.bf16 %v2104_v25, %v2103_v21  ;;  %v2134_v2 = vld [vmem:[#allocation16 + $0x418] sm:$0xff]  ;;  %v2112_v10 = vld [vmem:[#allocation16 + $0x368] sm:$0xff] }
 0x5ad   : > { %6212 = vmatpush3.bf16.msra.mxu0 %v6211_v22  ;;  %v2097_v22 = vld [vmem:[#allocation16 + $0x2f0] sm:$0xff]  ;;  %v6277_v7 = vpack.c.bf16 %v2134_v2, %v2133_v63  ;;  %v2138_v21 = vld [vmem:[#allocation16 + $0x438] sm:$0xff] }
 0x5ae   : > { %6214 = vmatprep.subr.bf16.mxu0 %v6213_v27  ;;  %v2122_v27 = vld [vmem:[#allocation16 + $0x3b8] sm:$0xff] }
 0x5af   : > { %v2616_v63 = vld [vmem:[#allocation29 + $0x8] sm:$0xff] }
 0x5b1   : > { %6216 = vmatpush3.bf16.msra.mxu0 %v6215_v33  ;;  %v6237_v33 = vpack.c.bf16 %v2098_v24, %v2097_v22 }
 0x5b2   : > { %6218 = vmatprep.subr.bf16.mxu0 %v6217_v34  ;;  %v6253_v34 = vpack.c.bf16 %v2122_v27, %v2121_v26 }
 0x5b5   : > { %6220 = vmatpush3.bf16.msra.mxu0 %v6219_v39  ;;  %v2124_v39 = vld [vmem:[#allocation16 + $0x3c8] sm:$0xff] }
 0x5b6   : > { %6222 = vmatprep.subr.bf16.mxu0 %v6221_v40  ;;  %v6257_v48 = vpack.c.bf16 %v2124_v39, %v2123_v38 }
 0x5b8   : > { %v1935_v56 = vpop.permute.xlu1 %1934  ;;  %v1905_v57 = vpop.permute.xlu0 %1904 }
 0x5b9   : > { %v1907_v60 = vmul.f32 %v1905_v57, %v8547_v30  ;;  %6224 = vmatpush3.bf16.msra.mxu0 %v6223_v41  ;;  %v1937_v13 = vmul.f32 %v1935_v56, %v8547_v30  ;;  %v6255_v41 = vpack.c.bf16 %v2106_v37, %v2105_v36  ;;  %v2126_v56 = vld [vmem:[#allocation16 + $0x3d8] sm:$0xff] }
 0x5ba   : > { %6226 = vmatprep.subr.bf16.mxu0 %v6225_v49  ;;  %v2108_v49 = vld [vmem:[#allocation16 + $0x348] sm:$0xff] }
 0x5bb   : > { %v1997_v8 = vsel %vm1503_vm3, %v1907_v60, %v6927_v58  ;;  %v6259_v57 = vpack.c.bf16 %v2108_v49, %v2107_v47  ;;  %v6274_v58 = vpack.c.bf16 %v2132_v51, %v2131_v59  ;;  %v2109_v60 = vld [vmem:[#allocation16 + $0x350] sm:$0xff] }
 0x5bc   : > { %v8583_v12 = vpop.permute.xlu1 %6931  ;;  %2353 = vmatmul.mubr.f32.vlgmr.msra.gmra.mrb[8].mxu1 %v1997_v8  ;;  %v2111_v8 = vld [vmem:[#allocation16 + $0x360] sm:$0xff] }
 0x5bd   : > { %v6933_v14 = vunpack.i.l.bf16 %v8583_v12  ;;  %6228 = vmatpush3.bf16.msra.mxu0 %v6227_v61  ;;  %6244 = vmatpush3.bf16.msra.mxu1 %v6243_v62  ;;  %v1925_v40 = vpop.permute.xlu0 %1924  ;;  %v6934_v52 = vunpack.i.h.bf16 %v8583_v12  ;;  %v6261_v61 = vpack.c.bf16 %v2126_v56, %v2125_v55  ;;  %v2110_v62 = vld [vmem:[#allocation16 + $0x358] sm:$0xff]  ;;  %v2136_v12 = vld [vmem:[#allocation16 + $0x428] sm:$0xff] }
 0x5be   : > { %6230 = vmatprep.subr.bf16.mxu0 %v6229_v3  ;;  %6246 = vmatprep.subr.bf16.mxu1 %v6245_v4  ;;  %v1927_v53 = vmul.f32 %v1925_v40, %v8547_v30  ;;  %v2127_v4 = vld [vmem:[#allocation16 + $0x3e0] sm:$0xff]  ;;  %v6263_v6 = vpack.c.bf16 %v2110_v62, %v2109_v60  ;;  %v3165_v60 = vld [vmem:[%s9142_s6] sm:$0xff]  ;;  %v2615_v62 = vld [vmem:[#allocation29] sm:$0xff]  ;;  %s9151_s6 = sld [smem:[#allocation69_spill]] }
 0x5bf   : > { %v2000_v23 = vsel %vm1503_vm3, %v1937_v13, %v6933_v14  ;;  %v6265_v9 = vpack.c.bf16 %v2128_v5, %v2127_v4  ;;  %v2129_v13 = vld [vmem:[#allocation16 + $0x3f0] sm:$0xff]  ;;  %v2130_v14 = vld [vmem:[#allocation16 + $0x3f8] sm:$0xff]  ;;  %v6286_v2 = vpack.c.bf16 %v2616_v63, %v2615_v62 }
 0x5c0   : > { %v1955_v28 = vpop.permute.xlu1 %1954  ;;  %2422 = vmatprep.mubr.f32.mxu0 %v2000_v23  ;;  %v1999_v3 = vsel %vm1503_vm3, %v1927_v53, %v6934_v52  ;;  %v6269_v18 = vpack.c.bf16 %v2130_v14, %v2129_v13  ;;  %v7799_v53 = vmov 33   ;;  %v2618_v4 = vld [vmem:[#allocation29 + $0x18] sm:$0xff] }
 0x5c1   : > { %6232 = vmatpush3.bf16.msra.mxu0 %v6231_v16  ;;  %6248 = vmatpush3.bf16.msra.mxu1 %v6247_v43  ;;  %v1957_v44 = vmul.f32 %v1955_v28, %v8547_v30  ;;  %v6267_v16 = vpack.c.bf16 %v2112_v10, %v2111_v8  ;;  %v6280_v43 = vpack.c.bf16 %v2136_v12, %v2135_v11  ;;  %v7798_v28 = vmov 37   ;;  %v2693_v8 = vld [vmem:[#allocation31 + $0x8] sm:$0xff]  ;;  %v2607_v11 = vld [vmem:[%s8414_s19] sm:$0xff] }
 0x5c2   : > { %6234 = vmatprep.subr.bf16.mxu0 %v6233_v19  ;;  %6250 = vmatprep.subr.bf16.mxu1 %v6249_v20  ;;  %v2114_v19 = vld [vmem:[#allocation16 + $0x378] sm:$0xff]  ;;  %v2137_v20 = vld [vmem:[#allocation16 + $0x430] sm:$0xff]  ;;  %v1945_v23 = vpop.permute.xlu0 %1944  ;;  %v7802_v10 = vmov 32  }
 0x5c3   : > { %v6271_v25 = vpack.c.bf16 %v2114_v19, %v2113_v17  ;;  %v6283_v22 = vpack.c.bf16 %v2138_v21, %v2137_v20  ;;  %v1947_v26 = vmul.f32 %v1945_v23, %v8547_v30  ;;  %6943 = vset.pattern.permute.xlu1 %v7798_v28  ;;  %v2694_v19 = vld [vmem:[#allocation31 + $0x10] sm:$0xff]  ;;  %v2695_v20 = vld [vmem:[#allocation31 + $0x18] sm:$0xff]  ;;  %v8639_v28 = vld [vmem:[%s8414_s19 + $0x10] sm:$0xff] }
 0x5c4   : > { %v8588_v42 = vpop.permute.xlu1 %6938  ;;  %v3032_v23 = vld [vmem:[%s9145_s10] sm:$0xff] }
 0x5c5   : > { %v6940_v45 = vunpack.i.l.bf16 %v8588_v42  ;;  %6236 = vmatpush3.bf16.msra.mxu0 %v6235_v29  ;;  %6252 = vmatpush3.bf16.msra.mxu1 %v6251_v31  ;;  %v6941_v24 = vunpack.i.h.bf16 %v8588_v42 }
 0x5c6   : > { %6238 = vmatprep.subr.bf16.mxu0 %v6237_v33  ;;  %6254 = vmatprep.subr.bf16.mxu1 %v6253_v34 }
 0x5c7   : > { %v2002_v54 = vsel %vm1503_vm3, %v1957_v44, %v6940_v45  ;;  %v2001_v27 = vsel %vm1503_vm3, %v1947_v26, %v6941_v24  ;;  %v3033_v24 = vld [vmem:[%s9145_s10 + $0x8] sm:$0xff] }
 0x5c8   : > { %2492 = vmatprep.mubr.f32.mxu1 %v2002_v54  ;;  %v6307_v26 = vpack.c.bf16 %v3033_v24, %v3032_v23  ;;  %v2826_v23 = vld [vmem:[%s9146_s21 + $0x8] sm:$0xff] }
 0x5c9   : > { %6240 = vmatpush3.bf16.msra.mxu0 %v6239_v46  ;;  %6256 = vmatpush3.bf16.msra.mxu1 %v6255_v41 }
 0x5ca   : > { %6258 = vmatprep.subr.bf16.mxu1 %v6257_v48  ;;  %6273 = vmatprep.subr.bf16.mxu0 %v7759_v0  ;;  %v5295_v48 = vld [vmem:[#allocation19] ss:$0 sm:$0xff] }
 0x5cc   : > { %2423 = vmatmul.mubr.f32.vlgmr.msra.gmra.mrb[6].mxu0 %v1999_v3  ;;  %v2617_v3 = vld [vmem:[#allocation29 + $0x10] sm:$0xff] }
 0x5cd   : > { %6260 = vmatpush3.bf16.msra.mxu1 %v6259_v57  ;;  %6275 = vmatpush3.bf16.msra.mxu0 %v6274_v58  ;;  %v6289_v5 = vpack.c.bf16 %v2618_v4, %v2617_v3 }
 0x5ce   : > { %6262 = vmatprep.subr.bf16.mxu1 %v6261_v61  ;;  %6276 = vmatprep.subr.bf16.mxu0 %v7759_v0  ;;  %v7800_v61 = vmov 35  }
 0x5cf   : > { %5920 = vmatprep.mubr.msk.f32.mxu0 %vm7760_vm0, %v7761_v1 }
 0x5d1   : > { %6264 = vmatpush3.bf16.msra.mxu1 %v6263_v6  ;;  %6278 = vmatpush3.bf16.msra.mxu0 %v6277_v7  ;;  %v7801_v6 = vmov 42   ;;  %v2692_v7 = vld [vmem:[#allocation31] sm:$0xff] }
 0x5d2   : > { %6266 = vmatprep.subr.bf16.mxu1 %v6265_v9  ;;  %6279 = vmatprep.subr.bf16.mxu0 %v7759_v0  ;;  %v6291_v9 = vpack.c.bf16 %v2693_v8, %v2692_v7 }
 0x5d5   : > { %6268 = vmatpush3.bf16.msra.mxu1 %v6267_v16  ;;  %6281 = vmatpush3.bf16.msra.mxu0 %v6280_v43  ;;  %v5296_v43 = vld [vmem:[%s9143_s12] ss:$0 sm:$0xff]  ;;  %s5344_s12 = sshll.u32 %s8019_s2, 7  ;;  %s7832_s2 = smov [#allocation32]  }
 0x5d6   : > { %6270 = vmatprep.subr.bf16.mxu1 %v6269_v18  ;;  %6282 = vmatprep.subr.bf16.mxu0 %v7759_v0  ;;  %v5297_v18 = vld [vmem:[%s9144_s27] ss:$0 sm:$0xff]  ;;  %s1270_s27 = scalar_lea.vmem [#allocation32], %s8399_s30  ;;  %s7607_s30 = sshll.u32 %s7832_s2, 4  ;;  %s7608_s30 = int_to_ptr.vmem [resolvable:$false] %s7607_s30 }
 0x5d9   : > { %6272 = vmatpush3.bf16.msra.mxu1 %v6271_v25  ;;  %6284 = vmatpush3.bf16.msra.mxu0 %v6283_v22  ;;  %v6295_v22 = vpack.c.bf16 %v2695_v20, %v2694_v19 }
 0x5da   : > { %6285 = vmatprep.subr.bf16.mxu1 %v7759_v0 }
 0x5dc   : > { %2493 = vmatmul.mubr.f32.vlgmr.msra.gmra.mrb[10].mxu1 %v2001_v27  ;;  %5921 = vmatmul.mubr.msk.f32.vlgmr.msra.gmra.mrb[8].mxu0 %vm1503_vm3, %v8547_v30  ;;  %v8636_v27 = vld [vmem:[%s8414_s19 + $0x8] sm:$0xff] }
 0x5dd   : > { %5931 = vmatprep.mubr.msk.f32.mxu1 %vm7760_vm0, %v7761_v1  ;;  %6287 = vmatpush3.bf16.msra.mxu1 %v6286_v2 }
 0x5de   : > { %6288 = vmatprep.subr.bf16.mxu1 %v7759_v0  ;;  %5962 = vmatprep.mubr.msk.f32.mxu0 %vm1298_vm1, %v2607_v11 }
 0x5e1   : > { %6290 = vmatpush3.bf16.msra.mxu1 %v6289_v5 }
 0x5e2   : > { %6292 = vmatprep.subr.bf16.mxu1 %v6291_v9 }
 0x67f   : > { %v5466_v29 = vpop.f32.mrb[4].mxu0 }
 0x680   : > { %v5467_v31 = vpop.f32.mrb[5].mxu0 }
 0x681   : > { %v5468_v32 = vadd.f32 %v5467_v31, %v5466_v29  ;;  %v8646_v29 = vld [vmem:[%s8414_s19 + $0x18] sm:$0xff]  ;;  %v8649_v31 = vld [vmem:[%s8414_s19 + $0x20] sm:$0xff] }
 0x683   : > { %v2285_v33 = vadd.f32 %v5468_v32, %v8557_v50  ;;  %v7064_v50 = vld [vmem:[%s1102_s15] sm:$0xff]  ;;  %s9147_s15 = sld [smem:[#allocation65_spill]] }
 0x684   : > { %v8656_v32 = vld [vmem:[%s8414_s19 + $0x28] sm:$0xff] }
 0x68f   : > { %v5501_v34 = vpop.f32.mrb[8].mxu1 }
 0x690   : > { %v5502_v35 = vpop.f32.mrb[9].mxu1 }
 0x691   : > { %v5503_v36 = vadd.f32 %v5502_v35, %v5501_v34  ;;  %v8666_v34 = vld [vmem:[%s8414_s19 + $0x38] sm:$0xff]  ;;  %v3034_v35 = vld [vmem:[%s9145_s10 + $0x10] sm:$0xff] }
 0x693   : > { %v2355_v37 = vadd.f32 %v5503_v36, %v2285_v33  ;;  %v8659_v33 = vld [vmem:[%s8414_s19 + $0x30] sm:$0xff]  ;;  %v3035_v36 = vld [vmem:[%s9145_s10 + $0x18] sm:$0xff]  ;;  %s9149_s19 = sld [smem:[#allocation63_spill]] }
 0x69f   : > { %v5536_v38 = vpop.f32.mrb[6].mxu0 }
 0x6a0   : > { %v5537_v39 = vpop.f32.mrb[7].mxu0 }
 0x6a1   : > { %v5538_v40 = vadd.f32 %v5537_v39, %v5536_v38  ;;  %v7803_v38 = vmov 1966171168  }
 0x6a2   : > { %v2937_v39 = vunpack.c.l.s4 %v7803_v38 }
 0x6a3   : > { %v2425_v42 = vadd.f32 %v5538_v40, %v2355_v37  ;;  %v6311_v37 = vpack.c.bf16 %v3035_v36, %v3034_v35  ;;  %v2939_v40 = vlaneseq  ;;  %v2828_v35 = vld [vmem:[%s9146_s21 + $0x18] sm:$0xff] }
 0x6af   : > { %v5571_v30 = vpop.f32.mrb[10].mxu1  ;;  %v2564_v44 = vpop.f32.mrb[8].mxu0 }
 0x6b0   : > { %v5572_v45 = vpop.f32.mrb[11].mxu1  ;;  %v5922_v46 = vpop.f32.mrb[9].mxu0 }
 0x6b1   : > { %v5573_v41 = vadd.f32 %v5572_v45, %v5571_v30  ;;  %v2940_v30 = vshrl.u32 %v2939_v40, 7 }
 0x6b3   : > { %v2495_v47 = vadd.f32 %v5573_v41, %v2425_v42  ;;  %v2938_v42 = vunpack.c.0.s8 %v2937_v39 }
 0x6b5   : > { %v2565_v49 = vadd.f32 %v2564_v44, %v2495_v47  ;;  %v2941_v44 = vsub.s32 %v2938_v42, %v2940_v30 }
 0x6b7   : > { %v2575_v59 = vadd.f32 %v5295_v48, %v2565_v49 }
 0x6b9   : > { %v2576_v51 = vadd.f32 %v7064_v50, %v2575_v59  ;;  %v2986_v50 = vsub.s32 0, %v2940_v30 }
 0x6bb   : > { %v2577_v52 = vsel %vm1298_vm1, %v2576_v51, 0.0 }
 0x6bc   : > { %2578 = vadd.xlane.f32.xlu1 %v2577_v52 }
 0x6cd   : > { %3691 = vperm.xlu1 %6943, %v8458_v15  }
 0x6d1   : > { %6944 = vset.pattern.permute.xlu1 %v7799_v53 }
 0x6d2   : > { %3671 = vperm.xlu1 %6944, %v8458_v15  }
 0x749   : > { %v2579_v54 = vpop.xlane.xlu1 %2578 }
 0x74a   : > { %v2581_v55 = vmul.f32 0.03125, %v2579_v54 }
 0x74c   : > { %v2582_v56 = vsub.f32 %v2576_v51, %v2581_v55 }
 0x74e   : > { %v2583_v57 = vmul.f32 %v2582_v56, %v2582_v56 }
 0x750   : > { %v2584_v58 = vsel %vm1298_vm1, %v2583_v57, 0.0 }
 0x751   : > { %2585 = vadd.xlane.f32.xlu0 %v2584_v58 }
 0x767   : > { %3168 = vperm.xlu0 %6942, %v3165_v60  }
 0x76b   : > { %6949 = vset.pattern.permute.xlu0 %v7800_v61 }
 0x76c   : > { %3681 = vperm.xlu0 %6949, %v8458_v15  }
 0x770   : > { %6952 = vset.pattern.permute.xlu0 %v7801_v6 }
 0x771   : > { %3716 = vperm.xlu0 %6952, %v8458_v15  }
 0x775   : > { %3875 = vrot.lane.b32.xlu0 %v8458_v15, %s7781_s11 }
 0x776   : > { %6956 = vset.pattern.permute.xlu0 %v7802_v10 }
 0x779   : > { %3666 = vperm.xlu0 %6956, %v8458_v15  }
 0x7de   : > { %v2586_v12 = vpop.xlane.xlu0 %2585 }
 0x7df   : > { %v2587_v13 = vmul.f32 0.03125, %v2586_v12 }
 0x7e1   : > { %v2588_v14 = vadd.f32 1e-05, %v2587_v13 }
 0x7e3   : > { %7026 = vrsqrt.f32 %v2588_v14 }
 0x7ed   : > { %v7027_v16 = vpop.eup %7026 }
 0x7ee   : > { %v2590_v17 = vmul.f32 %v7027_v16, %v2582_v56 }
 0x7f0   : > { %v2598_v21 = vmul.f32 %v5296_v43, %v2590_v17 }
 0x7f2   : > { %v8628_v25 = vadd.f32 %v5297_v18, %v2598_v21 }
 0x7f4   : > { %5932 = vmatmul.mubr.msk.f32.vlgmr.msra.gmra.mrb[12].mxu1 %vm1298_vm1, %v8628_v25 }
 0x7f5   : > { %6294 = vmatpush3.bf16.msra.mxu1 %v6291_v9  ;;  %5942 = vmatprep.mubr.msk.f32.mxu1 %vm1298_vm1, %v2607_v11 }
 0x7f6   : > { %6296 = vmatprep.subr.bf16.mxu1 %v6295_v22 }
 0x7f9   : > { %6298 = vmatpush3.bf16.msra.mxu1 %v6295_v22  ;;  %v2825_v22 = vld [vmem:[%s9146_s21] sm:$0xff] }
 0x7fa   : > { %6308 = vmatprep.subr.bf16.mxu1 %v6307_v26  ;;  %v6299_v24 = vpack.c.bf16 %v2826_v23, %v2825_v22 }
 0x7fc   : > { %5943 = vmatmul.mubr.msk.f32.vlgmr.msra.gmra.mrb[14].mxu1 %vm1298_vm1, %v8636_v27  ;;  %6300 = vmatprep.subr.bf16.mxu0 %v6299_v24 }
 0x7fd   : > { %5945 = vmatprep.mubr.msk.f32.mxu1 %vm1298_vm1, %v8639_v28  ;;  %6310 = vmatpush3.bf16.msra.mxu1 %v6307_v26  ;;  %v2827_v26 = vld [vmem:[%s9146_s21 + $0x10] sm:$0xff] }
 0x7fe   : > { %6312 = vmatprep.subr.bf16.mxu1 %v6311_v37  ;;  %6302 = vmatpush3.bf16.msra.mxu0 %v6299_v24  ;;  %v6303_v36 = vpack.c.bf16 %v2828_v35, %v2827_v26 }
 0x800   : > { %5946 = vmatmul.mubr.msk.f32.gmra.mrb[16].mxu1 %vm1298_vm1, %v8646_v29  ;;  %6304 = vmatprep.subr.bf16.mxu0 %v6303_v36 }
 0x801   : > { %5948 = vmatprep.mubr.msk.f32.mxu1 %vm1298_vm1, %v8649_v31  ;;  %6314 = vmatpush3.bf16.msra.mxu1 %v6311_v37  ;;  %v3340_v37 = vld [vmem:[%s9147_s15] sm:$0xf]  ;;  %s4914_s15 = sshll.u32 %s1270_s27, 4  ;;  %s8974_s15 = int_to_ptr.vmem [resolvable:$true] %s4914_s15 }
 0x802   : > { %6315 = vmatprep.subr.bf16.mxu1 %v7759_v0  ;;  %6306 = vmatpush3.bf16.msra.mxu0 %v6303_v36  ;;  %s7603_s18 = scalar_lea.vmem %s8974_s15, 128  ;;  %p7610_p1 = scmp.lt.s32.totalorder %s8974_s15, %s7608_s30 }
 0x803   : > { %5994 = vmatprep.subr.msk.mxu0 %vm3365_vm5, %v3340_v37  ;;  %p7604_p10 = scmp.ne.s32.totalorder %s8974_s15, %s7603_s18 }
 0x804   : > { %5949 = vmatmul.mubr.msk.f32.gmra.mrb[18].mxu1 %vm1298_vm1, %v8656_v32 }
 0x805   : > { %5951 = vmatprep.mubr.msk.f32.mxu1 %vm1298_vm1, %v8659_v33  ;;  %5963 = vmatmul.mubr.msk.f32.vlgmr.msra.gmra.mrb[10].mxu0 %vm1298_vm1, %v8636_v27  ;;  %v3169_v27 = vpop.permute.xlu0 %3168  ;;  %p7605_p8 = pnand %p7604_p10, %p9154_p12 }
 0x806   : > { %5965 = vmatprep.mubr.msk.f32.mxu0 %vm1298_vm1, %v8639_v28  ;;  %5995 = vmatpush3.msk.msra.mxu0 %vm3365_vm5, %v3340_v37 }
 0x807   : > { %p7606_p11 = pneg %p7605_p8 }
 0x808   : > { %5952 = vmatmul.mubr.msk.f32.gmra.mrb[20].mxu1 %vm1298_vm1, %v8666_v34 }
 0x809   : > { %5966 = vmatmul.mubr.msk.f32.gmra.mrb[12].mxu0 %vm1298_vm1, %v8646_v29 }
 0x80a   : > { %5968 = vmatprep.mubr.msk.f32.mxu0 %vm1298_vm1, %v8649_v31 }
 0x80d   : > { %5969 = vmatmul.mubr.msk.f32.gmra.mrb[14].mxu0 %vm1298_vm1, %v8656_v32 }
 0x80e   : > { %5971 = vmatprep.mubr.msk.f32.mxu0 %vm1298_vm1, %v8659_v33 }
 0x811   : > { %5972 = vmatmul.mubr.msk.f32.gmra.mrb[16].mxu0 %vm1298_vm1, %v8666_v34 }
 0x8c7   : > { %v2688_v45 = vpop.f32.mrb[12].mxu1 }
 0x8c8   : > { %v2935_v46 = vcombine.high %v2688_v45, %v2688_v45  ;;  %v2942_v41 = vrot.slane %v2688_v45, %v2941_v44  ;;  %v5933_v47 = vpop.f32.mrb[13].mxu1 }
 0x8ca   : > { %v2949_v48 = vrot.slane %v2935_v46, %v2941_v44  ;;  %v2950_v49 = vcombine.high %v2942_v41, %v2942_v41  ;;  %v2958_v59 = vrot.slane %v2942_v41, %v2941_v44 }
 0x8cc   : > { %v2972_v51 = vrot.slane %v2950_v49, %v2941_v44  ;;  %v2951_v52 = vcombine.high %v2949_v48, %v2949_v48  ;;  %v2987_v56 = vrot.slane %v2958_v59, %v2986_v50  ;;  %v2980_v57 = vcombine.high %v2958_v59, %v2958_v59 }
 0x8cd   : > { %v2965_v4 = vrot.slane %v2949_v48, %v2941_v44 }
 0x8ce   : > { %v2991_v53 = vrot.slane %v2972_v51, %v2986_v50  ;;  %v2982_v54 = vcombine.high %v2972_v51, %v2972_v51  ;;  %v2979_v63 = vrot.slane %v2951_v52, %v2941_v44  ;;  %v2995_v3 = vrot.slane %v2980_v57, %v2986_v50 }
 0x8cf   : > { %v5944_v55 = vpop.f32.mrb[14].mxu1  ;;  %v3003_v11 = vrot.slane %v2965_v4, %v2986_v50  ;;  %v2981_v12 = vcombine.high %v2965_v4, %v2965_v4 }
 0x8d0   : > { %v3025_v58 = vmul.f32 %v5944_v55, %v2991_v53  ;;  %v2786_v60 = vpop.f32.mrb[15].mxu1  ;;  %v2999_v61 = vrot.slane %v2982_v54, %v2986_v50  ;;  %v3007_v8 = vrot.slane %v2979_v63, %v2986_v50  ;;  %v2983_v9 = vcombine.high %v2979_v63, %v2979_v63 }
 0x8d1   : > { %v3024_v62 = vmul.f32 %v2987_v56, %v2786_v60  ;;  %v3011_v18 = vrot.slane %v2981_v12, %v2986_v50 }
 0x8d2   : > { %v3015_v43 = vrot.slane %v2983_v9, %v2986_v50 }
 0x8d3   : > { %v5947_v2 = vpop.f32.mrb[16].mxu1  ;;  %5982 = vmatprep.mubr.msk.f32.mxu1 %vm1298_vm1, %v3024_v62 }
 0x8d4   : > { %v3027_v5 = vmul.f32 %v5947_v2, %v2999_v61  ;;  %v2796_v6 = vpop.f32.mrb[17].mxu1  ;;  %5983 = vmatmul.mubr.msk.f32.vlgmr.msra.gmra.mrb[22].mxu1 %vm1298_vm1, %v3025_v58 }
 0x8d5   : > { %v3026_v7 = vmul.f32 %v2995_v3, %v2796_v6 }
 0x8d7   : > { %v5950_v10 = vpop.f32.mrb[18].mxu1  ;;  %5985 = vmatprep.mubr.msk.f32.mxu1 %vm1298_vm1, %v3026_v7 }
 0x8d8   : > { %v3029_v13 = vmul.f32 %v5950_v10, %v3007_v8  ;;  %v2806_v14 = vpop.f32.mrb[19].mxu1  ;;  %5986 = vmatmul.mubr.msk.f32.gmra.mrb[24].mxu1 %vm1298_vm1, %v3027_v5 }
 0x8d9   : > { %v3028_v16 = vmul.f32 %v3003_v11, %v2806_v14 }
 0x8db   : > { %v5953_v17 = vpop.f32.mrb[20].mxu1  ;;  %5988 = vmatprep.mubr.msk.f32.mxu1 %vm1298_vm1, %v3028_v16 }
 0x8dc   : > { %v3031_v19 = vmul.f32 %v5953_v17, %v3015_v43  ;;  %v2816_v20 = vpop.f32.mrb[21].mxu1  ;;  %5989 = vmatmul.mubr.msk.f32.gmra.mrb[26].mxu1 %vm1298_vm1, %v3029_v13 }
 0x8dd   : > { %v3030_v21 = vmul.f32 %v3011_v18, %v2816_v20 }
 0x8df   : > { %5991 = vmatprep.mubr.msk.f32.mxu1 %vm1298_vm1, %v3030_v21 }
 0x8e0   : > { %5992 = vmatmul.mubr.msk.f32.gmra.mrb[28].mxu1 %vm1298_vm1, %v3031_v19 }
 0x8e1   : > { %6016 = vmatprep.mubr.msk.f32.mxu1 %vm7760_vm0, %v7761_v1 }
 0x9a7   : > { %v5984_v28 = vpop.f32.mrb[22].mxu1 }
 0x9a8   : > { %v3172_v29 = vadd.f32 %v5984_v28, %v3169_v27  ;;  %v3126_v38 = vpop.f32.mrb[23].mxu1 }
 0x9a9   : > { %v3171_v39 = vadd.f32 %v3169_v27, %v3126_v38 }
 0x9aa   : > { %v3187_v31 = vsel %vm3179_vm6, %v3172_v29, -inf }
 0x9ab   : > { %v3188_v40 = vrot.slane %v3187_v31, 4  ;;  %v3180_v32 = vsel %vm3179_vm6, %v3171_v39, -inf  ;;  %v5987_v42 = vpop.f32.mrb[24].mxu1 }
 0x9ac   : > { %v3181_v33 = vrot.slane %v3180_v32, 4  ;;  %v3174_v30 = vadd.f32 %v5987_v42, %v3169_v27  ;;  %v3136_v44 = vpop.f32.mrb[25].mxu1 }
 0x9ad   : > { %v3189_v34 = vmax.f32 %v3187_v31, %v3188_v40  ;;  %v3173_v45 = vadd.f32 %v3169_v27, %v3136_v44 }
 0x9ae   : > { %v3182_v46 = vmax.f32 %v3180_v32, %v3181_v33  ;;  %v3201_v41 = vsel %vm3179_vm6, %v3174_v30, -inf }
 0x9af   : > { %v3190_v47 = vrot.slane %v3189_v34, 2  ;;  %v3202_v48 = vrot.slane %v3201_v41, 4  ;;  %v3194_v49 = vsel %vm3179_vm6, %v3173_v45, -inf  ;;  %v5990_v59 = vpop.f32.mrb[26].mxu1 }
 0x9b0   : > { %v3183_v50 = vrot.slane %v3182_v46, 2  ;;  %v3195_v51 = vrot.slane %v3194_v49, 4  ;;  %v3176_v52 = vadd.f32 %v5990_v59, %v3169_v27  ;;  %v3146_v53 = vpop.f32.mrb[27].mxu1 }
 0x9b1   : > { %v3191_v54 = vmax.f32 %v3189_v34, %v3190_v47  ;;  %v3203_v55 = vmax.f32 %v3201_v41, %v3202_v48  ;;  %v3175_v56 = vadd.f32 %v3169_v27, %v3146_v53 }
 0x9b2   : > { %v3184_v57 = vmax.f32 %v3182_v46, %v3183_v50  ;;  %v3196_v58 = vmax.f32 %v3194_v49, %v3195_v51  ;;  %v3215_v60 = vsel %vm3179_vm6, %v3176_v52, -inf }
 0x9b3   : > { %v3192_v61 = vrot.slane %v3191_v54, 1  ;;  %v3204_v62 = vrot.slane %v3203_v55, 2  ;;  %v3216_v63 = vrot.slane %v3215_v60, 4  ;;  %v3208_v2 = vsel %vm3179_vm6, %v3175_v56, -inf  ;;  %v5993_v3 = vpop.f32.mrb[28].mxu1 }
 0x9b4   : > { %v3185_v4 = vrot.slane %v3184_v57, 1  ;;  %v3197_v5 = vrot.slane %v3196_v58, 2  ;;  %v3209_v6 = vrot.slane %v3208_v2, 4  ;;  %v3178_v7 = vadd.f32 %v5993_v3, %v3169_v27  ;;  %v3156_v8 = vpop.f32.mrb[29].mxu1 }
 0x9b5   : > { %v3193_v9 = vmax.f32 %v3191_v54, %v3192_v61  ;;  %v3205_v10 = vmax.f32 %v3203_v55, %v3204_v62  ;;  %v3217_v11 = vmax.f32 %v3215_v60, %v3216_v63  ;;  %v3177_v12 = vadd.f32 %v3169_v27, %v3156_v8 }
 0x9b6   : > { %v3186_v13 = vmax.f32 %v3184_v57, %v3185_v4  ;;  %v3198_v14 = vmax.f32 %v3196_v58, %v3197_v5  ;;  %v3210_v16 = vmax.f32 %v3208_v2, %v3209_v6  ;;  %v3229_v43 = vsel %vm3179_vm6, %v3178_v7, -inf }
 0x9b7   : > { %v3237_v17 = vsub.f32 %v3172_v29, %v3193_v9  ;;  %v3206_v18 = vrot.slane %v3205_v10, 1  ;;  %v3218_v19 = vrot.slane %v3217_v11, 2  ;;  %v3230_v20 = vrot.slane %v3229_v43, 4 }
 0x9b8   : > { %v3236_v21 = vsub.f32 %v3171_v39, %v3186_v13  ;;  %v3199_v22 = vrot.slane %v3198_v14, 1  ;;  %v3211_v23 = vrot.slane %v3210_v16, 2  ;;  %v3222_v24 = vsel %vm3179_vm6, %v3177_v12, -inf }
 0x9b9   : > { %v3246_v26 = vmul.f32 1.442695, %v3237_v17  ;;  %v3207_v35 = vmax.f32 %v3205_v10, %v3206_v18  ;;  %v3219_v36 = vmax.f32 %v3217_v11, %v3218_v19  ;;  %v3231_v37 = vmax.f32 %v3229_v43, %v3230_v20 }
 0x9ba   : > { %v3244_v28 = vmul.f32 1.442695, %v3236_v21  ;;  %v3200_v27 = vmax.f32 %v3198_v14, %v3199_v22  ;;  %v3212_v38 = vmax.f32 %v3210_v16, %v3211_v23  ;;  %v3223_v31 = vrot.slane %v3222_v24, 4 }
 0x9bb   : > { %7028 = vpow2.f32 %v3246_v26  ;;  %v3239_v40 = vsub.f32 %v3174_v30, %v3207_v35  ;;  %v3220_v32 = vrot.slane %v3219_v36, 1  ;;  %v3232_v29 = vrot.slane %v3231_v37, 2 }
 0x9bc   : > { %7030 = vpow2.f32 %v3244_v28  ;;  %v3238_v42 = vsub.f32 %v3173_v45, %v3200_v27  ;;  %v3213_v33 = vrot.slane %v3212_v38, 1  ;;  %v3224_v39 = vmax.f32 %v3222_v24, %v3223_v31 }
 0x9bd   : > { %v3250_v44 = vmul.f32 1.442695, %v3239_v40  ;;  %v3221_v34 = vmax.f32 %v3219_v36, %v3220_v32  ;;  %v3233_v46 = vmax.f32 %v3231_v37, %v3232_v29 }
 0x9be   : > { %v3248_v41 = vmul.f32 1.442695, %v3238_v42  ;;  %v3214_v47 = vmax.f32 %v3212_v38, %v3213_v33  ;;  %v3225_v48 = vrot.slane %v3224_v39, 2 }
 0x9bf   : > { %7032 = vpow2.f32 %v3250_v44  ;;  %v3241_v49 = vsub.f32 %v3176_v52, %v3221_v34  ;;  %v3234_v59 = vrot.slane %v3233_v46, 1 }
 0x9c0   : > { %7034 = vpow2.f32 %v3248_v41  ;;  %v3240_v50 = vsub.f32 %v3175_v56, %v3214_v47  ;;  %v3226_v51 = vmax.f32 %v3224_v39, %v3225_v48 }
 0x9c1   : > { %v3254_v53 = vmul.f32 1.442695, %v3241_v49  ;;  %v3235_v30 = vmax.f32 %v3233_v46, %v3234_v59 }
 0x9c2   : > { %v3252_v54 = vmul.f32 1.442695, %v3240_v50  ;;  %v3227_v55 = vrot.slane %v3226_v51, 1 }
 0x9c3   : > { %7036 = vpow2.f32 %v3254_v53  ;;  %v3243_v45 = vsub.f32 %v3178_v7, %v3235_v30 }
 0x9c4   : > { %7038 = vpow2.f32 %v3252_v54  ;;  %v3228_v57 = vmax.f32 %v3226_v51, %v3227_v55 }
 0x9c5   : > { %v8710_v58 = vpop.eup %7028  ;;  %v3258_v60 = vmul.f32 1.442695, %v3243_v45 }
 0x9c6   : > { %v8712_v61 = vpop.eup %7030  ;;  %v3267_v52 = vsel %vm3179_vm6, %v8710_v58, 0.0  ;;  %v3242_v62 = vsub.f32 %v3177_v12, %v3228_v57 }
 0x9c7   : > { %v3268_v63 = vrot.slane %v3267_v52, 4  ;;  %v3260_v56 = vsel %vm3179_vm6, %v8712_v61, 0.0  ;;  %7040 = vpow2.f32 %v3258_v60 }
 0x9c8   : > { %v3261_v2 = vrot.slane %v3260_v56, 4  ;;  %v3256_v3 = vmul.f32 1.442695, %v3242_v62 }
 0x9c9   : > { %v8718_v4 = vpop.eup %7032  ;;  %v3269_v5 = vadd.f32 %v3268_v63, %v3267_v52 }
 0x9ca   : > { %v8720_v6 = vpop.eup %7034  ;;  %v3262_v7 = vadd.f32 %v3261_v2, %v3260_v56  ;;  %v3281_v8 = vsel %vm3179_vm6, %v8718_v4, 0.0  ;;  %7042 = vpow2.f32 %v3256_v3 }
 0x9cb   : > { %v3270_v9 = vrot.slane %v3269_v5, 2  ;;  %v3282_v10 = vrot.slane %v3281_v8, 4  ;;  %v3274_v11 = vsel %vm3179_vm6, %v8720_v6, 0.0 }
 0x9cc   : > { %v3263_v12 = vrot.slane %v3262_v7, 2  ;;  %v3275_v13 = vrot.slane %v3274_v11, 4 }
 0x9cd   : > { %v8726_v14 = vpop.eup %7036  ;;  %v3271_v16 = vadd.f32 %v3270_v9, %v3269_v5  ;;  %v3283_v43 = vadd.f32 %v3282_v10, %v3281_v8 }
 0x9ce   : > { %v8728_v17 = vpop.eup %7038  ;;  %v3264_v18 = vadd.f32 %v3263_v12, %v3262_v7  ;;  %v3276_v19 = vadd.f32 %v3275_v13, %v3274_v11  ;;  %v3295_v20 = vsel %vm3179_vm6, %v8726_v14, 0.0 }
 0x9cf   : > { %v3272_v21 = vrot.slane %v3271_v16, 1  ;;  %v3284_v22 = vrot.slane %v3283_v43, 2  ;;  %v3296_v23 = vrot.slane %v3295_v20, 4  ;;  %v3288_v24 = vsel %vm3179_vm6, %v8728_v17, 0.0 }
 0x9d0   : > { %v3265_v26 = vrot.slane %v3264_v18, 1  ;;  %v3277_v35 = vrot.slane %v3276_v19, 2  ;;  %v3289_v36 = vrot.slane %v3288_v24, 4 }
 0x9d1   : > { %v8735_v37 = vpop.eup %7040  ;;  %v3273_v28 = vadd.f32 %v3272_v21, %v3271_v16  ;;  %v3285_v27 = vadd.f32 %v3284_v22, %v3283_v43  ;;  %v3297_v38 = vadd.f32 %v3296_v23, %v3295_v20 }
 0x9d2   : > { %v3278_v31 = vadd.f32 %v3277_v35, %v3276_v19  ;;  %v3290_v40 = vadd.f32 %v3289_v36, %v3288_v24  ;;  %v3309_v32 = vsel %vm3179_vm6, %v8735_v37, 0.0  ;;  %v3266_v29 = vadd.f32 %v3265_v26, %v3264_v18  ;;  %v3538_v35 = vld [vmem:[%s9149_s19] sm:$0xff]  ;;  %v3539_v36 = vld [vmem:[%s9149_s19 + $0x8] sm:$0xff] }
 0x9d3   : > { %7044 = vrcp.f32 %v3273_v28  ;;  %v3286_v42 = vrot.slane %v3285_v27, 1  ;;  %v3298_v33 = vrot.slane %v3297_v38, 2  ;;  %v3310_v39 = vrot.slane %v3309_v32, 4  ;;  %v3540_v28 = vld [vmem:[%s9149_s19 + $0x10] sm:$0xff] }
 0x9d4   : > { %v7043_v44 = vpop.eup %7042  ;;  %v3279_v34 = vrot.slane %v3278_v31, 1  ;;  %v3291_v46 = vrot.slane %v3290_v40, 2  ;;  %7046 = vrcp.f32 %v3266_v29 }
 0x9d5   : > { %v3299_v41 = vadd.f32 %v3298_v33, %v3297_v38  ;;  %v3311_v47 = vadd.f32 %v3310_v39, %v3309_v32  ;;  %v3302_v48 = vsel %vm3179_vm6, %v7043_v44, 0.0  ;;  %v3287_v49 = vadd.f32 %v3286_v42, %v3285_v27  ;;  %v3541_v27 = vld [vmem:[%s9149_s19 + $0x18] sm:$0xff] }
 0x9d6   : > { %v3292_v59 = vadd.f32 %v3291_v46, %v3290_v40  ;;  %v3303_v50 = vrot.slane %v3302_v48, 4  ;;  %v3280_v51 = vadd.f32 %v3279_v34, %v3278_v31  ;;  %v6319_v38 = vpack.c.bf16 %v3541_v27, %v3540_v28 }
 0x9d7   : > { %v3300_v53 = vrot.slane %v3299_v41, 1  ;;  %v3312_v30 = vrot.slane %v3311_v47, 2  ;;  %7048 = vrcp.f32 %v3287_v49 }
 0x9d8   : > { %v3293_v54 = vrot.slane %v3292_v59, 1  ;;  %v3304_v55 = vadd.f32 %v3303_v50, %v3302_v48  ;;  %7050 = vrcp.f32 %v3280_v51 }
 0x9d9   : > { %v3313_v45 = vadd.f32 %v3312_v30, %v3311_v47  ;;  %v3301_v57 = vadd.f32 %v3300_v53, %v3299_v41 }
 0x9da   : > { %v3305_v60 = vrot.slane %v3304_v55, 2  ;;  %v3294_v52 = vadd.f32 %v3293_v54, %v3292_v59 }
 0x9db   : > { %v3314_v62 = vrot.slane %v3313_v45, 1  ;;  %7052 = vrcp.f32 %v3301_v57 }
 0x9dc   : > { %v3306_v63 = vadd.f32 %v3305_v60, %v3304_v55  ;;  %7054 = vrcp.f32 %v3294_v52 }
 0x9dd   : > { %v7045_v56 = vpop.eup %7044  ;;  %v3315_v2 = vadd.f32 %v3314_v62, %v3313_v45 }
 0x9de   : > { %v7047_v3 = vpop.eup %7046  ;;  %v3319_v5 = vmul.f32 %v7045_v56, %v8710_v58  ;;  %v3307_v7 = vrot.slane %v3306_v63, 1 }
 0x9df   : > { %v3317_v8 = vmul.f32 %v7047_v3, %v8712_v61  ;;  %7056 = vrcp.f32 %v3315_v2 }
 0x9e0   : > { %3333 = vst.msk [vmem:[%s8747_s16 + $0x8] sm:$0xff] %vm3179_vm6, %v3319_v5  ;;  %v3308_v9 = vadd.f32 %v3307_v7, %v3306_v63 }
 0x9e1   : > { %v7049_v10 = vpop.eup %7048  ;;  %3332 = vst.msk [vmem:[%s8747_s16] sm:$0xff] %vm3179_vm6, %v3317_v8  ;;  %5996 = vmatprep.mubr.msk.f32.mxu0 %vm3179_vm6, %v3317_v8 }
 0x9e2   : > { %v7051_v11 = vpop.eup %7050  ;;  %5997 = vmatmul.mubr.msk.f32.vlgmr.msra.gmra.mrb[18].mxu0 %vm3179_vm6, %v3319_v5  ;;  %v3323_v58 = vmul.f32 %v7049_v10, %v8718_v4  ;;  %7058 = vrcp.f32 %v3308_v9 }
 0x9e3   : > { %v3321_v12 = vmul.f32 %v7051_v11, %v8720_v6 }
 0x9e4   : > { %3335 = vst.msk [vmem:[%s8747_s16 + $0x18] sm:$0xff] %vm3179_vm6, %v3323_v58 }
 0x9e5   : > { %v7053_v61 = vpop.eup %7052  ;;  %3334 = vst.msk [vmem:[%s8747_s16 + $0x10] sm:$0xff] %vm3179_vm6, %v3321_v12  ;;  %5999 = vmatprep.mubr.msk.f32.mxu0 %vm3179_vm6, %v3321_v12 }
 0x9e6   : > { %v7055_v13 = vpop.eup %7054  ;;  %6000 = vmatmul.mubr.msk.f32.gmra.mrb[20].mxu0 %vm3179_vm6, %v3323_v58  ;;  %v3327_v16 = vmul.f32 %v7053_v61, %v8726_v14  ;;  %v5964_v14 = vpop.f32.mrb[10].mxu0 }
 0x9e7   : > { %v3325_v43 = vmul.f32 %v7055_v13, %v8728_v17  ;;  %v2895_v17 = vpop.f32.mrb[11].mxu0 }
 0x9e8   : > { %3337 = vst.msk [vmem:[%s8747_s16 + $0x28] sm:$0xff] %vm3179_vm6, %v3327_v16  ;;  %v5967_v20 = vpop.f32.mrb[12].mxu0 }
 0x9e9   : > { %v7057_v4 = vpop.eup %7056  ;;  %3336 = vst.msk [vmem:[%s8747_s16 + $0x20] sm:$0xff] %vm3179_vm6, %v3325_v43  ;;  %6002 = vmatprep.mubr.msk.f32.mxu0 %vm3179_vm6, %v3325_v43  ;;  %v2905_v21 = vpop.f32.mrb[13].mxu0 }
 0x9ea   : > { %6003 = vmatmul.mubr.msk.f32.gmra.mrb[22].mxu0 %vm3179_vm6, %v3327_v16  ;;  %v3331_v6 = vmul.f32 %v7057_v4, %v8735_v37  ;;  %v5970_v22 = vpop.f32.mrb[14].mxu0  ;;  %v6316_v37 = vpack.c.bf16 %v3539_v36, %v3538_v35 }
 0x9eb   : > { %v2915_v23 = vpop.f32.mrb[15].mxu0 }
 0x9ec   : > { %v7059_v18 = vpop.eup %7058  ;;  %3339 = vst.msk [vmem:[%s8747_s16 + $0x38] sm:$0xff] %vm3179_vm6, %v3331_v6  ;;  %v5973_v24 = vpop.f32.mrb[16].mxu0  ;;  %6317 = vmatpush3.bf16.msra.mxu1 %v6316_v37 }
 0x9ed   : > { %v3329_v19 = vmul.f32 %v7059_v18, %v7043_v44  ;;  %v2925_v26 = vpop.f32.mrb[17].mxu0  ;;  %6318 = vmatprep.subr.bf16.mxu1 %v7759_v0 }
 0x9ef   : > { %3338 = vst.msk [vmem:[%s8747_s16 + $0x30] sm:$0xff] %vm3179_vm6, %v3329_v19  ;;  %6005 = vmatprep.mubr.msk.f32.mxu0 %vm3179_vm6, %v3329_v19  ;;  %s7609_s16 = scalar_lea.vmem %s7608_s30, 256 }
 0x9f0   : > { %6006 = vmatmul.mubr.msk.f32.gmra.mrb[24].mxu0 %vm3179_vm6, %v3331_v6  ;;  %6320 = vmatpush3.bf16.msra.mxu1 %v6319_v38  ;;  %p7611_p5 = scmp.lt.s32.totalorder %s7609_s16, %s7603_s18 }
 0x9f1   : > { %6321 = vmatprep.subr.bf16.mxu1 %v7759_v0 }
 0x9f2   : > { %p7612_p7 = por %p7611_p5, %p7610_p1 }
 0x9f4   : > { %p7613_p13 = pnand %p7612_p7, %p7606_p11 }
 0xab5   : > { %v5998_v31 = vpop.f32.mrb[18].mxu0 }
 0xab6   : > { %v3475_v40 = vmul.f32 %v5998_v31, %v5964_v14  ;;  %v3435_v32 = vpop.f32.mrb[19].mxu0 }
 0xab7   : > { %v3474_v29 = vmul.f32 %v3435_v32, %v2895_v17 }
 0xab8   : > { %v3489_v42 = vsel %vm1298_vm1, %v3475_v40, 0.0 }
 0xab9   : > { %v3490_v33 = vrot.slane %v3489_v42, 4  ;;  %v3482_v39 = vsel %vm1298_vm1, %v3474_v29, 0.0  ;;  %v6001_v44 = vpop.f32.mrb[20].mxu0 }
 0xaba   : > { %v3483_v34 = vrot.slane %v3482_v39, 4  ;;  %v3477_v46 = vmul.f32 %v6001_v44, %v5967_v20  ;;  %v3445_v41 = vpop.f32.mrb[21].mxu0 }
 0xabb   : > { %v3491_v47 = vadd.f32 %v3490_v33, %v3489_v42  ;;  %v3476_v48 = vmul.f32 %v3445_v41, %v2905_v21 }
 0xabc   : > { %v3484_v49 = vadd.f32 %v3483_v34, %v3482_v39  ;;  %v3503_v59 = vsel %vm1298_vm1, %v3477_v46, 0.0  ;;  %v8794_v34 = vpop.permute.xlu0 %3681 }
 0xabd   : > { %v3492_v50 = vrot.slane %v3491_v47, 2  ;;  %v3504_v51 = vrot.slane %v3503_v59, 4  ;;  %v3496_v53 = vsel %vm1298_vm1, %v3476_v48, 0.0  ;;  %v6004_v30 = vpop.f32.mrb[22].mxu0 }
 0xabe   : > { %v3485_v54 = vrot.slane %v3484_v49, 2  ;;  %v3497_v55 = vrot.slane %v3496_v53, 4  ;;  %v3479_v45 = vmul.f32 %v6004_v30, %v5970_v22  ;;  %v3455_v57 = vpop.f32.mrb[23].mxu0 }
 0xabf   : > { %v3493_v60 = vadd.f32 %v3492_v50, %v3491_v47  ;;  %v3505_v52 = vadd.f32 %v3504_v51, %v3503_v59  ;;  %v3478_v62 = vmul.f32 %v3455_v57, %v2915_v23  ;;  %v3873_v51 = vld [vmem:[#allocation22] sm:$0xff] }
 0xac0   : > { %v3486_v63 = vadd.f32 %v3485_v54, %v3484_v49  ;;  %v3498_v56 = vadd.f32 %v3497_v55, %v3496_v53  ;;  %v3517_v2 = vsel %vm1298_vm1, %v3479_v45, 0.0  ;;  %v3874_v53 = vld [vmem:[#allocation22 + $0x8] sm:$0xff]  ;;  %v8796_v54 = vpop.permute.xlu0 %3716 }
 0xac1   : > { %v3494_v3 = vrot.slane %v3493_v60, 1  ;;  %v3506_v5 = vrot.slane %v3505_v52, 2  ;;  %v3518_v7 = vrot.slane %v3517_v2, 4  ;;  %v3510_v8 = vsel %vm1298_vm1, %v3478_v62, 0.0 }
 0xac2   : > { %v3487_v9 = vrot.slane %v3486_v63, 1  ;;  %v3499_v10 = vrot.slane %v3498_v56, 2  ;;  %v3511_v11 = vrot.slane %v3510_v8, 4  ;;  %v6322_v45 = vpack.c.bf16 %v3874_v53, %v3873_v51  ;;  %v3839_v53 = vld [vmem:[#allocation20 + $0x110] sm:$0xff] }
 0xac3   : > { %v3495_v58 = vadd.f32 %v3494_v3, %v3493_v60  ;;  %v3507_v12 = vadd.f32 %v3506_v5, %v3505_v52  ;;  %v3519_v61 = vadd.f32 %v3518_v7, %v3517_v2  ;;  %v6007_v13 = vpop.f32.mrb[24].mxu0  ;;  %v7804_v62 = vmov 38  }
 0xac4   : > { %v3488_v16 = vadd.f32 %v3487_v9, %v3486_v63  ;;  %v3500_v43 = vadd.f32 %v3499_v10, %v3498_v56  ;;  %v3512_v4 = vadd.f32 %v3511_v11, %v3510_v8  ;;  %v3481_v6 = vmul.f32 %v6007_v13, %v5973_v24  ;;  %v3465_v18 = vpop.f32.mrb[25].mxu0  ;;  %v3876_v52 = vpop.permute.xlu0 %3875  ;;  %6945 = vset.pattern.permute.xlu1 %v7804_v62  ;;  %v3858_v62 = vld [vmem:[#allocation20 + $0x1a8] sm:$0xff] }
 0xac5   : > { %v3508_v19 = vrot.slane %v3507_v12, 1  ;;  %v3520_v14 = vrot.slane %v3519_v61, 2  ;;  %v3480_v17 = vmul.f32 %v3465_v18, %v2925_v26  ;;  %v7805_v8 = vmov 34  }
 0xac6   : > { %v3551_v20 = vsel %vm3550_vm7, %v3495_v58, %v3488_v16  ;;  %v3501_v21 = vrot.slane %v3500_v43, 1  ;;  %v3513_v22 = vrot.slane %v3512_v4, 2  ;;  %v3531_v23 = vsel %vm1298_vm1, %v3481_v6, 0.0 }
 0xac7   : > { %v3521_v35 = vadd.f32 %v3520_v14, %v3519_v61  ;;  %v3532_v36 = vrot.slane %v3531_v23, 4  ;;  %v3524_v37 = vsel %vm1298_vm1, %v3480_v17, 0.0  ;;  %v3509_v31 = vadd.f32 %v3508_v19, %v3507_v12  ;;  %v8813_v61 = vpop.permute.xlu1 %3691 }
 0xac8   : > { %v3502_v28 = vadd.f32 %v3501_v21, %v3500_v43  ;;  %v3514_v27 = vadd.f32 %v3513_v22, %v3512_v4  ;;  %v3525_v38 = vrot.slane %v3524_v37, 4  ;;  %v7806_v9 = vmov 39   ;;  %v3821_v22 = vld [vmem:[#allocation20 + $0x80] sm:$0xff] }
 0xac9   : > { %v3522_v24 = vrot.slane %v3521_v35, 1  ;;  %v3533_v40 = vadd.f32 %v3532_v36, %v3531_v23  ;;  %v7807_v10 = vmov 45   ;;  %v7809_v11 = vmov 46   ;;  %v3822_v23 = vld [vmem:[#allocation20 + $0x88] sm:$0xff] }
 0xaca   : > { %v3553_v32 = vsel %vm3552_vm8, %v3502_v28, %v3551_v20  ;;  %v3515_v29 = vrot.slane %v3514_v27, 1  ;;  %v3526_v26 = vadd.f32 %v3525_v38, %v3524_v37  ;;  %v7810_v58 = vmov 47   ;;  %v3806_v37 = vld [vmem:[#allocation20 + $0x8] sm:$0xff]  ;;  %v3823_v28 = vld [vmem:[#allocation20 + $0x90] sm:$0xff] }
 0xacb   : > { %v3555_v42 = vsel %vm3554_vm9, %v3509_v31, %v3553_v32  ;;  %v3534_v33 = vrot.slane %v3533_v40, 2  ;;  %v3523_v46 = vadd.f32 %v3522_v24, %v3521_v35  ;;  %v7811_v12 = vmov 43   ;;  %v8815_v13 = vpop.permute.xlu1 %3671  ;;  %v3805_v35 = vld [vmem:[#allocation20] sm:$0xff]  ;;  %v3807_v24 = vld [vmem:[#allocation20 + $0x10] sm:$0xff] }
 0xacc   : > { %v3516_v39 = vadd.f32 %v3515_v29, %v3514_v27  ;;  %v3527_v44 = vrot.slane %v3526_v26, 2  ;;  %v7812_v19 = vmov 36   ;;  %v7813_v14 = vmov 44   ;;  %v3824_v27 = vld [vmem:[#allocation20 + $0x98] sm:$0xff]  ;;  %v3853_v32 = vld [vmem:[#allocation20 + $0x180] sm:$0xff]  ;;  %v3854_v29 = vld [vmem:[#allocation20 + $0x188] sm:$0xff] }
 0xacd   : > { %v3535_v41 = vadd.f32 %v3534_v33, %v3533_v40  ;;  %v7814_v17 = vmov 40   ;;  %v7815_v20 = vmov 51   ;;  %v7816_v21 = vmov 49   ;;  %v3808_v40 = vld [vmem:[#allocation20 + $0x18] sm:$0xff] }
 0xace   : > { %v3557_v47 = vsel %vm3556_vm10, %v3516_v39, %v3555_v42  ;;  %v3528_v48 = vadd.f32 %v3527_v44, %v3526_v26  ;;  %6989 = vset.pattern.permute.xlu0 %v7815_v20  ;;  %v6324_v36 = vpack.c.bf16 %v3822_v23, %v3821_v22  ;;  %v6326_v38 = vpack.c.bf16 %v3806_v37, %v3805_v35  ;;  %v3837_v26 = vld [vmem:[#allocation20 + $0x100] sm:$0xff]  ;;  %v3838_v42 = vld [vmem:[#allocation20 + $0x108] sm:$0xff]  ;;  %v3831_v22 = vld [vmem:[#allocation20 + $0xd0] sm:$0xff] }
 0xacf   : > { %v3536_v49 = vrot.slane %v3535_v41, 1  ;;  %v3559_v59 = vsel %vm3558_vm11, %v3523_v46, %v3557_v47  ;;  %v6328_v31 = vpack.c.bf16 %v3824_v27, %v3823_v28  ;;  %v6330_v33 = vpack.c.bf16 %v3808_v40, %v3807_v24  ;;  %v3825_v46 = vld [vmem:[#allocation20 + $0xa0] sm:$0xff]  ;;  %v3862_v20 = vld [vmem:[#allocation20 + $0x1c8] sm:$0xff]  ;;  %v3832_v23 = vld [vmem:[#allocation20 + $0xd8] sm:$0xff] }
 0xad0   : > { %v3529_v50 = vrot.slane %v3528_v48, 1  ;;  %6325 = vmatprep.subr.bf16.mxu0 %v6324_v36  ;;  %v6356_v39 = vpack.c.bf16 %v3854_v29, %v3853_v32  ;;  %v6358_v44 = vpack.c.bf16 %v3838_v42, %v3837_v26  ;;  %v3809_v47 = vld [vmem:[#allocation20 + $0x20] sm:$0xff]  ;;  %v3846_v27 = vld [vmem:[#allocation20 + $0x148] sm:$0xff]  ;;  %v3816_v24 = vld [vmem:[#allocation20 + $0x58] sm:$0xff] }
 0xad1   : > { %v3537_v55 = vadd.f32 %v3536_v49, %v3535_v41  ;;  %6327 = vmatpush3.bf16.msra.mxu0 %v6326_v38  ;;  %v3826_v41 = vld [vmem:[#allocation20 + $0xa8] sm:$0xff]  ;;  %v3845_v28 = vld [vmem:[#allocation20 + $0x140] sm:$0xff]  ;;  %v6344_v38 = vpack.c.bf16 %v3832_v23, %v3831_v22  ;;  %v3868_v23 = vld [vmem:[#allocation20 + $0x1f8] sm:$0xff] }
 0xad2   : > { %v3530_v30 = vadd.f32 %v3529_v50, %v3528_v48  ;;  %6329 = vmatprep.subr.bf16.mxu0 %v6328_v31  ;;  %v6332_v48 = vpack.c.bf16 %v3826_v41, %v3825_v46  ;;  %v3810_v49 = vld [vmem:[#allocation20 + $0x28] sm:$0xff]  ;;  %v3856_v50 = vld [vmem:[#allocation20 + $0x198] sm:$0xff]  ;;  %v3815_v31 = vld [vmem:[#allocation20 + $0x50] sm:$0xff]  ;;  %v6374_v29 = vpack.c.bf16 %v3846_v27, %v3845_v28 }
 0xad3   : > { %v3833_v40 = vld [vmem:[#allocation20 + $0xe0] sm:$0xff]  ;;  %v3834_v32 = vld [vmem:[#allocation20 + $0xe8] sm:$0xff]  ;;  %v6346_v42 = vpack.c.bf16 %v3816_v24, %v3815_v31 }
 0xad4   : > { %v3561_v57 = vsel %vm3560_vm12, %v3530_v30, %v3559_v59  ;;  %v3855_v59 = vld [vmem:[#allocation20 + $0x190] sm:$0xff]  ;;  %v3840_v30 = vld [vmem:[#allocation20 + $0x118] sm:$0xff] }
 0xad5   : > { %v3563_v60 = vsel %vm3562_vm13, %v3537_v55, %v3561_v57  ;;  %v6360_v51 = vpack.c.bf16 %v3856_v50, %v3855_v59  ;;  %v3827_v55 = vld [vmem:[#allocation20 + $0xb0] sm:$0xff]  ;;  %v3828_v57 = vld [vmem:[#allocation20 + $0xb8] sm:$0xff]  ;;  %6331 = vmatpush3.bf16.msra.mxu0 %v6330_v33  ;;  %v6348_v33 = vpack.c.bf16 %v3834_v32, %v3833_v40  ;;  %v3817_v50 = vld [vmem:[#allocation20 + $0x60] sm:$0xff] }
 0xad6   : > { %6017 = vmatmul.mubr.msk.f32.vlgmr.msra.gmra.mrb[30].mxu1 %vm1298_vm1, %v3563_v60  ;;  %v6334_v60 = vpack.c.bf16 %v3810_v49, %v3809_v47  ;;  %6333 = vmatprep.subr.bf16.mxu0 %v6332_v48 }
 0xad7   : > { %6323 = vmatpush3.bf16.msra.mxu1 %v6322_v45  ;;  %6023 = vmatprep.mubr.msk.f32.mxu1 %vm7760_vm0, %v7761_v1  ;;  %v6362_v45 = vpack.c.bf16 %v3840_v30, %v3839_v53  ;;  %v5333_v30 = vld [vmem:[%s9150_s28] ss:$0 sm:$0xff] }
 0xad8   : > { %6357 = vmatprep.subr.bf16.mxu1 %v6356_v39 }
 0xad9   : > { %6335 = vmatpush3.bf16.msra.mxu0 %v6334_v60 }
 0xada   : > { %6024 = vmatmul.mubr.msk.f32.vlgmr.msra.gmra.mrb[32].mxu1 %vm1588_vm2, %v3876_v52  ;;  %v3857_v52 = vld [vmem:[#allocation20 + $0x1a0] sm:$0xff] }
 0xadb   : > { %6359 = vmatpush3.bf16.msra.mxu1 %v6358_v44 }
 0xadc   : > { %6361 = vmatprep.subr.bf16.mxu1 %v6360_v51  ;;  %v3818_v51 = vld [vmem:[#allocation20 + $0x68] sm:$0xff] }
 0xadf   : > { %6363 = vmatpush3.bf16.msra.mxu1 %v6362_v45  ;;  %v3863_v45 = vld [vmem:[#allocation20 + $0x1d0] sm:$0xff] }
 0xba9   : > { %v3632_v63 = vpop.f32.mrb[30].mxu1 }
 0xbaa   : > { %v3633_v56 = vadd.f32 %v3632_v63, %v8628_v25  ;;  %v6018_v2 = vpop.f32.mrb[31].mxu1  ;;  %v7808_v25 = vmov 41   ;;  %v3841_v63 = vld [vmem:[#allocation20 + $0x120] sm:$0xff] }
 0xbab   : > { %v3811_v2 = vld [vmem:[#allocation20 + $0x30] sm:$0xff] }
 0xbac   : > { %v3636_v3 = vsel %vm1298_vm1, %v3633_v56, 0.0 }
 0xbad   : > { %3637 = vadd.xlane.f32.xlu1 %v3636_v3  ;;  %v8804_v5 = vpop.f32.mrb[32].mxu1  ;;  %v3812_v3 = vld [vmem:[#allocation20 + $0x38] sm:$0xff] }
 0xbae   : > { %v6025_v7 = vpop.f32.mrb[33].mxu1 }
 0xbaf   : > { %v6364_v7 = vpack.c.bf16 %v3858_v62, %v3857_v52  ;;  %v3847_v62 = vld [vmem:[#allocation20 + $0x150] sm:$0xff] }
 0xbb1   : > { %6365 = vmatprep.subr.bf16.mxu1 %v6364_v7  ;;  %v3836_v7 = vld [vmem:[#allocation20 + $0xf8] sm:$0xff] }
 0xbbe   : > { %3696 = vperm.xlu1 %6945, %v8458_v15  }
 0xbc2   : > { %6946 = vset.pattern.permute.xlu1 %v7805_v8  ;;  %v3842_v8 = vld [vmem:[#allocation20 + $0x128] sm:$0xff] }
 0xbc3   : > { %3676 = vperm.xlu1 %6946, %v8458_v15  }
 0xbc7   : > { %6947 = vset.pattern.permute.xlu1 %v7806_v9  ;;  %v3829_v9 = vld [vmem:[#allocation20 + $0xc0] sm:$0xff] }
 0xbc8   : > { %3701 = vperm.xlu1 %6947, %v8458_v15  }
 0xbcc   : > { %6948 = vset.pattern.permute.xlu1 %v7807_v10  ;;  %v3830_v10 = vld [vmem:[#allocation20 + $0xc8] sm:$0xff] }
 0xbcd   : > { %3731 = vperm.xlu1 %6948, %v8458_v15  }
 0xbd1   : > { %6950 = vset.pattern.permute.xlu1 %v7808_v25  ;;  %v3859_v25 = vld [vmem:[#allocation20 + $0x1b0] sm:$0xff] }
 0xbd2   : > { %3711 = vperm.xlu1 %6950, %v8458_v15  }
 0xbd6   : > { %6951 = vset.pattern.permute.xlu1 %v7809_v11  ;;  %v6366_v11 = vpack.c.bf16 %v3842_v8, %v3841_v63  ;;  %v3848_v63 = vld [vmem:[#allocation20 + $0x158] sm:$0xff] }
 0xbd7   : > { %3736 = vperm.xlu1 %6951, %v8458_v15  }
 0xbd8   : > { %6367 = vmatpush3.bf16.msra.mxu1 %v6366_v11 }
 0xbdb   : > { %6953 = vset.pattern.permute.xlu1 %v7810_v58  ;;  %v3860_v58 = vld [vmem:[#allocation20 + $0x1b8] sm:$0xff] }
 0xbdc   : > { %3741 = vperm.xlu1 %6953, %v8458_v15  }
 0xbe0   : > { %6954 = vset.pattern.permute.xlu1 %v7811_v12  ;;  %v6338_v12 = vpack.c.bf16 %v3812_v3, %v3811_v2  ;;  %v6378_v2 = vpack.c.bf16 %v3848_v63, %v3847_v62  ;;  %v3835_v3 = vld [vmem:[#allocation20 + $0xf0] sm:$0xff] }
 0xc3a   : > { %v3638_v16 = vpop.xlane.xlu1 %3637 }
 0xc3b   : > { %v3639_v43 = vmul.f32 0.03125, %v3638_v16  ;;  %v3813_v16 = vld [vmem:[#allocation20 + $0x40] sm:$0xff] }
 0xc3d   : > { %v8817_v4 = vsub.f32 %v3633_v56, %v3639_v43  ;;  %v6336_v56 = vpack.c.bf16 %v3828_v57, %v3827_v55  ;;  %v6368_v43 = vpack.c.bf16 %v3860_v58, %v3859_v25  ;;  %v6350_v55 = vpack.c.bf16 %v3818_v51, %v3817_v50  ;;  %v3864_v57 = vld [vmem:[#allocation20 + $0x1d8] sm:$0xff]  ;;  %v3865_v58 = vld [vmem:[#allocation20 + $0x1e0] sm:$0xff] }
 0xc3e   : > { %v6376_v52 = vpack.c.bf16 %v3864_v57, %v3863_v45  ;;  %v3820_v25 = vld [vmem:[#allocation20 + $0x78] sm:$0xff]  ;;  %v7826_v50 = vmov 54  }
 0xc3f   : > { %v3641_v6 = vmul.f32 %v8817_v4, %v8817_v4  ;;  %6337 = vmatprep.subr.bf16.mxu0 %v6336_v56  ;;  %6369 = vmatprep.subr.bf16.mxu1 %v6368_v43  ;;  %v5334_v56 = vld [vmem:[%s9151_s6] ss:$0 sm:$0xff]  ;;  %v3849_v43 = vld [vmem:[#allocation20 + $0x160] sm:$0xff] }
 0xc40   : > { %6339 = vmatpush3.bf16.msra.mxu0 %v6338_v12  ;;  %v3866_v12 = vld [vmem:[#allocation20 + $0x1e8] sm:$0xff] }
 0xc41   : > { %v3642_v18 = vsel %vm1298_vm1, %v3641_v6, 0.0  ;;  %v3843_v6 = vld [vmem:[#allocation20 + $0x130] sm:$0xff] }
 0xc42   : > { %3643 = vadd.xlane.f32.xlu1 %v3642_v18  ;;  %v3844_v18 = vld [vmem:[#allocation20 + $0x138] sm:$0xff] }
 0xc43   : > { %v6370_v35 = vpack.c.bf16 %v3844_v18, %v3843_v6  ;;  %v3850_v6 = vld [vmem:[#allocation20 + $0x168] sm:$0xff] }
 0xc44   : > { %v6382_v18 = vpack.c.bf16 %v3850_v6, %v3849_v43 }
 0xc45   : > { %6371 = vmatpush3.bf16.msra.mxu1 %v6370_v35  ;;  %v3851_v35 = vld [vmem:[#allocation20 + $0x170] sm:$0xff] }
 0xc53   : > { %3721 = vperm.xlu1 %6954, %v8458_v15  }
 0xc57   : > { %6955 = vset.pattern.permute.xlu1 %v7812_v19  ;;  %v6340_v19 = vpack.c.bf16 %v3830_v10, %v3829_v9  ;;  %v6352_v9 = vpack.c.bf16 %v3836_v7, %v3835_v3  ;;  %v3819_v10 = vld [vmem:[#allocation20 + $0x70] sm:$0xff]  ;;  %v3869_v3 = vld [vmem:[#allocation20 + $0x200] sm:$0xff]  ;;  %v3870_v7 = vld [vmem:[#allocation20 + $0x208] sm:$0xff] }
 0xc58   : > { %3686 = vperm.xlu1 %6955, %v8458_v15   ;;  %v6354_v11 = vpack.c.bf16 %v3820_v25, %v3819_v10 }
 0xc59   : > { %6341 = vmatprep.subr.bf16.mxu0 %v6340_v19 }
 0xc5c   : > { %6957 = vset.pattern.permute.xlu1 %v7813_v14  ;;  %v3814_v14 = vld [vmem:[#allocation20 + $0x48] sm:$0xff] }
 0xc5d   : > { %3726 = vperm.xlu1 %6957, %v8458_v15   ;;  %v6342_v36 = vpack.c.bf16 %v3814_v14, %v3813_v16 }
 0xc5f   : > { %6343 = vmatpush3.bf16.msra.mxu0 %v6342_v36  ;;  %v3852_v36 = vld [vmem:[#allocation20 + $0x178] sm:$0xff] }
 0xc60   : > { %6345 = vmatprep.subr.bf16.mxu0 %v6344_v38 }
 0xc61   : > { %6958 = vset.pattern.permute.xlu1 %v7814_v17  ;;  %v3861_v17 = vld [vmem:[#allocation20 + $0x1c0] sm:$0xff] }
 0xc62   : > { %3706 = vperm.xlu1 %6958, %v8458_v15   ;;  %v6372_v37 = vpack.c.bf16 %v3862_v20, %v3861_v17  ;;  %v3867_v20 = vld [vmem:[#allocation20 + $0x1f0] sm:$0xff] }
 0xc63   : > { %6347 = vmatpush3.bf16.msra.mxu0 %v6346_v42  ;;  %v6384_v31 = vpack.c.bf16 %v3868_v23, %v3867_v20  ;;  %v3871_v20 = vld [vmem:[#allocation20 + $0x210] sm:$0xff] }
 0xc64   : > { %6373 = vmatprep.subr.bf16.mxu1 %v6372_v37  ;;  %6349 = vmatprep.subr.bf16.mxu0 %v6348_v33 }
 0xc65   : > { %6375 = vmatpush3.bf16.msra.mxu1 %v6374_v29 }
 0xc66   : > { %6990 = vset.pattern.permute.xlu1 %v7816_v21  ;;  %v8826_v21 = vpop.permute.xlu1 %3696  ;;  %6377 = vmatprep.subr.bf16.mxu1 %v6376_v52 }
 0xc67   : > { %6351 = vmatpush3.bf16.msra.mxu0 %v6350_v55  ;;  %v3667_v55 = vpop.permute.xlu0 %3666 }
 0xc68   : > { %6353 = vmatprep.subr.bf16.mxu0 %v6352_v9 }
 0xc69   : > { %6379 = vmatpush3.bf16.msra.mxu1 %v6378_v2 }
 0xc6a   : > { %v3677_v26 = vpop.permute.xlu1 %3676 }
 0xc6b   : > { %6355 = vmatpush3.bf16.msra.mxu0 %v6354_v11 }
 0xc6c   : > { %6388 = vmatprep.subr.bf16.mxu0 %v7759_v0 }
 0xc6e   : > { %v3702_v39 = vpop.permute.xlu1 %3701 }
 0xc72   : > { %v3732_v44 = vpop.permute.xlu1 %3731 }
 0xc76   : > { %v3712_v46 = vpop.permute.xlu1 %3711 }
 0xc7a   : > { %v8828_v41 = vpop.permute.xlu1 %3736 }
 0xc7e   : > { %v3742_v47 = vpop.permute.xlu1 %3741 }
 0xccf   : > { %v3644_v48 = vpop.xlane.xlu1 %3643 }
 0xcd0   : > { %v3645_v49 = vmul.f32 0.03125, %v3644_v48  ;;  %v7823_v48 = vmov 63  }
 0xcd2   : > { %v3646_v59 = vadd.f32 1e-05, %v3645_v49  ;;  %v7824_v49 = vmov 50  }
 0xcd3   : > { %v3722_v24 = vpop.permute.xlu1 %3721 }
 0xcd4   : > { %7060 = vrsqrt.f32 %v3646_v59  ;;  %v7825_v59 = vmov 48  }
 0xcd7   : > { %v3687_v51 = vpop.permute.xlu1 %3686 }
 0xcde   : > { %v7061_v53 = vpop.eup %7060 }
 0xcdf   : > { %v3648_v60 = vmul.f32 %v7061_v53, %v8817_v4  ;;  %v6380_v4 = vpack.c.bf16 %v3866_v12, %v3865_v58  ;;  %v3727_v53 = vpop.permute.xlu1 %3726  ;;  %v6389_v12 = vpack.c.bf16 %v3870_v7, %v3869_v3  ;;  %v4314_v3 = vld [vmem:[#allocation25 + $0xb8] sm:$0xff]  ;;  %v4339_v7 = vld [vmem:[#allocation25 + $0x180] sm:$0xff] }
 0xce1   : > { %v3656_v8 = vmul.f32 %v5333_v30, %v3648_v60  ;;  %6381 = vmatprep.subr.bf16.mxu1 %v6380_v4 }
 0xce2   : > { %6383 = vmatpush3.bf16.msra.mxu1 %v6382_v18 }
 0xce3   : > { %v8833_v16 = vadd.f32 %v5334_v56, %v3656_v8  ;;  %6385 = vmatprep.subr.bf16.mxu1 %v6384_v31  ;;  %v3707_v30 = vpop.permute.xlu1 %3706 }
 0xce5   : > { %v3679_v19 = vmul.f32 %v3677_v26, %v8833_v16  ;;  %v3699_v14 = vmul.f32 %v8826_v21, %v8833_v16  ;;  %v3674_v17 = vmul.f32 %v8815_v13, %v8833_v16  ;;  %v3694_v22 = vmul.f32 %v8813_v61, %v8833_v16 }
 0xce6   : > { %v3714_v28 = vmul.f32 %v3712_v46, %v8833_v16  ;;  %v3734_v27 = vmul.f32 %v3732_v44, %v8833_v16  ;;  %v3684_v21 = vmul.f32 %v8794_v34, %v8833_v16  ;;  %v3704_v13 = vmul.f32 %v3702_v39, %v8833_v16 }
 0xce7   : > { %v6964_v37 = vpack.i.bf16 %v3679_v19, %v3699_v14  ;;  %v6959_v38 = vpack.i.bf16 %v3674_v17, %v3694_v22  ;;  %v6386_v61 = vpack.c.bf16 %v3852_v36, %v3851_v35  ;;  %v3744_v40 = vmul.f32 %v3742_v47, %v8833_v16  ;;  %v3872_v22 = vld [vmem:[#allocation20 + $0x218] sm:$0xff] }
 0xce8   : > { %v3724_v32 = vmul.f32 %v3722_v24, %v8833_v16  ;;  %v6974_v29 = vpack.i.bf16 %v3714_v28, %v3734_v27  ;;  %v6969_v26 = vpack.i.bf16 %v3684_v21, %v3704_v13  ;;  %v3719_v42 = vmul.f32 %v8796_v54, %v8833_v16 }
 0xce9   : > { %6965 = vrot.lane.b32.xlu1 %v6964_v37, %s7776_s1  ;;  %6960 = vrot.lane.b32.xlu0 %v6959_v38, %s7781_s11  ;;  %v3739_v34 = vmul.f32 %v8828_v41, %v8833_v16  ;;  %v7817_v44 = vmov 55   ;;  %v7818_v54 = vmov 53   ;;  %v7819_v46 = vmov 59  }
 0xcea   : > { %6387 = vmatpush3.bf16.msra.mxu1 %v6386_v61  ;;  %v6984_v33 = vpack.i.bf16 %v3724_v32, %v3744_v40  ;;  %v7821_v41 = vmov 61   ;;  %v7822_v47 = vmov 57   ;;  %v3689_v60 = vmul.f32 %v3687_v51, %v8833_v16  ;;  %v4427_v40 = vld [vmem:[#allocation26] sm:$0xff]  ;;  %v4428_v32 = vld [vmem:[#allocation26 + $0x8] sm:$0xff]  ;;  %v4310_v51 = vld [vmem:[#allocation25 + $0x98] sm:$0xff] }
 0xceb   : > { %v6979_v39 = vpack.i.bf16 %v3719_v42, %v3739_v34  ;;  %v3669_v63 = vmul.f32 %v3667_v55, %v8833_v16  ;;  %v3729_v23 = vmul.f32 %v3727_v53, %v8833_v16  ;;  %v3709_v35 = vmul.f32 %v3707_v30, %v8833_v16  ;;  %v4293_v55 = vld [vmem:[#allocation25 + $0x10] sm:$0xff] }
 0xcec   : > { %v6392_v31 = vpack.c.bf16 %v3872_v22, %v3871_v20  ;;  %v6395_v42 = vpack.c.bf16 %v4428_v32, %v4427_v40  ;;  %v4325_v20 = vld [vmem:[#allocation25 + $0x110] sm:$0xff]  ;;  %v4326_v22 = vld [vmem:[#allocation25 + $0x118] sm:$0xff] }
 0xced   : > { %6975 = vrot.lane.b32.xlu1 %v6974_v29, %s7781_s11  ;;  %6970 = vrot.lane.b32.xlu0 %v6969_v26, %s7782_s20  ;;  %s7820_s11 = smov 16   ;;  %v4345_v32 = vld [vmem:[#allocation25 + $0x1b0] sm:$0xff] }
 0xcf1   : > { %6985 = vrot.lane.b32.xlu1 %v6984_v33, %s7782_s20  ;;  %6980 = vrot.lane.b32.xlu0 %v6979_v39, %s7776_s1  ;;  %s9153_s20 = sld [smem:[#allocation71_spill]] }
 0xcf5   : > { %4177 = vperm.xlu1 %6990, %v8458_v15   ;;  %4187 = vperm.xlu0 %6989, %v8458_v15  }
 0xcf7   : > { %s8972_s0 = scalar_lea.hbm %s9153_s20, %s5344_s12 }
 0xcf9   : > { %6991 = vset.pattern.permute.xlu1 %v7817_v44  ;;  %6992 = vset.pattern.permute.xlu0 %v7818_v54  ;;  %v7827_v44 = vmov 52   ;;  %v7828_v54 = vmov 58  }
 0xcfa   : > { %4207 = vperm.xlu1 %6991, %v8458_v15   ;;  %4197 = vperm.xlu0 %6992, %v8458_v15  }
 0xcfe   : > { %6993 = vset.pattern.permute.xlu1 %v7819_v46  ;;  %4429 = vrot.lane.b32.xlu0 %v8458_v15, %s7820_s11  ;;  %v4307_v46 = vld [vmem:[#allocation25 + $0x80] sm:$0xff] }
 0xcff   : > { %4227 = vperm.xlu1 %6993, %v8458_v15   ;;  %6996 = vset.pattern.permute.xlu0 %v7821_v41  ;;  %v4308_v41 = vld [vmem:[#allocation25 + $0x88] sm:$0xff] }
 0xd02   : > { %4237 = vperm.xlu0 %6996, %v8458_v15  }
 0xd03   : > { %6994 = vset.pattern.permute.xlu1 %v7822_v47  ;;  %v4291_v47 = vld [vmem:[#allocation25] sm:$0xff] }
 0xd04   : > { %4217 = vperm.xlu1 %6994, %v8458_v15  }
 0xd06   : > { %7005 = vset.pattern.permute.xlu0 %v7827_v44  ;;  %v4301_v44 = vld [vmem:[#allocation25 + $0x50] sm:$0xff] }
 0xd08   : > { %6995 = vset.pattern.permute.xlu1 %v7823_v48 }
 0xd09   : > { %4247 = vperm.xlu1 %6995, %v8458_v15  }
 0xd0d   : > { %6997 = vset.pattern.permute.xlu1 %v7824_v49  ;;  %v6397_v49 = vpack.c.bf16 %v4308_v41, %v4307_v46  ;;  %v4319_v46 = vld [vmem:[#allocation25 + $0xe0] sm:$0xff]  ;;  %v4320_v41 = vld [vmem:[#allocation25 + $0xe8] sm:$0xff] }
 0xd0e   : > { %4182 = vperm.xlu1 %6997, %v8458_v15  }
 0xd12   : > { %6998 = vset.pattern.permute.xlu1 %v7825_v59  ;;  %v4292_v59 = vld [vmem:[#allocation25 + $0x8] sm:$0xff] }
 0xd13   : > { %4172 = vperm.xlu1 %6998, %v8458_v15   ;;  %v6399_v53 = vpack.c.bf16 %v4292_v59, %v4291_v47  ;;  %v4303_v59 = vld [vmem:[#allocation25 + $0x60] sm:$0xff] }
 0xd17   : > { %6999 = vset.pattern.permute.xlu1 %v7826_v50  ;;  %v4309_v50 = vld [vmem:[#allocation25 + $0x90] sm:$0xff] }
 0xd18   : > { %4202 = vperm.xlu1 %6999, %v8458_v15   ;;  %v6401_v30 = vpack.c.bf16 %v4310_v51, %v4309_v50  ;;  %v4304_v50 = vld [vmem:[#allocation25 + $0x68] sm:$0xff]  ;;  %v4321_v51 = vld [vmem:[#allocation25 + $0xf0] sm:$0xff] }
 0xd1c   : > { %7011 = vset.pattern.permute.xlu1 %v7828_v54  ;;  %v4302_v54 = vld [vmem:[#allocation25 + $0x58] sm:$0xff] }
 0xd1d   : > { %v6419_v47 = vpack.c.bf16 %v4302_v54, %v4301_v44  ;;  %v4336_v44 = vld [vmem:[#allocation25 + $0x168] sm:$0xff] }
 0xd5b   : > { %v6966_v45 = vpop.permute.xlu1 %6965  ;;  %v6961_v57 = vpop.permute.xlu0 %6960 }
 0xd5c   : > { %v6963_v52 = vunpack.i.h.bf16 %v6961_v57  ;;  %v6962_v62 = vunpack.i.l.bf16 %v6961_v57  ;;  %v6968_v56 = vunpack.i.h.bf16 %v6966_v45  ;;  %v6967_v2 = vunpack.i.l.bf16 %v6966_v45  ;;  %v4294_v45 = vld [vmem:[#allocation25 + $0x18] sm:$0xff]  ;;  %v4311_v57 = vld [vmem:[#allocation25 + $0xa0] sm:$0xff] }
 0xd5e   : > { %v3793_v8 = vsel %vm1298_vm1, %v3669_v63, %v6963_v52  ;;  %v3796_v10 = vsel %vm1298_vm1, %v3689_v60, %v6962_v62  ;;  %v4312_v60 = vld [vmem:[#allocation25 + $0xa8] sm:$0xff]  ;;  %v6403_v52 = vpack.c.bf16 %v4294_v45, %v4293_v55  ;;  %v4295_v63 = vld [vmem:[#allocation25 + $0x20] sm:$0xff] }
 0xd5f   : > { %v6976_v9 = vpop.permute.xlu1 %6975  ;;  %v6971_v25 = vpop.permute.xlu0 %6970  ;;  %v3794_v4 = vsel %vm1503_vm3, %v3793_v8, %v6968_v56  ;;  %v3797_v18 = vsel %vm1503_vm3, %v3796_v10, %v6967_v2  ;;  %v6405_v62 = vpack.c.bf16 %v4312_v60, %v4311_v57  ;;  %v4296_v56 = vld [vmem:[#allocation25 + $0x28] sm:$0xff]  ;;  %v4313_v2 = vld [vmem:[#allocation25 + $0xb0] sm:$0xff]  ;;  %v4323_v10 = vld [vmem:[#allocation25 + $0x100] sm:$0xff] }
 0xd60   : > { %v6973_v11 = vunpack.i.h.bf16 %v6971_v25  ;;  %v6972_v58 = vunpack.i.l.bf16 %v6971_v25  ;;  %v6978_v43 = vunpack.i.h.bf16 %v6976_v9  ;;  %v6977_v6 = vunpack.i.l.bf16 %v6976_v9  ;;  %v4340_v8 = vld [vmem:[#allocation25 + $0x188] sm:$0xff] }
 0xd61   : > { %v6429_v9 = vpack.c.bf16 %v4340_v8, %v4339_v7  ;;  %v4324_v25 = vld [vmem:[#allocation25 + $0x108] sm:$0xff]  ;;  %v4306_v7 = vld [vmem:[#allocation25 + $0x78] sm:$0xff]  ;;  %v4329_v8 = vld [vmem:[#allocation25 + $0x130] sm:$0xff] }
 0xd62   : > { %v3798_v14 = vsel %vm1505_vm4, %v3797_v18, %v6972_v58  ;;  %v3795_v17 = vsel %vm1505_vm4, %v3794_v4, %v6973_v11  ;;  %v3799_v21 = vsel %vm1298_vm1, %v3709_v35, %v6978_v43  ;;  %v3802_v13 = vsel %vm1298_vm1, %v3729_v23, %v6977_v6  ;;  %v4297_v58 = vld [vmem:[#allocation25 + $0x30] sm:$0xff]  ;;  %v4298_v6 = vld [vmem:[#allocation25 + $0x38] sm:$0xff]  ;;  %v4315_v18 = vld [vmem:[#allocation25 + $0xc0] sm:$0xff] }
 0xd63   : > { %v6986_v19 = vpop.permute.xlu1 %6985  ;;  %v6981_v36 = vpop.permute.xlu0 %6980  ;;  %4016 = vmatprep.mubr.f32.mxu0 %v3798_v14  ;;  %v6407_v11 = vpack.c.bf16 %v4296_v56, %v4295_v63  ;;  %v4341_v4 = vld [vmem:[#allocation25 + $0x190] sm:$0xff]  ;;  %v6409_v43 = vpack.c.bf16 %v4314_v3, %v4313_v2  ;;  %6430 = vmatprep.subr.bf16.mxu1 %v6429_v9  ;;  %v4316_v14 = vld [vmem:[#allocation25 + $0xc8] sm:$0xff]  ;;  %v6435_v23 = vpack.c.bf16 %v4326_v22, %v4325_v20  ;;  %v4343_v35 = vld [vmem:[#allocation25 + $0x1a0] sm:$0xff] }
 0xd64   : > { %v6988_v37 = vunpack.i.h.bf16 %v6986_v19  ;;  %v6987_v28 = vunpack.i.l.bf16 %v6986_v19  ;;  %v6983_v27 = vunpack.i.h.bf16 %v6981_v36  ;;  %v6982_v38 = vunpack.i.l.bf16 %v6981_v36  ;;  %4017 = vmatmul.mubr.f32.vlgmr.msra.gmra.mrb[26].mxu0 %v3795_v17  ;;  %v4342_v19 = vld [vmem:[#allocation25 + $0x198] sm:$0xff]  ;;  %v4344_v36 = vld [vmem:[#allocation25 + $0x1a8] sm:$0xff]  ;;  %v4305_v3 = vld [vmem:[#allocation25 + $0x70] sm:$0xff] }
 0xd65   : > { %6390 = vmatpush3.bf16.msra.mxu0 %v6389_v12  ;;  %6034 = vmatprep.mubr.msk.f32.mxu0 %vm7760_vm0, %v7761_v1  ;;  %v6431_v12 = vpack.c.bf16 %v4324_v25, %v4323_v10  ;;  %v6433_v17 = vpack.c.bf16 %v4342_v19, %v4341_v4  ;;  %v6427_v10 = vpack.c.bf16 %v4306_v7, %v4305_v3  ;;  %v4330_v25 = vld [vmem:[#allocation25 + $0x138] sm:$0xff]  ;;  %v4371_v19 = vld [vmem:[#allocation25 + $0x280] sm:$0xff]  ;;  %v7830_v7 = vmov 62  }
 0xd66   : > { %6391 = vmatprep.subr.bf16.mxu0 %v7759_v0  ;;  %v3803_v61 = vsel %vm1503_vm3, %v3802_v13, %v6982_v38  ;;  %v3800_v24 = vsel %vm1503_vm3, %v3799_v21, %v6983_v27  ;;  %v6437_v27 = vpack.c.bf16 %v4344_v36, %v4343_v35  ;;  %v4327_v38 = vld [vmem:[#allocation25 + $0x120] sm:$0xff]  ;;  %v6413_v21 = vpack.c.bf16 %v4316_v14, %v4315_v18  ;;  %v4300_v13 = vld [vmem:[#allocation25 + $0x48] sm:$0xff] }
 0xd67   : > { %v3804_v29 = vsel %vm1505_vm4, %v3803_v61, %v6987_v28  ;;  %v3801_v26 = vsel %vm1505_vm4, %v3800_v24, %v6988_v37  ;;  %v6411_v37 = vpack.c.bf16 %v4298_v6, %v4297_v58  ;;  %v4299_v28 = vld [vmem:[#allocation25 + $0x40] sm:$0xff]  ;;  %v4328_v61 = vld [vmem:[#allocation25 + $0x128] sm:$0xff]  ;;  %v4318_v24 = vld [vmem:[#allocation25 + $0xd8] sm:$0xff]  ;;  %v6443_v4 = vpack.c.bf16 %v4330_v25, %v4329_v8 }
 0xd68   : > { %4086 = vmatprep.mubr.f32.mxu1 %v3804_v29  ;;  %v6439_v40 = vpack.c.bf16 %v4328_v61, %v4327_v38  ;;  %v4346_v29 = vld [vmem:[#allocation25 + $0x1b8] sm:$0xff]  ;;  %v4347_v6 = vld [vmem:[#allocation25 + $0x1c0] sm:$0xff]  ;;  %v4348_v18 = vld [vmem:[#allocation25 + $0x1c8] sm:$0xff] }
 0xd69   : > { %6393 = vmatpush3.bf16.msra.mxu0 %v6392_v31  ;;  %4087 = vmatmul.mubr.f32.vlgmr.msra.gmra.mrb[34].mxu1 %v3801_v26  ;;  %v4317_v31 = vld [vmem:[#allocation25 + $0xd0] sm:$0xff]  ;;  %v6441_v26 = vpack.c.bf16 %v4346_v29, %v4345_v32  ;;  %v5337_v58 = vld [vmem:[#allocation23] ss:$0 sm:$0xff]  ;;  %v4331_v22 = vld [vmem:[#allocation25 + $0x140] sm:$0xff] }
 0xd6a   : > { %6394 = vmatprep.subr.bf16.mxu0 %v7759_v0  ;;  %6432 = vmatpush3.bf16.msra.mxu1 %v6431_v12  ;;  %v4333_v38 = vld [vmem:[#allocation25 + $0x150] sm:$0xff] }
 0xd6b   : > { %6434 = vmatprep.subr.bf16.mxu1 %v6433_v17  ;;  %v4372_v17 = vld [vmem:[#allocation25 + $0x288] sm:$0xff] }
 0xd6c   : > { %6035 = vmatmul.mubr.msk.f32.vlgmr.msra.gmra.mrb[28].mxu0 %vm1298_vm1, %v8833_v16  ;;  %v6461_v20 = vpack.c.bf16 %v4372_v17, %v4371_v19  ;;  %v4374_v17 = vld [vmem:[#allocation25 + $0x298] sm:$0xff] }
 0xd6d   : > { %6396 = vmatpush3.bf16.msra.mxu0 %v6395_v42  ;;  %6041 = vmatprep.mubr.msk.f32.mxu0 %vm7760_vm0, %v7761_v1  ;;  %v6415_v42 = vpack.c.bf16 %v4300_v13, %v4299_v28  ;;  %v4350_v28 = vld [vmem:[#allocation25 + $0x1d8] sm:$0xff] }
 0xd6e   : > { %6398 = vmatprep.subr.bf16.mxu0 %v6397_v49  ;;  %6436 = vmatpush3.bf16.msra.mxu1 %v6435_v23  ;;  %v6421_v49 = vpack.c.bf16 %v4320_v41, %v4319_v46  ;;  %v4332_v23 = vld [vmem:[#allocation25 + $0x148] sm:$0xff]  ;;  %v4334_v13 = vld [vmem:[#allocation25 + $0x158] sm:$0xff] }
 0xd6f   : > { %6438 = vmatprep.subr.bf16.mxu1 %v6437_v27  ;;  %v6447_v36 = vpack.c.bf16 %v4332_v23, %v4331_v22  ;;  %v6451_v61 = vpack.c.bf16 %v4334_v13, %v4333_v38  ;;  %v4358_v38 = vld [vmem:[#allocation25 + $0x218] sm:$0xff]  ;;  %v4375_v13 = vld [vmem:[#allocation25 + $0x2a0] sm:$0xff] }
 0xd72   : > { %6440 = vmatpush3.bf16.msra.mxu1 %v6439_v40 }
 0xd73   : > { %6442 = vmatprep.subr.bf16.mxu1 %v6441_v26  ;;  %v4351_v26 = vld [vmem:[#allocation25 + $0x1e0] sm:$0xff] }
 0xd74   : > { %v8897_v34 = vpop.permute.xlu0 %4187 }
 0xd76   : > { %6444 = vmatpush3.bf16.msra.mxu1 %v6443_v4  ;;  %v4355_v4 = vld [vmem:[#allocation25 + $0x200] sm:$0xff] }
 0xd79   : > { %v8899_v33 = vpop.permute.xlu0 %4197 }
 0xd7d   : > { %v4430_v39 = vpop.permute.xlu0 %4429 }
 0xd7e   : > { %6042 = vmatmul.mubr.msk.f32.vlgmr.msra.gmra.mrb[30].mxu0 %vm1588_vm2, %v4430_v39  ;;  %v6417_v39 = vpack.c.bf16 %v4318_v24, %v4317_v31 }
 0xd7f   : > { %6400 = vmatpush3.bf16.msra.mxu0 %v6399_v53  ;;  %v4322_v53 = vld [vmem:[#allocation25 + $0xf8] sm:$0xff] }
 0xd80   : > { %6402 = vmatprep.subr.bf16.mxu0 %v6401_v30  ;;  %v6423_v30 = vpack.c.bf16 %v4304_v50, %v4303_v59  ;;  %v6425_v55 = vpack.c.bf16 %v4322_v53, %v4321_v51  ;;  %v4337_v51 = vld [vmem:[#allocation25 + $0x170] sm:$0xff] }
 0xd83   : > { %6404 = vmatpush3.bf16.msra.mxu0 %v6403_v52  ;;  %v4178_v52 = vpop.permute.xlu1 %4177 }
 0xd84   : > { %6406 = vmatprep.subr.bf16.mxu0 %v6405_v62 }
 0xd87   : > { %6408 = vmatpush3.bf16.msra.mxu0 %v6407_v11 }
 0xd88   : > { %6410 = vmatprep.subr.bf16.mxu0 %v6409_v43  ;;  %v4208_v43 = vpop.permute.xlu1 %4207 }
 0xd8b   : > { %6412 = vmatpush3.bf16.msra.mxu0 %v6411_v37  ;;  %v4349_v37 = vld [vmem:[#allocation25 + $0x1d0] sm:$0xff] }
 0xd8c   : > { %6414 = vmatprep.subr.bf16.mxu0 %v6413_v21  ;;  %v6449_v27 = vpack.c.bf16 %v4350_v28, %v4349_v37  ;;  %v4228_v31 = vpop.permute.xlu1 %4227 }
 0xd8f   : > { %6416 = vmatpush3.bf16.msra.mxu0 %v6415_v42  ;;  %v4352_v42 = vld [vmem:[#allocation25 + $0x1e8] sm:$0xff] }
 0xd90   : > { %6418 = vmatprep.subr.bf16.mxu0 %v6417_v39  ;;  %v4335_v39 = vld [vmem:[#allocation25 + $0x160] sm:$0xff]  ;;  %v6453_v41 = vpack.c.bf16 %v4352_v42, %v4351_v26  ;;  %v4218_v59 = vpop.permute.xlu1 %4217  ;;  %v4378_v26 = vld [vmem:[#allocation25 + $0x2b8] sm:$0xff] }
 0xd93   : > { %6420 = vmatpush3.bf16.msra.mxu0 %v6419_v47  ;;  %v4353_v47 = vld [vmem:[#allocation25 + $0x1f0] sm:$0xff] }
 0xd94   : > { %6422 = vmatprep.subr.bf16.mxu0 %v6421_v49  ;;  %v4354_v49 = vld [vmem:[#allocation25 + $0x1f8] sm:$0xff]  ;;  %v4248_v3 = vpop.permute.xlu1 %4247 }
 0xd95   : > { %v6457_v50 = vpack.c.bf16 %v4354_v49, %v4353_v47  ;;  %v4363_v47 = vld [vmem:[#allocation25 + $0x240] sm:$0xff]  ;;  %v4364_v49 = vld [vmem:[#allocation25 + $0x248] sm:$0xff] }
 0xd97   : > { %6424 = vmatpush3.bf16.msra.mxu0 %v6423_v30 }
 0xd98   : > { %6426 = vmatprep.subr.bf16.mxu0 %v6425_v55 }
 0xd9b   : > { %6428 = vmatpush3.bf16.msra.mxu0 %v6427_v10  ;;  %v7831_v10 = vmov 60  }
 0xd9c   : > { %6462 = vmatprep.subr.bf16.mxu0 %v6461_v20 }
 0xe37   : > { %v5673_v45 = vpop.f32.mrb[26].mxu0 }
 0xe38   : > { %v5674_v57 = vpop.f32.mrb[27].mxu0 }
 0xe39   : > { %v5675_v60 = vadd.f32 %v5674_v57, %v5673_v45  ;;  %v4403_v57 = vld [vmem:[#allocation25 + $0x380] sm:$0xff] }
 0xe3b   : > { %v4019_v62 = vadd.f32 %v5675_v60, %v8804_v5  ;;  %v6445_v5 = vpack.c.bf16 %v4348_v18, %v4347_v6  ;;  %v4404_v60 = vld [vmem:[#allocation25 + $0x388] sm:$0xff] }
 0xe3c   : > { %v5708_v63 = vpop.f32.mrb[34].mxu1 }
 0xe3d   : > { %v5709_v56 = vpop.f32.mrb[35].mxu1  ;;  %6446 = vmatprep.subr.bf16.mxu1 %v6445_v5  ;;  %v4373_v5 = vld [vmem:[#allocation25 + $0x290] sm:$0xff] }
 0xe3e   : > { %v5710_v2 = vadd.f32 %v5709_v56, %v5708_v63  ;;  %6448 = vmatpush3.bf16.msra.mxu1 %v6447_v36  ;;  %v6493_v63 = vpack.c.bf16 %v4404_v60, %v4403_v57  ;;  %v7829_v56 = vmov 56   ;;  %v6465_v28 = vpack.c.bf16 %v4374_v17, %v4373_v5  ;;  %v4367_v5 = vld [vmem:[#allocation25 + $0x260] sm:$0xff]  ;;  %v4368_v17 = vld [vmem:[#allocation25 + $0x268] sm:$0xff] }
 0xe3f   : > { %v4158_v9 = vpop.f32.mrb[28].mxu0  ;;  %6450 = vmatprep.subr.bf16.mxu1 %v6449_v27  ;;  %v4357_v27 = vld [vmem:[#allocation25 + $0x210] sm:$0xff] }
 0xe40   : > { %v4089_v11 = vadd.f32 %v5710_v2, %v4019_v62  ;;  %v6036_v12 = vpop.f32.mrb[29].mxu0  ;;  %v4238_v2 = vpop.permute.xlu0 %4237 }
 0xe42   : > { %v4159_v14 = vadd.f32 %v4158_v9, %v4089_v11  ;;  %6452 = vmatpush3.bf16.msra.mxu1 %v6451_v61  ;;  %v4183_v11 = vpop.permute.xlu1 %4182  ;;  %v6467_v61 = vpack.c.bf16 %v4358_v38, %v4357_v27  ;;  %v6487_v38 = vpack.c.bf16 %v4368_v17, %v4367_v5  ;;  %v4401_v5 = vld [vmem:[#allocation25 + $0x370] sm:$0xff] }
 0xe43   : > { %6454 = vmatprep.subr.bf16.mxu1 %v6453_v41  ;;  %v4380_v41 = vld [vmem:[#allocation25 + $0x2c8] sm:$0xff] }
 0xe44   : > { %v4169_v35 = vadd.f32 %v5337_v58, %v4159_v14 }
 0xe46   : > { %v8903_v21 = vmax.f32 %v4169_v35, 0.0  ;;  %v4173_v58 = vpop.permute.xlu1 %4172 }
 0xe48   : > { %v4200_v24 = vmul.f32 %v8899_v33, %v8903_v21  ;;  %v4210_v40 = vmul.f32 %v4208_v43, %v8903_v21  ;;  %v4180_v32 = vmul.f32 %v4178_v52, %v8903_v21  ;;  %v4190_v29 = vmul.f32 %v8897_v34, %v8903_v21  ;;  %v4338_v34 = vld [vmem:[#allocation25 + $0x178] sm:$0xff]  ;;  %v4356_v43 = vld [vmem:[#allocation25 + $0x208] sm:$0xff] }
 0xe49   : > { %v6455_v33 = vpack.c.bf16 %v4336_v44, %v4335_v39  ;;  %v4220_v53 = vmul.f32 %v4218_v59, %v8903_v21  ;;  %v4230_v30 = vmul.f32 %v4228_v31, %v8903_v21  ;;  %v6459_v55 = vpack.c.bf16 %v4338_v34, %v4337_v51  ;;  %v4376_v31 = vld [vmem:[#allocation25 + $0x2a8] sm:$0xff]  ;;  %v4361_v44 = vld [vmem:[#allocation25 + $0x230] sm:$0xff] }
 0xe4a   : > { %v7006_v54 = vpack.i.bf16 %v4200_v24, %v4210_v40  ;;  %v7000_v46 = vpack.i.bf16 %v4180_v32, %v4190_v29  ;;  %v4240_v8 = vmul.f32 %v4238_v2, %v8903_v21  ;;  %v4250_v9 = vmul.f32 %v4248_v3, %v8903_v21  ;;  %v4203_v12 = vpop.permute.xlu1 %4202  ;;  %v4359_v40 = vld [vmem:[#allocation25 + $0x220] sm:$0xff]  ;;  %v4360_v32 = vld [vmem:[#allocation25 + $0x228] sm:$0xff]  ;;  %v4377_v29 = vld [vmem:[#allocation25 + $0x2b0] sm:$0xff] }
 0xe4b   : > { %6456 = vmatpush3.bf16.msra.mxu1 %v6455_v33  ;;  %v7013_v62 = vpack.i.bf16 %v4220_v53, %v4230_v30  ;;  %v4185_v19 = vmul.f32 %v4183_v11, %v8903_v21  ;;  %v4205_v14 = vmul.f32 %v4203_v12, %v8903_v21  ;;  %v6463_v23 = vpack.c.bf16 %v4356_v43, %v4355_v4  ;;  %v4388_v51 = vld [vmem:[#allocation25 + $0x308] sm:$0xff]  ;;  %v4381_v34 = vld [vmem:[#allocation25 + $0x2d0] sm:$0xff]  ;;  %v4382_v53 = vld [vmem:[#allocation25 + $0x2d8] sm:$0xff] }
 0xe4c   : > { %7007 = vrot.lane.b32.xlu1 %v7006_v54, %s7776_s1  ;;  %7001 = vrot.lane.b32.xlu0 %v7000_v46, %s7776_s1  ;;  %v7020_v25 = vpack.i.bf16 %v4240_v8, %v4250_v9  ;;  %v6469_v24 = vpack.c.bf16 %v4376_v31, %v4375_v13  ;;  %v6471_v42 = vpack.c.bf16 %v4360_v32, %v4359_v40  ;;  %v4362_v54 = vld [vmem:[#allocation25 + $0x238] sm:$0xff]  ;;  %v4379_v46 = vld [vmem:[#allocation25 + $0x2c0] sm:$0xff]  ;;  %v4405_v30 = vld [vmem:[#allocation25 + $0x390] sm:$0xff] }
 0xe4d   : > { %6458 = vmatprep.subr.bf16.mxu1 %v6457_v50  ;;  %v6473_v39 = vpack.c.bf16 %v4378_v26, %v4377_v29  ;;  %v6475_v33 = vpack.c.bf16 %v4362_v54, %v4361_v44  ;;  %v6477_v59 = vpack.c.bf16 %v4380_v41, %v4379_v46  ;;  %v4387_v50 = vld [vmem:[#allocation25 + $0x300] sm:$0xff]  ;;  %v4365_v2 = vld [vmem:[#allocation25 + $0x250] sm:$0xff]  ;;  %v4366_v3 = vld [vmem:[#allocation25 + $0x258] sm:$0xff] }
 0xe4e   : > { %v4389_v9 = vld [vmem:[#allocation25 + $0x310] sm:$0xff]  ;;  %v4407_v12 = vld [vmem:[#allocation25 + $0x3a0] sm:$0xff]  ;;  %v4408_v4 = vld [vmem:[#allocation25 + $0x3a8] sm:$0xff] }
 0xe4f   : > { %6460 = vmatpush3.bf16.msra.mxu1 %v6459_v55  ;;  %v4406_v55 = vld [vmem:[#allocation25 + $0x398] sm:$0xff]  ;;  %v4369_v31 = vld [vmem:[#allocation25 + $0x270] sm:$0xff]  ;;  %v4411_v26 = vld [vmem:[#allocation25 + $0x3c0] sm:$0xff] }
 0xe50   : > { %4222 = vperm.xlu1 %7011, %v8458_v15   ;;  %4192 = vperm.xlu0 %7005, %v8458_v15   ;;  %v6497_v8 = vpack.c.bf16 %v4406_v55, %v4405_v30  ;;  %v4370_v40 = vld [vmem:[#allocation25 + $0x278] sm:$0xff]  ;;  %v4393_v32 = vld [vmem:[#allocation25 + $0x330] sm:$0xff] }
 0xe51   : > { %v8917_v45 = vpop.f32.mrb[30].mxu0  ;;  %6494 = vmatprep.subr.bf16.mxu1 %v6493_v63  ;;  %v6479_v63 = vpack.c.bf16 %v4364_v49, %v4363_v47  ;;  %v4394_v29 = vld [vmem:[#allocation25 + $0x338] sm:$0xff]  ;;  %v6491_v41 = vpack.c.bf16 %v4370_v40, %v4369_v31  ;;  %v4395_v47 = vld [vmem:[#allocation25 + $0x340] sm:$0xff]  ;;  %v4413_v55 = vld [vmem:[#allocation25 + $0x3d0] sm:$0xff] }
 0xe52   : > { %v6043_v52 = vpop.f32.mrb[31].mxu0 }
 0xe54   : > { %7014 = vrot.lane.b32.xlu1 %v7013_v62, %s7776_s1  ;;  %7012 = vset.pattern.permute.xlu0 %v7829_v56  ;;  %v6495_v56 = vpack.c.bf16 %v4388_v51, %v4387_v50  ;;  %v4419_v50 = vld [vmem:[#allocation25 + $0x400] sm:$0xff]  ;;  %v4420_v51 = vld [vmem:[#allocation25 + $0x408] sm:$0xff] }
 0xe55   : > { %4212 = vperm.xlu0 %7012, %v8458_v15   ;;  %7018 = vset.pattern.permute.xlu1 %v7830_v7  ;;  %v6481_v7 = vpack.c.bf16 %v4382_v53, %v4381_v34 }
 0xe58   : > { %4242 = vperm.xlu1 %7018, %v8458_v15  }
 0xe59   : > { %7019 = vset.pattern.permute.xlu0 %v7831_v10  ;;  %v4390_v10 = vld [vmem:[#allocation25 + $0x318] sm:$0xff] }
 0xe5a   : > { %4232 = vperm.xlu0 %7019, %v8458_v15  }
 0xe5c   : > { %7021 = vrot.lane.b32.xlu1 %v7020_v25, %s7776_s1  ;;  %v4383_v25 = vld [vmem:[#allocation25 + $0x2e0] sm:$0xff]  ;;  %s9152_s1 = sld [smem:[#allocation70_spill]] }
 0xe5e   : > { %7025 = vset.pattern.permute.xlu0 %v7823_v48  ;;  %v4175_v48 = vmul.f32 %v4173_v58, %v8903_v21  ;;  %v4384_v58 = vld [vmem:[#allocation25 + $0x2e8] sm:$0xff] }
 0xebe   : > { %v8927_v6 = vpop.permute.xlu1 %7007  ;;  %v7002_v18 = vpop.permute.xlu0 %7001 }
 0xebf   : > { %v7009_v15 = vunpack.i.l.bf16 %v8927_v6  ;;  %v7004_v20 = vunpack.i.h.bf16 %v7002_v18  ;;  %v7003_v22 = vunpack.i.l.bf16 %v7002_v18  ;;  %v7010_v52 = vunpack.i.h.bf16 %v8927_v6 }
 0xec1   : > { %v4284_v35 = vsel %vm1503_vm3, %v4185_v19, %v7003_v22  ;;  %v4286_v36 = vsel %vm1503_vm3, %v4205_v14, %v7009_v15  ;;  %v4283_v37 = vsel %vm1503_vm3, %v4175_v48, %v7004_v20  ;;  %v6483_v19 = vpack.c.bf16 %v4366_v3, %v4365_v2  ;;  %v4391_v22 = vld [vmem:[#allocation25 + $0x320] sm:$0xff]  ;;  %v4392_v48 = vld [vmem:[#allocation25 + $0x328] sm:$0xff]  ;;  %v4421_v2 = vld [vmem:[#allocation25 + $0x410] sm:$0xff] }
 0xec2   : > { %4570 = vmatprep.mubr.f32.mxu0 %v4284_v35  ;;  %4640 = vmatprep.mubr.f32.mxu1 %v4286_v36  ;;  %v6499_v14 = vpack.c.bf16 %v4390_v10, %v4389_v9  ;;  %v6485_v15 = vpack.c.bf16 %v4384_v58, %v4383_v25  ;;  %v6501_v20 = vpack.c.bf16 %v4408_v4, %v4407_v12  ;;  %v4386_v36 = vld [vmem:[#allocation25 + $0x2f8] sm:$0xff]  ;;  %v4416_v9 = vld [vmem:[#allocation25 + $0x3e8] sm:$0xff]  ;;  %v4423_v4 = vld [vmem:[#allocation25 + $0x420] sm:$0xff] }
 0xec3   : > { %4571 = vmatmul.mubr.f32.vlgmr.msra.gmra.mrb[32].mxu0 %v4283_v37  ;;  %v4409_v37 = vld [vmem:[#allocation25 + $0x3b0] sm:$0xff]  ;;  %v6503_v13 = vpack.c.bf16 %v4392_v48, %v4391_v22  ;;  %v4422_v3 = vld [vmem:[#allocation25 + $0x418] sm:$0xff]  ;;  %v4400_v12 = vld [vmem:[#allocation25 + $0x368] sm:$0xff] }
 0xec4   : > { %6464 = vmatpush3.bf16.msra.mxu0 %v6463_v23  ;;  %v4385_v23 = vld [vmem:[#allocation25 + $0x2f0] sm:$0xff]  ;;  %v6529_v25 = vpack.c.bf16 %v4422_v3, %v4421_v2  ;;  %v4426_v22 = vld [vmem:[#allocation25 + $0x438] sm:$0xff] }
 0xec5   : > { %6466 = vmatprep.subr.bf16.mxu0 %v6465_v28  ;;  %v4410_v28 = vld [vmem:[#allocation25 + $0x3b8] sm:$0xff] }
 0xec8   : > { %6468 = vmatpush3.bf16.msra.mxu0 %v6467_v61  ;;  %v6489_v61 = vpack.c.bf16 %v4386_v36, %v4385_v23 }
 0xec9   : > { %6470 = vmatprep.subr.bf16.mxu0 %v6469_v24  ;;  %v6505_v24 = vpack.c.bf16 %v4410_v28, %v4409_v37 }
 0xecc   : > { %6472 = vmatpush3.bf16.msra.mxu0 %v6471_v42  ;;  %v4412_v42 = vld [vmem:[#allocation25 + $0x3c8] sm:$0xff] }
 0xecd   : > { %6474 = vmatprep.subr.bf16.mxu0 %v6473_v39  ;;  %v6509_v49 = vpack.c.bf16 %v4412_v42, %v4411_v26 }
 0xecf   : > { %v4223_v57 = vpop.permute.xlu1 %4222  ;;  %v4193_v60 = vpop.permute.xlu0 %4192 }
 0xed0   : > { %v4195_v62 = vmul.f32 %v4193_v60, %v8903_v21  ;;  %6476 = vmatpush3.bf16.msra.mxu0 %v6475_v33  ;;  %v4225_v6 = vmul.f32 %v4223_v57, %v8903_v21  ;;  %v6507_v33 = vpack.c.bf16 %v4394_v29, %v4393_v32  ;;  %v4414_v57 = vld [vmem:[#allocation25 + $0x3d8] sm:$0xff] }
 0xed1   : > { %6478 = vmatprep.subr.bf16.mxu0 %v6477_v59  ;;  %v4396_v59 = vld [vmem:[#allocation25 + $0x348] sm:$0xff] }
 0xed2   : > { %v4285_v11 = vsel %vm1503_vm3, %v4195_v62, %v7010_v52  ;;  %v6511_v60 = vpack.c.bf16 %v4396_v59, %v4395_v47  ;;  %v6526_v52 = vpack.c.bf16 %v4420_v51, %v4419_v50  ;;  %v4397_v62 = vld [vmem:[#allocation25 + $0x350] sm:$0xff] }
 0xed3   : > { %v8939_v43 = vpop.permute.xlu1 %7014  ;;  %4641 = vmatmul.mubr.f32.vlgmr.msra.gmra.mrb[36].mxu1 %v4285_v11  ;;  %v4399_v11 = vld [vmem:[#allocation25 + $0x360] sm:$0xff] }
 0xed4   : > { %v7016_v18 = vunpack.i.l.bf16 %v8939_v43  ;;  %6480 = vmatpush3.bf16.msra.mxu0 %v6479_v63  ;;  %6496 = vmatpush3.bf16.msra.mxu1 %v6495_v56  ;;  %v4213_v39 = vpop.permute.xlu0 %4212  ;;  %v7017_v34 = vunpack.i.h.bf16 %v8939_v43  ;;  %v6513_v63 = vpack.c.bf16 %v4414_v57, %v4413_v55  ;;  %v4398_v56 = vld [vmem:[#allocation25 + $0x358] sm:$0xff]  ;;  %v4424_v43 = vld [vmem:[#allocation25 + $0x428] sm:$0xff] }
 0xed5   : > { %6482 = vmatprep.subr.bf16.mxu0 %v6481_v7  ;;  %6498 = vmatprep.subr.bf16.mxu1 %v6497_v8  ;;  %v4215_v53 = vmul.f32 %v4213_v39, %v8903_v21  ;;  %v4415_v8 = vld [vmem:[#allocation25 + $0x3e0] sm:$0xff]  ;;  %v6515_v10 = vpack.c.bf16 %v4398_v56, %v4397_v62  ;;  %v5342_v62 = vld [vmem:[%s9152_s1] ss:$0 sm:$0xff] }
 0xed6   : > { %v4288_v35 = vsel %vm1503_vm3, %v4225_v6, %v7016_v18  ;;  %v6517_v58 = vpack.c.bf16 %v4416_v9, %v4415_v8  ;;  %v4417_v6 = vld [vmem:[#allocation25 + $0x3f0] sm:$0xff]  ;;  %v4418_v18 = vld [vmem:[#allocation25 + $0x3f8] sm:$0xff] }
 0xed7   : > { %v4243_v27 = vpop.permute.xlu1 %4242  ;;  %4710 = vmatprep.mubr.f32.mxu0 %v4288_v35  ;;  %v4287_v7 = vsel %vm1503_vm3, %v4215_v53, %v7017_v34  ;;  %v6521_v17 = vpack.c.bf16 %v4418_v18, %v4417_v6 }
 0xed8   : > { %6484 = vmatpush3.bf16.msra.mxu0 %v6483_v19  ;;  %6500 = vmatpush3.bf16.msra.mxu1 %v6499_v14  ;;  %v4245_v54 = vmul.f32 %v4243_v27, %v8903_v21  ;;  %v6519_v19 = vpack.c.bf16 %v4400_v12, %v4399_v11  ;;  %v6532_v14 = vpack.c.bf16 %v4424_v43, %v4423_v4 }
 0xed9   : > { %6486 = vmatprep.subr.bf16.mxu0 %v6485_v15  ;;  %6502 = vmatprep.subr.bf16.mxu1 %v6501_v20  ;;  %v4402_v15 = vld [vmem:[#allocation25 + $0x378] sm:$0xff]  ;;  %v4425_v20 = vld [vmem:[#allocation25 + $0x430] sm:$0xff]  ;;  %v4233_v35 = vpop.permute.xlu0 %4232 }
 0xeda   : > { %v6523_v48 = vpack.c.bf16 %v4402_v15, %v4401_v5  ;;  %v6535_v23 = vpack.c.bf16 %v4426_v22, %v4425_v20  ;;  %v4235_v36 = vmul.f32 %v4233_v35, %v8903_v21 }
 0xedb   : > { %v8944_v44 = vpop.permute.xlu1 %7021 }
 0xedc   : > { %v7023_v46 = vunpack.i.l.bf16 %v8944_v44  ;;  %6488 = vmatpush3.bf16.msra.mxu0 %v6487_v38  ;;  %6504 = vmatpush3.bf16.msra.mxu1 %v6503_v13 }
 0xedd   : > { %6490 = vmatprep.subr.bf16.mxu0 %v6489_v61  ;;  %6506 = vmatprep.subr.bf16.mxu1 %v6505_v24 }
 0xede   : > { %v4290_v30 = vsel %vm1503_vm3, %v4245_v54, %v7023_v46 }
 0xedf   : > { %4780 = vmatprep.mubr.f32.mxu1 %v4290_v30 }
 0xee0   : > { %6492 = vmatpush3.bf16.msra.mxu0 %v6491_v41  ;;  %6508 = vmatpush3.bf16.msra.mxu1 %v6507_v33 }
 0xee1   : > { %6510 = vmatprep.subr.bf16.mxu1 %v6509_v49  ;;  %6525 = vmatprep.subr.bf16.mxu0 %v7759_v0 }
 0xee3   : > { %4711 = vmatmul.mubr.f32.vlgmr.msra.gmra.mrb[34].mxu0 %v4287_v7 }
 0xee4   : > { %6512 = vmatpush3.bf16.msra.mxu1 %v6511_v60  ;;  %6527 = vmatpush3.bf16.msra.mxu0 %v6526_v52  ;;  %v5341_v60 = vld [vmem:[%s7981_s5] ss:$0 sm:$0xff] }
 0xee5   : > { %6514 = vmatprep.subr.bf16.mxu1 %v6513_v63  ;;  %6528 = vmatprep.subr.bf16.mxu0 %v7759_v0 }
 0xee6   : > { %6060 = vmatprep.mubr.msk.f32.mxu0 %vm7760_vm0, %v7761_v1  ;;  %v7024_v1 = vunpack.i.h.bf16 %v8944_v44 }
 0xee8   : > { %6516 = vmatpush3.bf16.msra.mxu1 %v6515_v10  ;;  %6530 = vmatpush3.bf16.msra.mxu0 %v6529_v25  ;;  %v4289_v37 = vsel %vm1503_vm3, %v4235_v36, %v7024_v1 }
 0xee9   : > { %6518 = vmatprep.subr.bf16.mxu1 %v6517_v58  ;;  %6531 = vmatprep.subr.bf16.mxu0 %v7759_v0 }
 0xeec   : > { %6520 = vmatpush3.bf16.msra.mxu1 %v6519_v19  ;;  %6533 = vmatpush3.bf16.msra.mxu0 %v6532_v14 }
 0xeed   : > { %6522 = vmatprep.subr.bf16.mxu1 %v6521_v17  ;;  %6534 = vmatprep.subr.bf16.mxu0 %v7759_v0 }
 0xef0   : > { %6524 = vmatpush3.bf16.msra.mxu1 %v6523_v48  ;;  %6536 = vmatpush3.bf16.msra.mxu0 %v6535_v23 }
 0xef3   : > { %4781 = vmatmul.mubr.f32.vlgmr.msra.gmra.mrb[38].mxu1 %v4289_v37  ;;  %6061 = vmatmul.mubr.msk.f32.vlgmr.msra.gmra.mrb[36].mxu0 %vm1503_vm3, %v8903_v21  ;;  %v5340_v21 = vld [vmem:[#allocation28] ss:$0 sm:$0xff] }
 0xf96   : > { %v5751_v28 = vpop.f32.mrb[32].mxu0 }
 0xf97   : > { %v5752_v27 = vpop.f32.mrb[33].mxu0 }
 0xf98   : > { %v5753_v38 = vadd.f32 %v5752_v27, %v5751_v28 }
 0xf9a   : > { %v4573_v13 = vadd.f32 %v5753_v38, %v8917_v45 }
 0xfa6   : > { %v5786_v31 = vpop.f32.mrb[36].mxu1 }
 0xfa7   : > { %v5787_v61 = vpop.f32.mrb[37].mxu1 }
 0xfa8   : > { %v5788_v0 = vadd.f32 %v5787_v61, %v5786_v31 }
 0xfaa   : > { %v4643_v24 = vadd.f32 %v5788_v0, %v4573_v13 }
 0xfb6   : > { %v5821_v40 = vpop.f32.mrb[34].mxu0 }
 0xfb7   : > { %v5822_v32 = vpop.f32.mrb[35].mxu0 }
 0xfb8   : > { %v5823_v29 = vadd.f32 %v5822_v32, %v5821_v40 }
 0xfba   : > { %v4713_v26 = vadd.f32 %v5823_v29, %v4643_v24 }
 0xfc6   : > { %v5856_v42 = vpop.f32.mrb[38].mxu1  ;;  %v4852_v39 = vpop.f32.mrb[36].mxu0 }
 0xfc7   : > { %v5857_v44 = vpop.f32.mrb[39].mxu1  ;;  %v6062_v54 = vpop.f32.mrb[37].mxu0 }
 0xfc8   : > { %v5858_v46 = vadd.f32 %v5857_v44, %v5856_v42 }
 0xfca   : > { %v4783_v41 = vadd.f32 %v5858_v46, %v4713_v26 }
 0xfcc   : > { %v4853_v33 = vadd.f32 %v4852_v39, %v4783_v41 }
 0xfce   : > { %v4863_v47 = vadd.f32 %v5340_v21, %v4853_v33 }
 0xfd0   : > { %v4864_v45 = vadd.f32 %v4863_v47, %v8833_v16 }
 0xfd2   : > { %v4865_v49 = vsel %vm1298_vm1, %v4864_v45, 0.0 }
 0xfd3   : > { %4866 = vadd.xlane.f32.xlu1 %v4865_v49 }
0x1060   : > { %v4867_v59 = vpop.xlane.xlu1 %4866 }
0x1061   : > { %v4868_v50 = vmul.f32 0.03125, %v4867_v59 }
0x1063   : > { %v4869_v51 = vsub.f32 %v4864_v45, %v4868_v50 }
0x1065   : > { %v4870_v34 = vmul.f32 %v4869_v51, %v4869_v51 }
0x1067   : > { %v4871_v53 = vsel %vm1298_vm1, %v4870_v34, 0.0 }
0x1068   : > { %4872 = vadd.xlane.f32.xlu0 %v4871_v53 }
0x10f5   : > { %v4873_v30 = vpop.xlane.xlu0 %4872 }
0x10f6   : > { %v4874_v55 = vmul.f32 0.03125, %v4873_v30 }
0x10f8   : > { %v4875_v57 = vadd.f32 1e-05, %v4874_v55 }
0x10fa   : > { %7062 = vrsqrt.f32 %v4875_v57 }
0x1104   : > { %v7063_v16 = vpop.eup %7062 }
0x1105   : > { %v4877_v52 = vmul.f32 %v7063_v16, %v4869_v51 }
0x1107   : > { %v4885_v63 = vmul.f32 %v5341_v60, %v4877_v52 }
0x1109   : > { %v4893_v56 = vadd.f32 %v5342_v62, %v4885_v63 }
0x110b   : > { %4894 = vst.msk [vmem:[%s1270_s27] sm:$0xff] %vm1298_vm1, %v4893_v56 }
0x110c   : > { %7616 = shalt.err (!%p7613_p13)
}
0x110d   : > { %s7617_s4 = scalar_lea.hbm %s8972_s0, 128  ;;  %s7621_s28 = scalar_lea.hbm %s9153_s20, 256 }
0x110e   : > { %p7618_p0 = scmp.ne.s32.totalorder %s8972_s0, %s7617_s4  ;;  %p7622_p2 = scmp.lt.u32.totalorder %s8972_s0, %s9153_s20 }
0x110f   : > { %p7623_p4 = scmp.lt.u32.totalorder %s7621_s28, %s7617_s4  ;;  %p7625_p10 = scmp.lt.u32.totalorder %s7617_s4, %s8972_s0 }
0x1110   : > { %p7619_p6 = pnand %p7618_p0, %p9154_p12 }
0x1111   : > { %p7624_p3 = por %p7623_p4, %p7622_p2 }
0x1112   : > { %p7620_p9 = pneg %p7619_p6 }
0x1113   : > { %p7626_p8 = por %p7625_p10, %p7624_p3 }
0x1115   : > { %p7627_p11 = pnand %p7626_p8, %p7620_p9 }
0x1117   : > { %7630 = shalt.err (!%p7627_p11)
}
0x1118   : > { %6607 = dma.vmem_to_hbm [thread:$0]  (%p9154_p12), %s8974_s15, 128, %s8972_s0, %s4896_s7  }
0x1119 PF: > { %s9155_s6 = sld [smem:[#allocation75_spill]]  ;;  %s4930_s11 = sand.u32 1, %s7693_s22  }
0x111a   : > { %p9157_p5 = scmp.ge.s32.totalorder %s7705_s26, 2  ;;  %s4931_s1 = scalar_lea.sflag [#allocation4], %s4930_s11 }
0x111f   : > { %p9156_p1 = scmp.ne.s32.totalorder %s9155_s6, 0 }
0x1121   : > { %p6669_p7 = pnand %p9157_p5, %p9156_p1 }
0x1123   : > { %7688 = dma.done.wait (!%p6669_p7), %s4931_s1, 128  }
0x1124   : > { %7690 = vsyncadd (!%p6669_p7), %s4931_s1, 4294967168  ;;  %s9158_s26 = sld [smem:[#allocation73_spill]]  ;;  %s9159_s12 = sld [smem:[#allocation72_spill]] }
0x1125   : > { %s9160_s0 = sld [smem:[#allocation74_spill]]  ;;  %s9161_s22 = smov %s7697_s23 }
0x112a   : > { %p88_p13 = scmp.ge.s32.totalorder %s9158_s26, 4   ;;  %s9162_s23 = smov %s9159_s12 }
0x112c   :  { %90 = sbr.rel (!%p88_p13) target bundleno = 81 (0x51), region = 316 }
0x1133   :  { %4944 = vsyncpa [#allocation3], 1 }
0x1134   :  { %4946 = vsyncpa [#allocation3 + $0x1], 1 }
0x1135   :  { %4947 = vsyncpa [#allocation6], 1 }
0x1136   :  { %4949 = vsyncpa [#allocation6 + $0x1], 1 }
0x1137   :  { %4950 = vsyncpa [#allocation9], 1 }
0x1138   :  { %4951 = vsyncpa [#allocation12], 1 }
0x1139   :  { %4952 = vsyncpa [#allocation15], 1 }
0x113a   :  { %4953 = vsyncpa [#allocation18], 1 }
0x113b   :  { %4954 = vsyncpa [#allocation21], 1 }
0x113c   :  { %4955 = vsyncpa [#allocation24], 1 }
0x113d   :  { %4956 = vsyncpa [#allocation27], 1 }
0x113e   :  { %4957 = vsyncpa [#allocation30], 1 }
0x113f   :  { %4958 = vsyncpa [#allocation4], 1 }
0x1140   :  { %4960 = vsyncpa [#allocation4 + $0x1], 1 }

</bundles_post_ra>
